<compile_context>
chip_gen: v7x
topology: tpu7x:2x2x1
jax: 0.10.0
libtpu: 0.0.40
codegen_flags: <defaults>
</compile_context>

<pallas_src>
import numpy as np
import jax
import jax.numpy as jnp
from jax.experimental import pallas as pl
from jax.experimental.pallas import tpu as pltpu

# ----------------- small synthetic DLRM config -----------------
BATCH = 256
BLOCK_B = 128                    # batch tile per grid step (grid=(2,) -> 2 TCs on v7x)
LN_BOT = (13, 64, 32)            # bottom MLP; last entry == m_spa
M_SPA = LN_BOT[-1]               # embedding dim
LN_EMB = (100, 200, 300)         # rows per embedding table
NUM_TABLES = len(LN_EMB)
BAG_SIZE = 2                     # lookups per sample per table (fixed offsets)
NUM_FEAT = 1 + NUM_TABLES        # dense feature + sparse features
NUM_INT = NUM_FEAT * (NUM_FEAT - 1) // 2   # dot-interaction pairs (offset=0)
LN_TOP = (M_SPA + NUM_INT, 64, 1)
SIGMOID_BOT = -1                 # bottom MLP: all ReLU
SIGMOID_TOP = len(LN_TOP) - 2    # top MLP: sigmoid on the last layer

DENSE_PAD = 16                   # 13 padded up to a sublane multiple
ROW_CHUNK = 128                  # one-hot counts chunk along the table-row axis
OUT_PAD = 128                    # lane-dense output width (column 0 is the result)


def _round_up(n, m):
    return ((n + m - 1) // m) * m


# ----------------------- Pallas kernel --------------------------
def dlrm_kernel(dense_ref, idx_ref,
                emb0_ref, emb1_ref, emb2_ref,
                bw0_ref, bb0_ref, bw1_ref, bb1_ref,
                tw0x_ref, tw0z_ref, tb0_ref, tw1_ref, tb1_ref,
                out_ref):
    f32, bf16 = jnp.float32, jnp.bfloat16
    tb = dense_ref.shape[0]

    # ---------------- bottom MLP (Linear + ReLU) ----------------
    # Weights pre-transposed to (in, out), bf16 operands, f32 accumulate.
    x = dense_ref[...]                                            # (TB, 16) bf16
    x = jnp.maximum(
        jnp.dot(x, bw0_ref[...], preferred_element_type=f32) + bb0_ref[...], 0.0)
    x = jnp.maximum(
        jnp.dot(x.astype(bf16), bw1_ref[...],
                preferred_element_type=f32) + bb1_ref[...], 0.0)  # (TB, M_SPA) f32

    # -------- EmbeddingBag(mode='sum'), chunked bf16 one-hot counts --------
    idx = idx_ref[...]                                            # (TB, NT*BAG) i32
    # Single shared iota, hoisted out of all table / bag / chunk loops.
    row_iota = jax.lax.broadcasted_iota(jnp.int32, (tb, ROW_CHUNK), 1)

    def emb_bag(t, table_ref):
        cols = idx[:, t * BAG_SIZE:(t + 1) * BAG_SIZE]            # static slice
        n_chunks = table_ref.shape[0] // ROW_CHUNK
        acc = jnp.zeros((tb, M_SPA), f32)
        for c in range(n_chunks):                                 # tiny static loop
            base = c * ROW_CHUNK
            counts = ((cols[:, 0:1] - base) == row_iota).astype(bf16)
            for l in range(1, BAG_SIZE):
                counts = counts + ((cols[:, l:l + 1] - base) == row_iota).astype(bf16)
            # sum of selected rows in this chunk == counts @ table_chunk (MXU)
            acc = acc + jnp.dot(counts, table_ref[pl.ds(base, ROW_CHUNK), :],
                                preferred_element_type=f32)
        return acc

    ly = [emb_bag(0, emb0_ref), emb_bag(1, emb1_ref), emb_bag(2, emb2_ref)]

    # ------------- dot interaction folded into the top-MLP layer 0 -------------
    # Same (i, j) order as the torch li/lj construction with offset=0.
    # z_k * W0z[k, :] == (feats[i]*feats[j]) @ row-expanded W0z slice, so the
    # cross-lane reductions + width-1 concat + K=6 matmul are replaced by
    # per-pair MXU matmuls against the pre-expanded tw0_z.
    feats = [x] + ly                                              # NUM_FEAT x (TB, M)
    h = (jnp.dot(x.astype(bf16), tw0x_ref[...], preferred_element_type=f32)
         + tb0_ref[...])
    k = 0
    for i in range(NUM_FEAT):
        for j in range(i):
            p = (feats[i] * feats[j]).astype(bf16)                # (TB, M_SPA)
            h = h + jnp.dot(p, tw0z_ref[pl.ds(k * M_SPA, M_SPA), :],
                            preferred_element_type=f32)
            k += 1
    h = jnp.maximum(h, 0.0)                                       # ReLU

    # ---------------- top MLP final layer (padded to 128 lanes) ----------------
    out_ref[...] = jax.nn.sigmoid(
        jnp.dot(h.astype(bf16), tw1_ref[...], preferred_element_type=f32)
        + tb1_ref[...])                                           # (TB, 128)


# ----------------------- wrapper --------------------------------
def dlrm_forward(dense_x, idx_list, emb_tables, bot_params, top_params,
                 block_b=BLOCK_B):
    B, d_in = dense_x.shape
    block_b = min(block_b, B)
    assert B % block_b == 0, "batch must be a multiple of the batch tile"
    bf16 = jnp.bfloat16

    # ---- host-side padding, packing, weight pre-transposition, bf16 casts ----
    dense_p = jnp.pad(dense_x, ((0, 0), (0, DENSE_PAD - d_in))).astype(bf16)
    idx_packed = jnp.concatenate(idx_list, axis=1).astype(jnp.int32)  # (B, NT*BAG)

    (bw0, bb0), (bw1, bb1) = bot_params
    bw0_t = jnp.pad(bw0.T, ((0, DENSE_PAD - d_in), (0, 0))).astype(bf16)  # (16, 64)
    bw1_t = bw1.T.astype(bf16)                                            # (64, M_SPA)

    (tw0, tb0), (tw1, tb1) = top_params
    tw0_x = tw0[:, :M_SPA].T.astype(bf16)                         # (M_SPA, 64)
    # Expand each interaction row of W0 to M_SPA identical rows: (NUM_INT*M_SPA, 64)
    tw0_z_exp = jnp.repeat(tw0[:, M_SPA:].T, M_SPA, axis=0).astype(bf16)
    tw1_t = tw1.T                                                 # (64, 1)
    tw1_p = jnp.pad(tw1_t, ((0, 0), (0, OUT_PAD - tw1_t.shape[1]))).astype(bf16)
    tb1_p = jnp.pad(tb1, ((0, 0), (0, OUT_PAD - tb1.shape[1])))   # (1, 128) f32

    emb_p = [jnp.pad(t, ((0, _round_up(t.shape[0], ROW_CHUNK) - t.shape[0]), (0, 0)))
             .astype(bf16) for t in emb_tables]

    batch_map = lambda i: (i, 0)    # batch-tiled operands
    fixed_map = lambda i: (0, 0)    # VMEM-resident weights / tables

    in_specs = [
        pl.BlockSpec((block_b, DENSE_PAD), batch_map),            # dense
        pl.BlockSpec((block_b, NUM_TABLES * BAG_SIZE), batch_map),  # packed indices
        pl.BlockSpec(emb_p[0].shape, fixed_map),                  # tables
        pl.BlockSpec(emb_p[1].shape, fixed_map),
        pl.BlockSpec(emb_p[2].shape, fixed_map),
        pl.BlockSpec(bw0_t.shape, fixed_map),                     # bottom MLP
        pl.BlockSpec(bb0.shape, fixed_map),
        pl.BlockSpec(bw1_t.shape, fixed_map),
        pl.BlockSpec(bb1.shape, fixed_map),
        pl.BlockSpec(tw0_x.shape, fixed_map),                     # top MLP
        pl.BlockSpec(tw0_z_exp.shape, fixed_map),
        pl.BlockSpec(tb0.shape, fixed_map),
        pl.BlockSpec(tw1_p.shape, fixed_map),
        pl.BlockSpec(tb1_p.shape, fixed_map),
    ]
    out_specs = pl.BlockSpec((block_b, OUT_PAD), batch_map)

    out = pl.pallas_call(
        dlrm_kernel,
        out_shape=jax.ShapeDtypeStruct((B, OUT_PAD), jnp.float32),
        grid=(B // block_b,),
        in_specs=in_specs,
        out_specs=out_specs,
        compiler_params=pltpu.CompilerParams(
            dimension_semantics=("parallel",)),   # shards batch tiles across v7x TCs
    )(dense_p, idx_packed, *emb_p,
      bw0_t, bb0, bw1_t, bb1, tw0_x, tw0_z_exp, tb0, tw1_p, tb1_p)
    return out[:, :LN_TOP[-1]]                                    # lane-dense -> (B, 1)


# ----------------------- pure-JAX reference ---------------------
def dlrm_ref(dense_x, idx_list, emb_tables, bot_params, top_params):
    x = dense_x
    for k, (w, b) in enumerate(bot_params):
        x = x @ w.T + b
        x = jax.nn.sigmoid(x) if k == SIGMOID_BOT else jnp.maximum(x, 0.0)
    ly = [tab[idx].sum(axis=1) for idx, tab in zip(idx_list, emb_tables)]
    feats = [x] + ly
    cols = []
    for i in range(NUM_FEAT):
        for j in range(i):
            cols.append(jnp.sum(feats[i] * feats[j], axis=1, keepdims=True))
    z = jnp.concatenate([x] + cols, axis=1)
    for k, (w, b) in enumerate(top_params):
        z = z @ w.T + b
        z = jax.nn.sigmoid(z) if k == SIGMOID_TOP else jnp.maximum(z, 0.0)
    return z


# ----------------------- parameter init -------------------------
def make_params(rng):
    def mlp(ln):
        params = []
        for i in range(len(ln) - 1):
            n, m = ln[i], ln[i + 1]
            w = rng.normal(0.0, np.sqrt(2.0 / (m + n)), size=(m, n)).astype(np.float32)
            b = rng.normal(0.0, np.sqrt(1.0 / m), size=(1, m)).astype(np.float32)
            params.append((jnp.asarray(w), jnp.asarray(b)))
        return params

    bot = mlp(LN_BOT)
    top = mlp(LN_TOP)
    tables = []
    for n in LN_EMB:
        lim = np.sqrt(1.0 / n)
        tables.append(jnp.asarray(
            rng.uniform(-lim, lim, size=(n, M_SPA)).astype(np.float32)))
    return bot, top, tables


if __name__ == "__main__":
    # Deterministic weights and inputs.
    np_rng = np.random.default_rng(0)
    bot_params, top_params, emb_tables = make_params(np_rng)

    key = jax.random.PRNGKey(0)
    k_dense, *k_idx = jax.random.split(key, 1 + NUM_TABLES)
    dense_x = jax.random.normal(k_dense, (BATCH, LN_BOT[0]), dtype=jnp.float32)
    idx_list = [
        jax.random.randint(k_idx[t], (BATCH, BAG_SIZE), 0, LN_EMB[t], dtype=jnp.int32)
        for t in range(NUM_TABLES)
    ]
    # TODO(synk): general (ragged) EmbeddingBag offsets lS_o are modeled with a
    # fixed bag size per sample (offsets = arange(B)*BAG_SIZE).

    out = dlrm_forward(dense_x, idx_list, emb_tables, bot_params, top_params)
    out = jax.block_until_ready(out)

    ref = dlrm_ref(dense_x, idx_list, emb_tables, bot_params, top_params)
    # Tolerance widened slightly vs. the pure-f32 version: MXU operands are bf16
    # (f32 accumulation); expected deviation on these sigmoid outputs is ~1e-3.
    np.testing.assert_allclose(np.asarray(out), np.asarray(ref), rtol=2e-2, atol=2e-2)

    print("KERNEL_OK")
</pallas_src>

<mosaic_0001>
module attributes {stable_mosaic.version = 11 : i64} {
  func.func @dlrm_kernel(%arg0: i32, %arg1: memref<128x16xbf16, #tpu.memory_space<vmem>>, %arg2: memref<128x6xi32, #tpu.memory_space<vmem>>, %arg3: memref<128x32xbf16, #tpu.memory_space<vmem>>, %arg4: memref<256x32xbf16, #tpu.memory_space<vmem>>, %arg5: memref<384x32xbf16, #tpu.memory_space<vmem>>, %arg6: memref<16x64xbf16, #tpu.memory_space<vmem>>, %arg7: memref<1x64xf32, #tpu.memory_space<vmem>>, %arg8: memref<64x32xbf16, #tpu.memory_space<vmem>>, %arg9: memref<1x32xf32, #tpu.memory_space<vmem>>, %arg10: memref<32x64xbf16, #tpu.memory_space<vmem>>, %arg11: memref<192x64xbf16, #tpu.memory_space<vmem>>, %arg12: memref<1x64xf32, #tpu.memory_space<vmem>>, %arg13: memref<64x128xbf16, #tpu.memory_space<vmem>>, %arg14: memref<1x128xf32, #tpu.memory_space<vmem>>, %arg15: memref<128x128xf32, #tpu.memory_space<vmem>>) attributes {dimension_semantics = [#tpu.dimension_semantics<parallel>], iteration_bounds = array<i64: 2>, scalar_prefetch = 0 : i64, scratch_operands = 0 : i64, tpu.core_type = #tpu.core_type<tc>, window_params = [{transform_indices = @transform_0, window_bounds = array<i64: 128, 16>}, {transform_indices = @transform_1, window_bounds = array<i64: 128, 6>}, {pipeline_mode = #tpu.pipeline_mode<synchronous>, transform_indices = @transform_2, window_bounds = array<i64: 128, 32>}, {pipeline_mode = #tpu.pipeline_mode<synchronous>, transform_indices = @transform_3, window_bounds = array<i64: 256, 32>}, {pipeline_mode = #tpu.pipeline_mode<synchronous>, transform_indices = @transform_4, window_bounds = array<i64: 384, 32>}, {pipeline_mode = #tpu.pipeline_mode<synchronous>, transform_indices = @transform_5, window_bounds = array<i64: 16, 64>}, {pipeline_mode = #tpu.pipeline_mode<synchronous>, transform_indices = @transform_6, window_bounds = array<i64: 1, 64>}, {pipeline_mode = #tpu.pipeline_mode<synchronous>, transform_indices = @transform_7, window_bounds = array<i64: 64, 32>}, {pipeline_mode = #tpu.pipeline_mode<synchronous>, transform_indices = @transform_8, window_bounds = array<i64: 1, 32>}, {pipeline_mode = #tpu.pipeline_mode<synchronous>, transform_indices = @transform_9, window_bounds = array<i64: 32, 64>}, {pipeline_mode = #tpu.pipeline_mode<synchronous>, transform_indices = @transform_10, window_bounds = array<i64: 192, 64>}, {pipeline_mode = #tpu.pipeline_mode<synchronous>, transform_indices = @transform_11, window_bounds = array<i64: 1, 64>}, {pipeline_mode = #tpu.pipeline_mode<synchronous>, transform_indices = @transform_12, window_bounds = array<i64: 64, 128>}, {pipeline_mode = #tpu.pipeline_mode<synchronous>, transform_indices = @transform_13, window_bounds = array<i64: 1, 128>}, {transform_indices = @transform_14, window_bounds = array<i64: 128, 128>}]} {
    %c0 = arith.constant 0 : index
    %c0_0 = arith.constant 0 : index
    %0 = vector.load %arg1[%c0, %c0_0] : memref<128x16xbf16, #tpu.memory_space<vmem>>, vector<128x16xbf16>
    %c0_1 = arith.constant 0 : index
    %c0_2 = arith.constant 0 : index
    %1 = vector.load %arg6[%c0_1, %c0_2] : memref<16x64xbf16, #tpu.memory_space<vmem>>, vector<16x64xbf16>
    %cst = arith.constant dense<0.000000e+00> : vector<128x64xf32>
    %2 = tpu.matmul %0, %1, %cst {dimension_numbers = #tpu.dot_dimension_numbers<[1], [0], [0], [1], [0, 0, 1, 1], [], []>} : vector<128x16xbf16>, vector<16x64xbf16>, vector<128x64xf32> -> vector<128x64xf32>
    %c0_3 = arith.constant 0 : index
    %c0_4 = arith.constant 0 : index
    %3 = vector.load %arg7[%c0_3, %c0_4] : memref<1x64xf32, #tpu.memory_space<vmem>>, vector<1x64xf32>
    %4 = vector.broadcast %3 : vector<1x64xf32> to vector<128x64xf32>
    %5 = arith.addf %2, %4 : vector<128x64xf32>
    %cst_5 = arith.constant 0.000000e+00 : f32
    %6 = vector.broadcast %cst_5 : f32 to vector<128x64xf32>
    %7 = arith.maximumf %5, %6 : vector<128x64xf32>
    %8 = arith.truncf %7 : vector<128x64xf32> to vector<128x64xbf16>
    %c0_6 = arith.constant 0 : index
    %c0_7 = arith.constant 0 : index
    %9 = vector.load %arg8[%c0_6, %c0_7] : memref<64x32xbf16, #tpu.memory_space<vmem>>, vector<64x32xbf16>
    %cst_8 = arith.constant dense<0.000000e+00> : vector<128x32xf32>
    %10 = tpu.matmul %8, %9, %cst_8 {dimension_numbers = #tpu.dot_dimension_numbers<[1], [0], [0], [1], [0, 0, 1, 1], [], []>} : vector<128x64xbf16>, vector<64x32xbf16>, vector<128x32xf32> -> vector<128x32xf32>
    %c0_9 = arith.constant 0 : index
    %c0_10 = arith.constant 0 : index
    %11 = vector.load %arg9[%c0_9, %c0_10] : memref<1x32xf32, #tpu.memory_space<vmem>>, vector<1x32xf32>
    %12 = vector.broadcast %11 : vector<1x32xf32> to vector<128x32xf32>
    %13 = arith.addf %10, %12 : vector<128x32xf32>
    %cst_11 = arith.constant 0.000000e+00 : f32
    %14 = vector.broadcast %cst_11 : f32 to vector<128x32xf32>
    %15 = arith.maximumf %13, %14 : vector<128x32xf32>
    %c0_12 = arith.constant 0 : index
    %c0_13 = arith.constant 0 : index
    %16 = vector.load %arg2[%c0_12, %c0_13] : memref<128x6xi32, #tpu.memory_space<vmem>>, vector<128x6xi32>
    %17 = tpu.iota {dimensions = array<i32: 1>} : vector<128x128xi32>
    %18 = vector.extract_strided_slice %16 {offsets = [0, 0], sizes = [128, 2], strides = [1, 1]} : vector<128x6xi32> to vector<128x2xi32>
    %cst_14 = arith.constant 0.000000e+00 : f32
    %19 = vector.broadcast %cst_14 : f32 to vector<128x32xf32>
    %20 = vector.extract_strided_slice %18 {offsets = [0, 0], sizes = [128, 1], strides = [1, 1]} : vector<128x2xi32> to vector<128x1xi32>
    %c0_i32 = arith.constant 0 : i32
    %21 = vector.broadcast %c0_i32 : i32 to vector<128x1xi32>
    %22 = arith.subi %20, %21 : vector<128x1xi32>
    %23 = vector.broadcast %22 : vector<128x1xi32> to vector<128x128xi32>
    %24 = arith.cmpi eq, %23, %17 : vector<128x128xi32>
    %25 = arith.extui %24 : vector<128x128xi1> to vector<128x128xi32>
    %26 = arith.sitofp %25 : vector<128x128xi32> to vector<128x128xf32>
    %27 = arith.truncf %26 : vector<128x128xf32> to vector<128x128xbf16>
    %28 = vector.extract_strided_slice %18 {offsets = [0, 1], sizes = [128, 1], strides = [1, 1]} : vector<128x2xi32> to vector<128x1xi32>
    %c0_i32_15 = arith.constant 0 : i32
    %29 = vector.broadcast %c0_i32_15 : i32 to vector<128x1xi32>
    %30 = arith.subi %28, %29 : vector<128x1xi32>
    %31 = vector.broadcast %30 : vector<128x1xi32> to vector<128x128xi32>
    %32 = arith.cmpi eq, %31, %17 : vector<128x128xi32>
    %33 = arith.extui %32 : vector<128x128xi1> to vector<128x128xi32>
    %34 = arith.sitofp %33 : vector<128x128xi32> to vector<128x128xf32>
    %35 = arith.truncf %34 : vector<128x128xf32> to vector<128x128xbf16>
    %36 = arith.addf %27, %35 : vector<128x128xbf16>
    %c0_16 = arith.constant 0 : index
    %c0_17 = arith.constant 0 : index
    %37 = vector.load %arg3[%c0_16, %c0_17] : memref<128x32xbf16, #tpu.memory_space<vmem>>, vector<128x32xbf16>
    %cst_18 = arith.constant dense<0.000000e+00> : vector<128x32xf32>
    %38 = tpu.matmul %36, %37, %cst_18 {dimension_numbers = #tpu.dot_dimension_numbers<[1], [0], [0], [1], [0, 0, 1, 1], [], []>} : vector<128x128xbf16>, vector<128x32xbf16>, vector<128x32xf32> -> vector<128x32xf32>
    %39 = arith.addf %19, %38 : vector<128x32xf32>
    %40 = vector.extract_strided_slice %16 {offsets = [0, 2], sizes = [128, 2], strides = [1, 1]} : vector<128x6xi32> to vector<128x2xi32>
    %cst_19 = arith.constant 0.000000e+00 : f32
    %41 = vector.broadcast %cst_19 : f32 to vector<128x32xf32>
    %42 = vector.extract_strided_slice %40 {offsets = [0, 0], sizes = [128, 1], strides = [1, 1]} : vector<128x2xi32> to vector<128x1xi32>
    %c0_i32_20 = arith.constant 0 : i32
    %43 = vector.broadcast %c0_i32_20 : i32 to vector<128x1xi32>
    %44 = arith.subi %42, %43 : vector<128x1xi32>
    %45 = vector.broadcast %44 : vector<128x1xi32> to vector<128x128xi32>
    %46 = arith.cmpi eq, %45, %17 : vector<128x128xi32>
    %47 = arith.extui %46 : vector<128x128xi1> to vector<128x128xi32>
    %48 = arith.sitofp %47 : vector<128x128xi32> to vector<128x128xf32>
    %49 = arith.truncf %48 : vector<128x128xf32> to vector<128x128xbf16>
    %50 = vector.extract_strided_slice %40 {offsets = [0, 1], sizes = [128, 1], strides = [1, 1]} : vector<128x2xi32> to vector<128x1xi32>
    %c0_i32_21 = arith.constant 0 : i32
    %51 = vector.broadcast %c0_i32_21 : i32 to vector<128x1xi32>
    %52 = arith.subi %50, %51 : vector<128x1xi32>
    %53 = vector.broadcast %52 : vector<128x1xi32> to vector<128x128xi32>
    %54 = arith.cmpi eq, %53, %17 : vector<128x128xi32>
    %55 = arith.extui %54 : vector<128x128xi1> to vector<128x128xi32>
    %56 = arith.sitofp %55 : vector<128x128xi32> to vector<128x128xf32>
    %57 = arith.truncf %56 : vector<128x128xf32> to vector<128x128xbf16>
    %58 = arith.addf %49, %57 : vector<128x128xbf16>
    %c0_22 = arith.constant 0 : index
    %c0_23 = arith.constant 0 : index
    %59 = vector.load %arg4[%c0_22, %c0_23] : memref<256x32xbf16, #tpu.memory_space<vmem>>, vector<128x32xbf16>
    %cst_24 = arith.constant dense<0.000000e+00> : vector<128x32xf32>
    %60 = tpu.matmul %58, %59, %cst_24 {dimension_numbers = #tpu.dot_dimension_numbers<[1], [0], [0], [1], [0, 0, 1, 1], [], []>} : vector<128x128xbf16>, vector<128x32xbf16>, vector<128x32xf32> -> vector<128x32xf32>
    %61 = arith.addf %41, %60 : vector<128x32xf32>
    %62 = vector.extract_strided_slice %40 {offsets = [0, 0], sizes = [128, 1], strides = [1, 1]} : vector<128x2xi32> to vector<128x1xi32>
    %c128_i32 = arith.constant 128 : i32
    %63 = vector.broadcast %c128_i32 : i32 to vector<128x1xi32>
    %64 = arith.subi %62, %63 : vector<128x1xi32>
    %65 = vector.broadcast %64 : vector<128x1xi32> to vector<128x128xi32>
    %66 = arith.cmpi eq, %65, %17 : vector<128x128xi32>
    %67 = arith.extui %66 : vector<128x128xi1> to vector<128x128xi32>
    %68 = arith.sitofp %67 : vector<128x128xi32> to vector<128x128xf32>
    %69 = arith.truncf %68 : vector<128x128xf32> to vector<128x128xbf16>
    %70 = vector.extract_strided_slice %40 {offsets = [0, 1], sizes = [128, 1], strides = [1, 1]} : vector<128x2xi32> to vector<128x1xi32>
    %c128_i32_25 = arith.constant 128 : i32
    %71 = vector.broadcast %c128_i32_25 : i32 to vector<128x1xi32>
    %72 = arith.subi %70, %71 : vector<128x1xi32>
    %73 = vector.broadcast %72 : vector<128x1xi32> to vector<128x128xi32>
    %74 = arith.cmpi eq, %73, %17 : vector<128x128xi32>
    %75 = arith.extui %74 : vector<128x128xi1> to vector<128x128xi32>
    %76 = arith.sitofp %75 : vector<128x128xi32> to vector<128x128xf32>
    %77 = arith.truncf %76 : vector<128x128xf32> to vector<128x128xbf16>
    %78 = arith.addf %69, %77 : vector<128x128xbf16>
    %c128 = arith.constant 128 : index
    %c0_26 = arith.constant 0 : index
    %79 = vector.load %arg4[%c128, %c0_26] : memref<256x32xbf16, #tpu.memory_space<vmem>>, vector<128x32xbf16>
    %cst_27 = arith.constant dense<0.000000e+00> : vector<128x32xf32>
    %80 = tpu.matmul %78, %79, %cst_27 {dimension_numbers = #tpu.dot_dimension_numbers<[1], [0], [0], [1], [0, 0, 1, 1], [], []>} : vector<128x128xbf16>, vector<128x32xbf16>, vector<128x32xf32> -> vector<128x32xf32>
    %81 = arith.addf %61, %80 : vector<128x32xf32>
    %82 = vector.extract_strided_slice %16 {offsets = [0, 4], sizes = [128, 2], strides = [1, 1]} : vector<128x6xi32> to vector<128x2xi32>
    %cst_28 = arith.constant 0.000000e+00 : f32
    %83 = vector.broadcast %cst_28 : f32 to vector<128x32xf32>
    %84 = vector.extract_strided_slice %82 {offsets = [0, 0], sizes = [128, 1], strides = [1, 1]} : vector<128x2xi32> to vector<128x1xi32>
    %c0_i32_29 = arith.constant 0 : i32
    %85 = vector.broadcast %c0_i32_29 : i32 to vector<128x1xi32>
    %86 = arith.subi %84, %85 : vector<128x1xi32>
    %87 = vector.broadcast %86 : vector<128x1xi32> to vector<128x128xi32>
    %88 = arith.cmpi eq, %87, %17 : vector<128x128xi32>
    %89 = arith.extui %88 : vector<128x128xi1> to vector<128x128xi32>
    %90 = arith.sitofp %89 : vector<128x128xi32> to vector<128x128xf32>
    %91 = arith.truncf %90 : vector<128x128xf32> to vector<128x128xbf16>
    %92 = vector.extract_strided_slice %82 {offsets = [0, 1], sizes = [128, 1], strides = [1, 1]} : vector<128x2xi32> to vector<128x1xi32>
    %c0_i32_30 = arith.constant 0 : i32
    %93 = vector.broadcast %c0_i32_30 : i32 to vector<128x1xi32>
    %94 = arith.subi %92, %93 : vector<128x1xi32>
    %95 = vector.broadcast %94 : vector<128x1xi32> to vector<128x128xi32>
    %96 = arith.cmpi eq, %95, %17 : vector<128x128xi32>
    %97 = arith.extui %96 : vector<128x128xi1> to vector<128x128xi32>
    %98 = arith.sitofp %97 : vector<128x128xi32> to vector<128x128xf32>
    %99 = arith.truncf %98 : vector<128x128xf32> to vector<128x128xbf16>
    %100 = arith.addf %91, %99 : vector<128x128xbf16>
    %c0_31 = arith.constant 0 : index
    %c0_32 = arith.constant 0 : index
    %101 = vector.load %arg5[%c0_31, %c0_32] : memref<384x32xbf16, #tpu.memory_space<vmem>>, vector<128x32xbf16>
    %cst_33 = arith.constant dense<0.000000e+00> : vector<128x32xf32>
    %102 = tpu.matmul %100, %101, %cst_33 {dimension_numbers = #tpu.dot_dimension_numbers<[1], [0], [0], [1], [0, 0, 1, 1], [], []>} : vector<128x128xbf16>, vector<128x32xbf16>, vector<128x32xf32> -> vector<128x32xf32>
    %103 = arith.addf %83, %102 : vector<128x32xf32>
    %104 = vector.extract_strided_slice %82 {offsets = [0, 0], sizes = [128, 1], strides = [1, 1]} : vector<128x2xi32> to vector<128x1xi32>
    %c128_i32_34 = arith.constant 128 : i32
    %105 = vector.broadcast %c128_i32_34 : i32 to vector<128x1xi32>
    %106 = arith.subi %104, %105 : vector<128x1xi32>
    %107 = vector.broadcast %106 : vector<128x1xi32> to vector<128x128xi32>
    %108 = arith.cmpi eq, %107, %17 : vector<128x128xi32>
    %109 = arith.extui %108 : vector<128x128xi1> to vector<128x128xi32>
    %110 = arith.sitofp %109 : vector<128x128xi32> to vector<128x128xf32>
    %111 = arith.truncf %110 : vector<128x128xf32> to vector<128x128xbf16>
    %112 = vector.extract_strided_slice %82 {offsets = [0, 1], sizes = [128, 1], strides = [1, 1]} : vector<128x2xi32> to vector<128x1xi32>
    %c128_i32_35 = arith.constant 128 : i32
    %113 = vector.broadcast %c128_i32_35 : i32 to vector<128x1xi32>
    %114 = arith.subi %112, %113 : vector<128x1xi32>
    %115 = vector.broadcast %114 : vector<128x1xi32> to vector<128x128xi32>
    %116 = arith.cmpi eq, %115, %17 : vector<128x128xi32>
    %117 = arith.extui %116 : vector<128x128xi1> to vector<128x128xi32>
    %118 = arith.sitofp %117 : vector<128x128xi32> to vector<128x128xf32>
    %119 = arith.truncf %118 : vector<128x128xf32> to vector<128x128xbf16>
    %120 = arith.addf %111, %119 : vector<128x128xbf16>
    %c128_36 = arith.constant 128 : index
    %c0_37 = arith.constant 0 : index
    %121 = vector.load %arg5[%c128_36, %c0_37] : memref<384x32xbf16, #tpu.memory_space<vmem>>, vector<128x32xbf16>
    %cst_38 = arith.constant dense<0.000000e+00> : vector<128x32xf32>
    %122 = tpu.matmul %120, %121, %cst_38 {dimension_numbers = #tpu.dot_dimension_numbers<[1], [0], [0], [1], [0, 0, 1, 1], [], []>} : vector<128x128xbf16>, vector<128x32xbf16>, vector<128x32xf32> -> vector<128x32xf32>
    %123 = arith.addf %103, %122 : vector<128x32xf32>
    %124 = vector.extract_strided_slice %82 {offsets = [0, 0], sizes = [128, 1], strides = [1, 1]} : vector<128x2xi32> to vector<128x1xi32>
    %c256_i32 = arith.constant 256 : i32
    %125 = vector.broadcast %c256_i32 : i32 to vector<128x1xi32>
    %126 = arith.subi %124, %125 : vector<128x1xi32>
    %127 = vector.broadcast %126 : vector<128x1xi32> to vector<128x128xi32>
    %128 = arith.cmpi eq, %127, %17 : vector<128x128xi32>
    %129 = arith.extui %128 : vector<128x128xi1> to vector<128x128xi32>
    %130 = arith.sitofp %129 : vector<128x128xi32> to vector<128x128xf32>
    %131 = arith.truncf %130 : vector<128x128xf32> to vector<128x128xbf16>
    %132 = vector.extract_strided_slice %82 {offsets = [0, 1], sizes = [128, 1], strides = [1, 1]} : vector<128x2xi32> to vector<128x1xi32>
    %c256_i32_39 = arith.constant 256 : i32
    %133 = vector.broadcast %c256_i32_39 : i32 to vector<128x1xi32>
    %134 = arith.subi %132, %133 : vector<128x1xi32>
    %135 = vector.broadcast %134 : vector<128x1xi32> to vector<128x128xi32>
    %136 = arith.cmpi eq, %135, %17 : vector<128x128xi32>
    %137 = arith.extui %136 : vector<128x128xi1> to vector<128x128xi32>
    %138 = arith.sitofp %137 : vector<128x128xi32> to vector<128x128xf32>
    %139 = arith.truncf %138 : vector<128x128xf32> to vector<128x128xbf16>
    %140 = arith.addf %131, %139 : vector<128x128xbf16>
    %c256 = arith.constant 256 : index
    %c0_40 = arith.constant 0 : index
    %141 = vector.load %arg5[%c256, %c0_40] : memref<384x32xbf16, #tpu.memory_space<vmem>>, vector<128x32xbf16>
    %cst_41 = arith.constant dense<0.000000e+00> : vector<128x32xf32>
    %142 = tpu.matmul %140, %141, %cst_41 {dimension_numbers = #tpu.dot_dimension_numbers<[1], [0], [0], [1], [0, 0, 1, 1], [], []>} : vector<128x128xbf16>, vector<128x32xbf16>, vector<128x32xf32> -> vector<128x32xf32>
    %143 = arith.addf %123, %142 : vector<128x32xf32>
    %144 = arith.truncf %15 : vector<128x32xf32> to vector<128x32xbf16>
    %c0_42 = arith.constant 0 : index
    %c0_43 = arith.constant 0 : index
    %145 = vector.load %arg10[%c0_42, %c0_43] : memref<32x64xbf16, #tpu.memory_space<vmem>>, vector<32x64xbf16>
    %cst_44 = arith.constant dense<0.000000e+00> : vector<128x64xf32>
    %146 = tpu.matmul %144, %145, %cst_44 {dimension_numbers = #tpu.dot_dimension_numbers<[1], [0], [0], [1], [0, 0, 1, 1], [], []>} : vector<128x32xbf16>, vector<32x64xbf16>, vector<128x64xf32> -> vector<128x64xf32>
    %c0_45 = arith.constant 0 : index
    %c0_46 = arith.constant 0 : index
    %147 = vector.load %arg12[%c0_45, %c0_46] : memref<1x64xf32, #tpu.memory_space<vmem>>, vector<1x64xf32>
    %148 = vector.broadcast %147 : vector<1x64xf32> to vector<128x64xf32>
    %149 = arith.addf %146, %148 : vector<128x64xf32>
    %150 = arith.mulf %39, %15 : vector<128x32xf32>
    %151 = arith.truncf %150 : vector<128x32xf32> to vector<128x32xbf16>
    %c0_47 = arith.constant 0 : index
    %c0_48 = arith.constant 0 : index
    %152 = vector.load %arg11[%c0_47, %c0_48] : memref<192x64xbf16, #tpu.memory_space<vmem>>, vector<32x64xbf16>
    %cst_49 = arith.constant dense<0.000000e+00> : vector<128x64xf32>
    %153 = tpu.matmul %151, %152, %cst_49 {dimension_numbers = #tpu.dot_dimension_numbers<[1], [0], [0], [1], [0, 0, 1, 1], [], []>} : vector<128x32xbf16>, vector<32x64xbf16>, vector<128x64xf32> -> vector<128x64xf32>
    %154 = arith.addf %149, %153 : vector<128x64xf32>
    %155 = arith.mulf %81, %15 : vector<128x32xf32>
    %156 = arith.truncf %155 : vector<128x32xf32> to vector<128x32xbf16>
    %c32 = arith.constant 32 : index
    %c0_50 = arith.constant 0 : index
    %157 = vector.load %arg11[%c32, %c0_50] : memref<192x64xbf16, #tpu.memory_space<vmem>>, vector<32x64xbf16>
    %cst_51 = arith.constant dense<0.000000e+00> : vector<128x64xf32>
    %158 = tpu.matmul %156, %157, %cst_51 {dimension_numbers = #tpu.dot_dimension_numbers<[1], [0], [0], [1], [0, 0, 1, 1], [], []>} : vector<128x32xbf16>, vector<32x64xbf16>, vector<128x64xf32> -> vector<128x64xf32>
    %159 = arith.addf %154, %158 : vector<128x64xf32>
    %160 = arith.mulf %81, %39 : vector<128x32xf32>
    %161 = arith.truncf %160 : vector<128x32xf32> to vector<128x32xbf16>
    %c64 = arith.constant 64 : index
    %c0_52 = arith.constant 0 : index
    %162 = vector.load %arg11[%c64, %c0_52] : memref<192x64xbf16, #tpu.memory_space<vmem>>, vector<32x64xbf16>
    %cst_53 = arith.constant dense<0.000000e+00> : vector<128x64xf32>
    %163 = tpu.matmul %161, %162, %cst_53 {dimension_numbers = #tpu.dot_dimension_numbers<[1], [0], [0], [1], [0, 0, 1, 1], [], []>} : vector<128x32xbf16>, vector<32x64xbf16>, vector<128x64xf32> -> vector<128x64xf32>
    %164 = arith.addf %159, %163 : vector<128x64xf32>
    %165 = arith.mulf %143, %15 : vector<128x32xf32>
    %166 = arith.truncf %165 : vector<128x32xf32> to vector<128x32xbf16>
    %c96 = arith.constant 96 : index
    %c0_54 = arith.constant 0 : index
    %167 = vector.load %arg11[%c96, %c0_54] : memref<192x64xbf16, #tpu.memory_space<vmem>>, vector<32x64xbf16>
    %cst_55 = arith.constant dense<0.000000e+00> : vector<128x64xf32>
    %168 = tpu.matmul %166, %167, %cst_55 {dimension_numbers = #tpu.dot_dimension_numbers<[1], [0], [0], [1], [0, 0, 1, 1], [], []>} : vector<128x32xbf16>, vector<32x64xbf16>, vector<128x64xf32> -> vector<128x64xf32>
    %169 = arith.addf %164, %168 : vector<128x64xf32>
    %170 = arith.mulf %143, %39 : vector<128x32xf32>
    %171 = arith.truncf %170 : vector<128x32xf32> to vector<128x32xbf16>
    %c128_56 = arith.constant 128 : index
    %c0_57 = arith.constant 0 : index
    %172 = vector.load %arg11[%c128_56, %c0_57] : memref<192x64xbf16, #tpu.memory_space<vmem>>, vector<32x64xbf16>
    %cst_58 = arith.constant dense<0.000000e+00> : vector<128x64xf32>
    %173 = tpu.matmul %171, %172, %cst_58 {dimension_numbers = #tpu.dot_dimension_numbers<[1], [0], [0], [1], [0, 0, 1, 1], [], []>} : vector<128x32xbf16>, vector<32x64xbf16>, vector<128x64xf32> -> vector<128x64xf32>
    %174 = arith.addf %169, %173 : vector<128x64xf32>
    %175 = arith.mulf %143, %81 : vector<128x32xf32>
    %176 = arith.truncf %175 : vector<128x32xf32> to vector<128x32xbf16>
    %c160 = arith.constant 160 : index
    %c0_59 = arith.constant 0 : index
    %177 = vector.load %arg11[%c160, %c0_59] : memref<192x64xbf16, #tpu.memory_space<vmem>>, vector<32x64xbf16>
    %cst_60 = arith.constant dense<0.000000e+00> : vector<128x64xf32>
    %178 = tpu.matmul %176, %177, %cst_60 {dimension_numbers = #tpu.dot_dimension_numbers<[1], [0], [0], [1], [0, 0, 1, 1], [], []>} : vector<128x32xbf16>, vector<32x64xbf16>, vector<128x64xf32> -> vector<128x64xf32>
    %179 = arith.addf %174, %178 : vector<128x64xf32>
    %cst_61 = arith.constant 0.000000e+00 : f32
    %180 = vector.broadcast %cst_61 : f32 to vector<128x64xf32>
    %181 = arith.maximumf %179, %180 : vector<128x64xf32>
    %182 = arith.truncf %181 : vector<128x64xf32> to vector<128x64xbf16>
    %c0_62 = arith.constant 0 : index
    %c0_63 = arith.constant 0 : index
    %183 = vector.load %arg13[%c0_62, %c0_63] : memref<64x128xbf16, #tpu.memory_space<vmem>>, vector<64x128xbf16>
    %cst_64 = arith.constant dense<0.000000e+00> : vector<128x128xf32>
    %184 = tpu.matmul %182, %183, %cst_64 {dimension_numbers = #tpu.dot_dimension_numbers<[1], [0], [0], [1], [0, 0, 1, 1], [], []>} : vector<128x64xbf16>, vector<64x128xbf16>, vector<128x128xf32> -> vector<128x128xf32>
    %c0_65 = arith.constant 0 : index
    %c0_66 = arith.constant 0 : index
    %185 = vector.load %arg14[%c0_65, %c0_66] : memref<1x128xf32, #tpu.memory_space<vmem>>, vector<1x128xf32>
    %186 = vector.broadcast %185 : vector<1x128xf32> to vector<128x128xf32>
    %187 = arith.addf %184, %186 : vector<128x128xf32>
    %188 = arith.negf %187 : vector<128x128xf32>
    %189 = math.exp %188 : vector<128x128xf32>
    %cst_67 = arith.constant 1.000000e+00 : f32
    %190 = vector.broadcast %cst_67 : f32 to vector<128x128xf32>
    %191 = arith.addf %190, %189 : vector<128x128xf32>
    %192 = arith.divf %190, %191 : vector<128x128xf32>
    %c0_68 = arith.constant 0 : index
    %c0_69 = arith.constant 0 : index
    %193 = vector.load %arg15[%c0_68, %c0_69] : memref<128x128xf32, #tpu.memory_space<vmem>>, vector<128x128xf32>
    tpu.vector_store %arg15[%c0_68, %c0_69], %192 {strides = array<i32>} : memref<128x128xf32, #tpu.memory_space<vmem>>, vector<128x128xf32>,
    return
  }
  func.func @transform_0(%arg0: i32) -> (i32, i32) {
    %c0_i32 = arith.constant 0 : i32
    %c0_i32_0 = arith.constant 0 : i32
    return %arg0, %c0_i32 : i32, i32
  }
  func.func @transform_1(%arg0: i32) -> (i32, i32) {
    %c0_i32 = arith.constant 0 : i32
    %c0_i32_0 = arith.constant 0 : i32
    return %arg0, %c0_i32 : i32, i32
  }
  func.func @transform_2(%arg0: i32) -> (i32, i32) {
    %c0_i32 = arith.constant 0 : i32
    %c0_i32_0 = arith.constant 0 : i32
    %c0_i32_1 = arith.constant 0 : i32
    return %c0_i32, %c0_i32_0 : i32, i32
  }
  func.func @transform_3(%arg0: i32) -> (i32, i32) {
    %c0_i32 = arith.constant 0 : i32
    %c0_i32_0 = arith.constant 0 : i32
    %c0_i32_1 = arith.constant 0 : i32
    return %c0_i32, %c0_i32_0 : i32, i32
  }
  func.func @transform_4(%arg0: i32) -> (i32, i32) {
    %c0_i32 = arith.constant 0 : i32
    %c0_i32_0 = arith.constant 0 : i32
    %c0_i32_1 = arith.constant 0 : i32
    return %c0_i32, %c0_i32_0 : i32, i32
  }
  func.func @transform_5(%arg0: i32) -> (i32, i32) {
    %c0_i32 = arith.constant 0 : i32
    %c0_i32_0 = arith.constant 0 : i32
    %c0_i32_1 = arith.constant 0 : i32
    return %c0_i32, %c0_i32_0 : i32, i32
  }
  func.func @transform_6(%arg0: i32) -> (i32, i32) {
    %c0_i32 = arith.constant 0 : i32
    %c0_i32_0 = arith.constant 0 : i32
    %c0_i32_1 = arith.constant 0 : i32
    return %c0_i32, %c0_i32_0 : i32, i32
  }
  func.func @transform_7(%arg0: i32) -> (i32, i32) {
    %c0_i32 = arith.constant 0 : i32
    %c0_i32_0 = arith.constant 0 : i32
    %c0_i32_1 = arith.constant 0 : i32
    return %c0_i32, %c0_i32_0 : i32, i32
  }
  func.func @transform_8(%arg0: i32) -> (i32, i32) {
    %c0_i32 = arith.constant 0 : i32
    %c0_i32_0 = arith.constant 0 : i32
    %c0_i32_1 = arith.constant 0 : i32
    return %c0_i32, %c0_i32_0 : i32, i32
  }
  func.func @transform_9(%arg0: i32) -> (i32, i32) {
    %c0_i32 = arith.constant 0 : i32
    %c0_i32_0 = arith.constant 0 : i32
    %c0_i32_1 = arith.constant 0 : i32
    return %c0_i32, %c0_i32_0 : i32, i32
  }
  func.func @transform_10(%arg0: i32) -> (i32, i32) {
    %c0_i32 = arith.constant 0 : i32
    %c0_i32_0 = arith.constant 0 : i32
    %c0_i32_1 = arith.constant 0 : i32
    return %c0_i32, %c0_i32_0 : i32, i32
  }
  func.func @transform_11(%arg0: i32) -> (i32, i32) {
    %c0_i32 = arith.constant 0 : i32
    %c0_i32_0 = arith.constant 0 : i32
    %c0_i32_1 = arith.constant 0 : i32
    return %c0_i32, %c0_i32_0 : i32, i32
  }
  func.func @transform_12(%arg0: i32) -> (i32, i32) {
    %c0_i32 = arith.constant 0 : i32
    %c0_i32_0 = arith.constant 0 : i32
    %c0_i32_1 = arith.constant 0 : i32
    return %c0_i32, %c0_i32_0 : i32, i32
  }
  func.func @transform_13(%arg0: i32) -> (i32, i32) {
    %c0_i32 = arith.constant 0 : i32
    %c0_i32_0 = arith.constant 0 : i32
    %c0_i32_1 = arith.constant 0 : i32
    return %c0_i32, %c0_i32_0 : i32, i32
  }
  func.func @transform_14(%arg0: i32) -> (i32, i32) {
    %c0_i32 = arith.constant 0 : i32
    %c0_i32_0 = arith.constant 0 : i32
    return %arg0, %c0_i32 : i32, i32
  }
}

</mosaic_0001>

<bundles_post_ra>
// kernel: tpu_custom_call.1
= control target key start
LH: loop header
LB: loop body
LE: loop exit
PB: predicated region body
PF: predicated region fallthrough
CT: control target
= control target key end

     0   :  { %19 = vsyncpa [#allocation3], 0  ;;  %s8379_s0 = inlined_call_operand.vmem [shape: bf16[256,16], index: 0, kind: input, shape index: {}]   ;;  %s8380_s1 = inlined_call_operand.vmem [shape: s32[256,6], index: 1, kind: input, shape index: {}]   ;;  %s8381_s2 = inlined_call_operand.vmem [shape: bf16[128,32], index: 2, kind: input, shape index: {}]   ;;  %s8382_s3 = inlined_call_operand.vmem [shape: bf16[256,32], index: 3, kind: input, shape index: {}]   ;;  %s8383_s4 = inlined_call_operand.vmem [shape: bf16[384,32], index: 4, kind: input, shape index: {}]   ;;  %s8384_s5 = inlined_call_operand.vmem [shape: bf16[16,64], index: 5, kind: input, shape index: {}]   ;;  %s8385_s6 = inlined_call_operand.vmem [shape: f32[1,64], index: 6, kind: input, shape index: {}]   ;;  %s8386_s7 = inlined_call_operand.vmem [shape: bf16[64,32], index: 7, kind: input, shape index: {}]   ;;  %s8387_s8 = inlined_call_operand.vmem [shape: f32[1,32], index: 8, kind: input, shape index: {}]   ;;  %s8388_s9 = inlined_call_operand.vmem [shape: bf16[32,64], index: 9, kind: input, shape index: {}]   ;;  %s8389_s10 = inlined_call_operand.vmem [shape: bf16[192,64], index: 10, kind: input, shape index: {}]   ;;  %s8390_s11 = inlined_call_operand.vmem [shape: f32[1,64], index: 11, kind: input, shape index: {}]   ;;  %s8391_s12 = inlined_call_operand.vmem [shape: bf16[64,128], index: 12, kind: input, shape index: {}]   ;;  %s8392_s13 = inlined_call_operand.vmem [shape: f32[1,128], index: 13, kind: input, shape index: {}]   ;;  %s8393_s14 = inlined_call_operand.hbm [shape: f32[256,128], index: 14, kind: output, shape index: {}]  }
   0x1   :  { %21 = vsyncpa [#allocation3 + $0x1], 0  ;;  %s6446_s29 = smov 0   ;;  %s6448_s30 = smov 0  }
   0x2   :  { %s6450_s15 = smov 0   ;;  %s6452_s16 = smov 0  }
   0x3 LB: > { %8446 = sst [smem:[#allocation5_spill]] %s6355_s15  ;;  %s6467_s17 = sadd.s32 4294967295, %s6359_s16   ;;  %s6359_s16 = sphi %s6452_s16, %s8536_s16   ;;  %s6355_s15 = sphi %s6450_s15, %s8538_s15   ;;  %s6351_s30 = sphi %s6448_s30, %s8540_s30   ;;  %s6347_s29 = sphi %s6446_s29, %s8539_s29  }
   0x4   : > { %s4813_s18 = sadd.s32 4294967294, %s6359_s16   ;;  %s6471_s19 = sadd.s32 1, %s6359_s16  }
   0x5   : > { %8447 = sst [smem:[#allocation6_spill]] %s6471_s19  ;;  %s338_s20 = sadd.s32 1, %s6355_s15 }
   0x6   : > { %s335_s21 = ssub.s32 %s6359_s16, %s6471_s19  ;;  %p348_p0 = scmp.ne.s32.totalorder %s6355_s15, %s6351_s30 }
   0x7   : > { %p336_p1 = scmp.eq.s32.totalorder %s335_s21, 0  ;;  %p349_p2 = scmp.eq.s32.totalorder %s6467_s17, 1 }
   0x8   : > { %p354_p3 = scmp.ne.s32.totalorder %s6351_s30, %s6347_s29  ;;  %p355_p4 = scmp.eq.s32.totalorder %s4813_s18, 1 }
   0x9   : > { %s6482_s22 = scalar_select %p336_p1, %s6355_s15, %s338_s20  }
   0xa   : > { %p6484_p5 = por %p349_p2, %p348_p0  ;;  %p6488_p6 = por %p355_p4, %p354_p3 }
   0xb   : > { %8448 = sst [smem:[#allocation7_spill]] %s6482_s22  ;;  %p4816_p7 = scmp.ge.s32.totalorder %s6359_s16, 1 }
   0xc   : > { %p427_p8 = scmp.lt.s32.totalorder %s6359_s16, 3 }
   0xe   : > { %p428_p9 = pnand %p4816_p7, %p427_p8 }
  0x10   : > { %431 = sbr.rel (%p428_p9) target bundleno = 1495 (0x5d7), region = 76 }
  0x17   : > { %v6361_v0 = vmov 1   ;;  %v6362_v1 = vmov 0   ;;  %v6138_v2 = vld [vmem:[%s8384_s5] sm:$0xff]   ;;  %s4818_s27 = sshll.u32 %s6467_s17, 4  ;;  %vm563_vm0 = vcmask 130048   ;;  %v6148_v18 = vld [vmem:[%s8381_s2 + $0x8] sm:$0xff]   ;;  %v902_v53 = vlaneseq }
  0x18   : > { %6037 = vset.pattern.permute.xlu1 %v6361_v0  ;;  %6036 = vset.pattern.permute.xlu0 %v6362_v1  ;;  %p479_p10 = scmp.lt.s32.totalorder %s4818_s27, 31  ;;  %v6147_v14 = vld [vmem:[%s8381_s2] sm:$0xff]   ;;  %v6149_v20 = vld [vmem:[%s8381_s2 + $0x10] sm:$0xff]   ;;  %v6150_v23 = vld [vmem:[%s8381_s2 + $0x18] sm:$0xff]   ;;  %v6363_v35 = vmov 2   ;;  %v6364_v50 = vmov 3  }
  0x19   : > { %5430 = vmatprep.subr.bf16.mxu0 %v6138_v2  ;;  %v6151_v25 = vld [vmem:[%s8381_s2 + $0x20] sm:$0xff]   ;;  %v6152_v28 = vld [vmem:[%s8381_s2 + $0x28] sm:$0xff]   ;;  %v6153_v29 = vld [vmem:[%s8381_s2 + $0x30] sm:$0xff]   ;;  %v6733_v55 = vand.u32 127, %v902_v53  ;;  %v8401_v58 = vmov 0.0   ;;  %s475_s15 = sand.u32 1, %s6351_s30  }
  0x1a   : > { %5431 = vmatpush3.bf16.msra.mxu0 %v6138_v2  ;;  %s8542_s27 = smov (!%p479_p10, %s4818_s27), 31  ;;  %v6154_v31 = vld [vmem:[%s8381_s2 + $0x38] sm:$0xff]   ;;  %v6155_v44 = vld [vmem:[%s8386_s7] sm:$0xff]   ;;  %v6156_v45 = vld [vmem:[%s8386_s7 + $0x8] sm:$0xff]   ;;  %s4817_s19 = sshll.u32 %s475_s15, 7 }
  0x1b   : > { %s4821_s28 = sshll.u32 %s8542_s27, 3  ;;  %s4819_s18 = sshll.u32 %s8542_s27, 2  ;;  %5472 = vmatprep.subr.bf16.mxu0 %v6147_v14  ;;  %5448 = vmatprep.subr.bf16.mxu1 %v6155_v44  ;;  %v6157_v47 = vld [vmem:[%s8386_s7 + $0x10] sm:$0xff]   ;;  %v6158_v48 = vld [vmem:[%s8386_s7 + $0x18] sm:$0xff]   ;;  %v6700_v49 = vld [vmem:[%s8382_s3 + $0x40] sm:$0xff]  }
  0x1c   : > { %s6503_s22 = scalar_lea.vmem %s8380_s1, %s4821_s28  ;;  %s6508_s25 = scalar_lea.vmem %s8379_s0, %s4819_s18  ;;  %5449 = vmatpush3.bf16.msra.mxu1 %v6155_v44 }
  0x1d   : > { %v6511_v3 = vld [vmem:[%s6503_s22] sm:$0xff]  ;;  %v6140_v5 = vld [vmem:[%s6508_s25 + $0x8] sm:$0xff]   ;;  %v6141_v7 = vld [vmem:[%s6508_s25 + $0x10] sm:$0xff]   ;;  %5450 = vmatprep.subr.bf16.mxu1 %v6156_v45  ;;  %s5230_s26 = sshll.u32 %s6467_s17, 11  ;;  %s8338_s17 = scalar_lea.sflag [#allocation3], %s475_s15 }
  0x1e   : > { %1009 = vperm.xlu1 %6037, %v6511_v3   ;;  %905 = vperm.xlu0 %6036, %v6511_v3   ;;  %v6139_v4 = vld [vmem:[%s6508_s25] sm:$0xff]   ;;  %v6518_v6 = vld [vmem:[%s6503_s22 + $0x8] sm:$0xff]  ;;  %v6526_v8 = vld [vmem:[%s6503_s22 + $0x10] sm:$0xff]  ;;  %v6686_v46 = vadd.s32 4294967168, %v6511_v3  ;;  %s8329_s18 = scalar_lea.hbm %s8393_s14, %s5230_s26  ;;  %s6368_s21 = smov [#allocation2]  }
  0x1f   : > { %5432 = vmatprep.mubr.msk.bf16.mxu0 %vm563_vm0, %v6139_v4  ;;  %v6530_v9 = vld [vmem:[%s6503_s22 + $0x18] sm:$0xff]  ;;  %v6143_v11 = vld [vmem:[%s6508_s25 + $0x20] sm:$0xff]   ;;  %v6538_v12 = vld [vmem:[%s6503_s22 + $0x28] sm:$0xff]  ;;  %v6622_v32 = vadd.s32 4294967168, %v6518_v6  ;;  %v6625_v33 = vadd.s32 4294967168, %v6526_v8 }
  0x20   : > { %5433 = vmatmul.mubr.msk.bf16.vlgmr.msra.gmra.mrb[0].mxu0 %vm563_vm0, %v6140_v5  ;;  %v6142_v10 = vld [vmem:[%s6508_s25 + $0x18] sm:$0xff]   ;;  %v6543_v13 = vld [vmem:[%s6503_s22 + $0x30] sm:$0xff]  ;;  %v6144_v15 = vld [vmem:[%s6508_s25 + $0x28] sm:$0xff]   ;;  %v6638_v36 = vadd.s32 4294967168, %v6538_v12  ;;  %5451 = vmatpush3.bf16.msra.mxu1 %v6156_v45  ;;  %v6709_v51 = vadd.s32 4294967168, %v6530_v9 }
  0x21   : > { %5436 = vmatprep.mubr.msk.bf16.mxu0 %vm563_vm0, %v6141_v7  ;;  %v6553_v16 = vld [vmem:[%s6503_s22 + $0x20] sm:$0xff]  ;;  %v6145_v17 = vld [vmem:[%s6508_s25 + $0x30] sm:$0xff]   ;;  %v6560_v19 = vld [vmem:[%s6503_s22 + $0x48] sm:$0xff]  ;;  %5473 = vmatpush3.bf16.msra.mxu0 %v6147_v14  ;;  %v6644_v37 = vadd.s32 4294967168, %v6543_v13 }
  0x22   : > { %1012 = vperm.xlu1 %6037, %v6518_v6   ;;  %908 = vperm.xlu0 %6036, %v6518_v6   ;;  %v6570_v21 = vld [vmem:[%s6503_s22 + $0x50] sm:$0xff]  ;;  %v6146_v22 = vld [vmem:[%s6508_s25 + $0x38] sm:$0xff]   ;;  %v6582_v24 = vld [vmem:[%s6503_s22 + $0x68] sm:$0xff]  ;;  %v6652_v39 = vadd.s32 4294967168, %v6560_v19  ;;  %v6719_v52 = vadd.s32 4294967168, %v6553_v16  ;;  %s8309_s25 = scalar_lea.vmem [#allocation2], %s4817_s19 }
  0x23   : > { %5474 = vmatprep.subr.bf16.mxu0 %v6148_v18  ;;  %v6589_v26 = vld [vmem:[%s6503_s22 + $0x70] sm:$0xff]  ;;  %v6594_v27 = vld [vmem:[%s6503_s22 + $0x38] sm:$0xff]  ;;  %v6610_v30 = vld [vmem:[%s6503_s22 + $0x40] sm:$0xff]  ;;  %v6657_v40 = vadd.s32 4294967168, %v6570_v21  ;;  %v6663_v41 = vadd.s32 4294967168, %v6582_v24  ;;  %5452 = vmatprep.subr.bf16.mxu1 %v6157_v47  ;;  %s6301_s19 = sshll.u32 %s6368_s21, 4  ;;  %s6302_s19 = int_to_ptr.vmem [resolvable:$false] %s6301_s19 }
  0x24   : > { %v6630_v34 = vld [vmem:[%s6503_s22 + $0x58] sm:$0xff]  ;;  %v6647_v38 = vld [vmem:[%s6503_s22 + $0x60] sm:$0xff]  ;;  %v6671_v43 = vadd.s32 4294967168, %v6589_v26  ;;  %5453 = vmatpush3.bf16.msra.mxu1 %v6157_v47  ;;  %v6731_v54 = vadd.s32 4294967168, %v6594_v27  ;;  %v6750_v5 = vadd.s32 4294967168, %v6610_v30  ;;  %s6303_s26 = scalar_lea.vmem %s6302_s19, 4096 }
  0x25   : > { %5475 = vmatpush3.bf16.msra.mxu0 %v6148_v18  ;;  %v6668_v42 = vld [vmem:[%s6503_s22 + $0x78] sm:$0xff]  ;;  %5454 = vmatprep.subr.bf16.mxu1 %v6158_v48  ;;  %v6766_v18 = vadd.s32 4294967168, %v6630_v34 }
  0x26   : > { %6038 = vset.pattern.permute.xlu1 %v6362_v1  ;;  %911 = vperm.xlu0 %6036, %v6526_v8  }
  0x27   : > { %914 = vperm.xlu1 %6038, %v6530_v9   ;;  %5476 = vmatprep.subr.bf16.mxu0 %v6149_v20 }
  0x28   : > { %5437 = vmatmul.mubr.msk.bf16.gmra.mrb[4].mxu0 %vm563_vm0, %v6142_v10  ;;  %5455 = vmatpush3.bf16.msra.mxu1 %v6158_v48 }
  0x29   : > { %5440 = vmatprep.mubr.msk.bf16.mxu0 %vm563_vm0, %v6143_v11  ;;  %5477 = vmatpush3.bf16.msra.mxu0 %v6149_v20 }
  0x2a   : > { %920 = vperm.xlu0 %6036, %v6538_v12   ;;  %5478 = vmatprep.subr.bf16.mxu0 %v6150_v23 }
  0x2b   : > { %6039 = vset.pattern.permute.xlu1 %v6361_v0 }
  0x2c   : > { %1018 = vperm.xlu1 %6039, %v6530_v9  }
  0x2d   : > { %5479 = vmatpush3.bf16.msra.mxu0 %v6150_v23 }
  0x2e   : > { %923 = vperm.xlu0 %6036, %v6543_v13   ;;  %5480 = vmatprep.subr.bf16.mxu0 %v6151_v25 }
  0x30   : > { %6040 = vset.pattern.permute.xlu1 %v6362_v1  ;;  %5441 = vmatmul.mubr.msk.bf16.gmra.mrb[8].mxu0 %vm563_vm0, %v6144_v15 }
  0x31   : > { %917 = vperm.xlu1 %6040, %v6553_v16   ;;  %5444 = vmatprep.mubr.msk.bf16.mxu0 %vm563_vm0, %v6145_v17 }
  0x32   : > { %932 = vperm.xlu0 %6036, %v6560_v19   ;;  %5481 = vmatpush3.bf16.msra.mxu0 %v6151_v25 }
  0x33   : > { %5482 = vmatprep.subr.bf16.mxu0 %v6152_v28 }
  0x35   : > { %6041 = vset.pattern.permute.xlu1 %v6361_v0 }
  0x36   : > { %1021 = vperm.xlu1 %6041, %v6553_v16   ;;  %935 = vperm.xlu0 %6036, %v6570_v21  }
  0x37   : > { %5483 = vmatpush3.bf16.msra.mxu0 %v6152_v28  ;;  %v6782_v28 = vadd.s32 4294967168, %v6647_v38 }
  0x38   : > { %5445 = vmatmul.mubr.msk.bf16.gmra.mrb[12].mxu0 %vm563_vm0, %v6146_v22  ;;  %5484 = vmatprep.subr.bf16.mxu0 %v6153_v29  ;;  %v8399_v22 = vmov 5  }
  0x3a   : > { %1024 = vperm.xlu1 %6041, %v6538_v12   ;;  %944 = vperm.xlu0 %6036, %v6582_v24  }
  0x3b   : > { %5485 = vmatpush3.bf16.msra.mxu0 %v6153_v29 }
  0x3c   : > { %5486 = vmatprep.subr.bf16.mxu0 %v6154_v31 }
  0x3e   : > { %6042 = vset.pattern.permute.xlu1 %v6362_v1  ;;  %947 = vperm.xlu0 %6036, %v6589_v26  }
  0x3f   : > { %926 = vperm.xlu1 %6042, %v6594_v27   ;;  %5487 = vmatpush3.bf16.msra.mxu0 %v6154_v31 }
  0x40   : > { %5504 = vmatprep.subr.bf16.mxu0 %v6700_v49 }
  0x42   : > { %6050 = vset.pattern.permute.xlu0 %v6361_v0 }
  0x43   : > { %6043 = vset.pattern.permute.xlu1 %v6361_v0  ;;  %1015 = vperm.xlu0 %6050, %v6526_v8  }
  0x44   : > { %1030 = vperm.xlu1 %6043, %v6594_v27  }
  0x47   : > { %1027 = vperm.xlu0 %6050, %v6543_v13  }
  0x48   : > { %6044 = vset.pattern.permute.xlu1 %v6362_v1 }
  0x49   : > { %929 = vperm.xlu1 %6044, %v6610_v30  }
  0x4b   : > { %1039 = vperm.xlu0 %6050, %v6570_v21  }
  0x4d   : > { %6045 = vset.pattern.permute.xlu1 %v6361_v0 }
  0x4e   : > { %1033 = vperm.xlu1 %6045, %v6610_v30  }
  0x4f   : > { %1051 = vperm.xlu0 %6050, %v6589_v26  }
  0x52   : > { %1036 = vperm.xlu1 %6045, %v6560_v19  }
  0x53   : > { %6054 = vset.pattern.permute.xlu0 %v6363_v35 }
  0x54   : > { %1533 = vperm.xlu0 %6054, %v6622_v32  }
  0x56   : > { %6046 = vset.pattern.permute.xlu1 %v6362_v1 }
  0x57   : > { %938 = vperm.xlu1 %6046, %v6630_v34  }
  0x58   : > { %1536 = vperm.xlu0 %6054, %v6625_v33  }
  0x5b   : > { %6047 = vset.pattern.permute.xlu1 %v6361_v0 }
  0x5c   : > { %1042 = vperm.xlu1 %6047, %v6630_v34   ;;  %1545 = vperm.xlu0 %6054, %v6638_v36  }
  0x60   : > { %6048 = vset.pattern.permute.xlu1 %v6362_v1  ;;  %1548 = vperm.xlu0 %6054, %v6644_v37  }
  0x61   : > { %941 = vperm.xlu1 %6048, %v6647_v38  }
  0x64   : > { %1557 = vperm.xlu0 %6054, %v6652_v39  }
  0x65   : > { %6049 = vset.pattern.permute.xlu1 %v6361_v0 }
  0x66   : > { %1045 = vperm.xlu1 %6049, %v6647_v38  }
  0x68   : > { %1560 = vperm.xlu0 %6054, %v6657_v40  }
  0x6a   : > { %1048 = vperm.xlu1 %6049, %v6582_v24  }
  0x6c   : > { %1569 = vperm.xlu0 %6054, %v6663_v41  }
  0x6e   : > { %6051 = vset.pattern.permute.xlu1 %v6362_v1 }
  0x6f   : > { %950 = vperm.xlu1 %6051, %v6668_v42  }
  0x70   : > { %1572 = vperm.xlu0 %6054, %v6671_v43  }
  0x73   : > { %6052 = vset.pattern.permute.xlu1 %v6361_v0 }
  0x74   : > { %1054 = vperm.xlu1 %6052, %v6668_v42   ;;  %1285 = vperm.xlu0 %6054, %v6518_v6  }
  0x78   : > { %6053 = vset.pattern.permute.xlu1 %v6363_v35  ;;  %1288 = vperm.xlu0 %6054, %v6526_v8  }
  0x79   : > { %1530 = vperm.xlu1 %6053, %v6686_v46  }
  0x7c   : > { %1297 = vperm.xlu0 %6054, %v6538_v12  }
  0x7d   : > { %6055 = vset.pattern.permute.xlu1 %v6364_v50 }
  0x7e   : > { %1634 = vperm.xlu1 %6055, %v6686_v46  }
  0x80   : > { %1300 = vperm.xlu0 %6054, %v6543_v13  }
  0x82   : > { %1637 = vperm.xlu1 %6055, %v6622_v32  }
  0x84   : > { %1309 = vperm.xlu0 %6054, %v6560_v19  }
  0x86   : > { %6056 = vset.pattern.permute.xlu1 %v6363_v35 }
  0x87   : > { %1539 = vperm.xlu1 %6056, %v6709_v51  }
  0x88   : > { %1312 = vperm.xlu0 %6054, %v6570_v21  }
  0x8b   : > { %6057 = vset.pattern.permute.xlu1 %v6364_v50 }
  0x8c   : > { %1321 = vperm.xlu0 %6054, %v6582_v24   ;;  %1643 = vperm.xlu1 %6057, %v6709_v51  }
  0x90   : > { %1324 = vperm.xlu0 %6054, %v6589_v26   ;;  %6058 = vset.pattern.permute.xlu1 %v6363_v35 }
  0x91   : > { %1542 = vperm.xlu1 %6058, %v6719_v52  }
  0x94   : > { %6084 = vset.pattern.permute.xlu0 %v6364_v50 }
  0x95   : > { %1640 = vperm.xlu0 %6084, %v6625_v33   ;;  %6059 = vset.pattern.permute.xlu1 %v6364_v50 }
  0x96   : > { %1646 = vperm.xlu1 %6059, %v6719_v52  }
  0x99   : > { %1652 = vperm.xlu0 %6084, %v6644_v37  }
  0x9a   : > { %1649 = vperm.xlu1 %6059, %v6638_v36  }
  0x9d   : > { %v1010_v56 = vpop.permute.xlu1 %1009  ;;  %v906_v57 = vpop.permute.xlu0 %905  ;;  %1664 = vperm.xlu0 %6084, %v6657_v40  }
  0x9e   : > { %vm952_vm1 = vcmp.eq.s32.totalorder %v906_v57, %v6733_v55  ;;  %6060 = vset.pattern.permute.xlu1 %v6363_v35  ;;  %vm1056_vm2 = vcmp.eq.s32.totalorder %v1010_v56, %v6733_v55 }
  0x9f   : > { %1551 = vperm.xlu1 %6060, %v6731_v54   ;;  %v4853_v59 = vsel %vm952_vm1, 1.0, %v8401_v58  ;;  %v4869_v62 = vsel %vm1056_vm2, 1.0, %v8401_v58 }
  0xa1   : > { %v1013_v60 = vpop.permute.xlu1 %1012  ;;  %v909_v61 = vpop.permute.xlu0 %908  ;;  %1676 = vperm.xlu0 %6084, %v6671_v43  }
  0xa2   : > { %vm1057_vm3 = vcmp.eq.s32.totalorder %v1013_v60, %v6733_v55  ;;  %vm953_vm4 = vcmp.eq.s32.totalorder %v909_v61, %v6733_v55 }
  0xa3   : > { %v4870_v63 = vsel %vm1057_vm3, 1.0, %v8401_v58  ;;  %v4854_v0 = vsel %vm953_vm4, 1.0, %v8401_v58  ;;  %6061 = vset.pattern.permute.xlu1 %v6364_v50 }
  0xa4   : > { %v1104_v1 = vpack.c.bf16 %v4870_v63, %v4869_v62  ;;  %v1000_v2 = vpack.c.bf16 %v4854_v0, %v4853_v59  ;;  %1655 = vperm.xlu1 %6061, %v6731_v54  }
  0xa5   : > { %v912_v4 = vpop.permute.xlu0 %911  ;;  %1392 = vperm.xlu0 %6084, %v6526_v8  }
  0xa6   : > { %v915_v7 = vpop.permute.xlu1 %914  ;;  %v1112_v10 = vadd.bf16 %v1104_v1, %v1000_v2  ;;  %vm954_vm7 = vcmp.eq.s32.totalorder %v912_v4, %v6733_v55 }
  0xa7   : > { %vm955_vm6 = vcmp.eq.s32.totalorder %v915_v7, %v6733_v55  ;;  %v4855_v45 = vsel %vm954_vm7, 1.0, %v8401_v58 }
  0xa8   : > { %6062 = vset.pattern.permute.xlu1 %v6363_v35  ;;  %5488 = vmatprep.mubr.bf16.mxu0 %v1112_v10  ;;  %v4856_v44 = vsel %vm955_vm6, 1.0, %v8401_v58 }
  0xa9   : > { %1554 = vperm.xlu1 %6062, %v6750_v5   ;;  %v921_v11 = vpop.permute.xlu0 %920  ;;  %1404 = vperm.xlu0 %6084, %v6543_v13   ;;  %v1001_v62 = vpack.c.bf16 %v4856_v44, %v4855_v45 }
  0xaa   : > { %vm957_vm8 = vcmp.eq.s32.totalorder %v921_v11, %v6733_v55  ;;  %v6160_v11 = vld [vmem:[%s8382_s3 + $0x48] sm:$0xff]  }
  0xab   : > { %v1019_v12 = vpop.permute.xlu1 %1018  ;;  %v4858_v48 = vsel %vm957_vm8, 1.0, %v8401_v58 }
  0xac   : > { %vm1059_vm11 = vcmp.eq.s32.totalorder %v1019_v12, %v6733_v55 }
  0xad   : > { %6063 = vset.pattern.permute.xlu1 %v6364_v50  ;;  %v6757_v14 = vpop.permute.xlu0 %923  ;;  %1416 = vperm.xlu0 %6084, %v6570_v21   ;;  %v4872_v59 = vsel %vm1059_vm11, 1.0, %v8401_v58 }
  0xae   : > { %1658 = vperm.xlu1 %6063, %v6750_v5   ;;  %vm958_vm13 = vcmp.eq.s32.totalorder %v6757_v14, %v6733_v55 }
  0xaf   : > { %v4859_v12 = vsel %vm958_vm13, 1.0, %v8401_v58 }
  0xb0   : > { %v918_v15 = vpop.permute.xlu1 %917 }
  0xb1   : > { %v6761_v17 = vpop.permute.xlu0 %932  ;;  %1428 = vperm.xlu0 %6084, %v6589_v26   ;;  %vm956_vm9 = vcmp.eq.s32.totalorder %v918_v15, %v6733_v55 }
  0xb2   : > { %1661 = vperm.xlu1 %6063, %v6652_v39   ;;  %v4857_v53 = vsel %vm956_vm9, 1.0, %v8401_v58  ;;  %vm961_vm1 = vcmp.eq.s32.totalorder %v6761_v17, %v6733_v55 }
  0xb3   : > { %v1002_v0 = vpack.c.bf16 %v4858_v48, %v4857_v53  ;;  %v6162_v48 = vld [vmem:[%s8382_s3 + $0x58] sm:$0xff]   ;;  %v4862_v17 = vsel %vm961_vm1, 1.0, %v8401_v58  ;;  %vm748_vm1 = vcmask 523264  }
  0xb5   : > { %v1022_v19 = vpop.permute.xlu1 %1021  ;;  %v6768_v20 = vpop.permute.xlu0 %935  ;;  %6090 = vset.pattern.permute.xlu0 %v8399_v22 }
  0xb6   : > { %6064 = vset.pattern.permute.xlu1 %v6363_v35  ;;  %2394 = vperm.xlu0 %6090, %v6625_v33   ;;  %vm1060_vm10 = vcmp.eq.s32.totalorder %v1022_v19, %v6733_v55 }
  0xb7   : > { %1563 = vperm.xlu1 %6064, %v6766_v18   ;;  %v4873_v56 = vsel %vm1060_vm10, 1.0, %v8401_v58 }
  0xb9   : > { %v1025_v23 = vpop.permute.xlu1 %1024  ;;  %v6774_v24 = vpop.permute.xlu0 %944 }
  0xba   : > { %2406 = vperm.xlu0 %6090, %v6644_v37   ;;  %vm1061_vm5 = vcmp.eq.s32.totalorder %v1025_v23, %v6733_v55  ;;  %vm965_vm9 = vcmp.eq.s32.totalorder %v6774_v24, %v6733_v55 }
  0xbb   : > { %6065 = vset.pattern.permute.xlu1 %v6364_v50  ;;  %v4874_v31 = vsel %vm1061_vm5, 1.0, %v8401_v58  ;;  %vm962_vm5 = vcmp.eq.s32.totalorder %v6768_v20, %v6733_v55 }
  0xbc   : > { %1667 = vperm.xlu1 %6065, %v6766_v18   ;;  %v1106_v60 = vpack.c.bf16 %v4874_v31, %v4873_v56  ;;  %v6161_v31 = vld [vmem:[%s8382_s3 + $0x50] sm:$0xff]   ;;  %v4863_v20 = vsel %vm962_vm5, 1.0, %v8401_v58 }
  0xbd   : > { %v6779_v25 = vpop.permute.xlu0 %947 }
  0xbe   : > { %v927_v29 = vpop.permute.xlu1 %926  ;;  %2418 = vperm.xlu0 %6090, %v6657_v40   ;;  %v1114_v10 = vadd.bf16 %v1106_v60, %v1002_v0  ;;  %vm966_vm13 = vcmp.eq.s32.totalorder %v6779_v25, %v6733_v55 }
  0xbf   : > { %vm959_vm14 = vcmp.eq.s32.totalorder %v927_v29, %v6733_v55  ;;  %v6821_v29 = vadd.s32 4294967168, %v6668_v42 }
  0xc0   : > { %6066 = vset.pattern.permute.xlu1 %v6363_v35  ;;  %v4860_v14 = vsel %vm959_vm14, 1.0, %v8401_v58 }
  0xc1   : > { %1566 = vperm.xlu1 %6066, %v6782_v28   ;;  %v1003_v44 = vpack.c.bf16 %v4860_v14, %v4859_v12  ;;  %v6165_v14 = vld [vmem:[%s8382_s3 + $0x70] sm:$0xff]  }
  0xc2   : > { %v1016_v47 = vpop.permute.xlu0 %1015  ;;  %2430 = vperm.xlu0 %6090, %v6671_v43  }
  0xc3   : > { %vm1058_vm12 = vcmp.eq.s32.totalorder %v1016_v47, %v6733_v55  ;;  %v1031_v57 = vpop.permute.xlu1 %1030 }
  0xc4   : > { %v4871_v61 = vsel %vm1058_vm12, 1.0, %v8401_v58  ;;  %vm1063_vm15 = vcmp.eq.s32.totalorder %v1031_v57, %v6733_v55 }
  0xc5   : > { %v1105_v63 = vpack.c.bf16 %v4872_v59, %v4871_v61  ;;  %6067 = vset.pattern.permute.xlu1 %v6364_v50  ;;  %v4876_v15 = vsel %vm1063_vm15, 1.0, %v8401_v58 }
  0xc6   : > { %v1028_v1 = vpop.permute.xlu0 %1027  ;;  %1670 = vperm.xlu1 %6067, %v6782_v28   ;;  %2162 = vperm.xlu0 %6090, %v6526_v8  }
  0xc7   : > { %v1113_v2 = vadd.bf16 %v1105_v63, %v1001_v62  ;;  %vm1062_vm0 = vcmp.eq.s32.totalorder %v1028_v1, %v6733_v55  ;;  %v6163_v63 = vld [vmem:[%s8382_s3 + $0x60] sm:$0xff]  }
  0xc8   : > { %v4875_v4 = vsel %vm1062_vm0, 1.0, %v8401_v58  ;;  %v930_v7 = vpop.permute.xlu1 %929 }
  0xc9   : > { %5489 = vmatmul.mubr.bf16.vlgmr.msra.gmra.mrb[16].mxu0 %v1113_v2  ;;  %v1107_v23 = vpack.c.bf16 %v4876_v15, %v4875_v4  ;;  %vm960_vm2 = vcmp.eq.s32.totalorder %v930_v7, %v6733_v55  ;;  %v6854_v2 = vadd.s32 4294967040, %v6526_v8  ;;  %v6869_v8 = vadd.s32 4294967040, %v6543_v13 }
  0xca   : > { %1673 = vperm.xlu1 %6067, %v6663_v41   ;;  %5492 = vmatprep.mubr.bf16.mxu0 %v1114_v10  ;;  %v1040_v19 = vpop.permute.xlu0 %1039  ;;  %v4861_v53 = vsel %vm960_vm2, 1.0, %v8401_v58 }
  0xcb   : > { %5505 = vmatpush3.bf16.msra.mxu0 %v6700_v49  ;;  %2174 = vperm.xlu0 %6090, %v6543_v13   ;;  %v1115_v49 = vadd.bf16 %v1107_v23, %v1003_v44  ;;  %v1004_v61 = vpack.c.bf16 %v4862_v17, %v4861_v53  ;;  %vm1066_vm6 = vcmp.eq.s32.totalorder %v1040_v19, %v6733_v55  ;;  %v8397_v17 = vmov 4  }
  0xcc   : > { %5506 = vmatprep.subr.bf16.mxu0 %v6160_v11  ;;  %v4879_v7 = vsel %vm1066_vm6, 1.0, %v8401_v58  ;;  %v4866_v53 = vsel %vm965_vm9, 1.0, %v8401_v58 }
  0xcd   : > { %v1034_v45 = vpop.permute.xlu1 %1033 }
  0xce   : > { %6068 = vset.pattern.permute.xlu1 %v6363_v35  ;;  %v6832_v47 = vpop.permute.xlu0 %1051  ;;  %vm1064_vm3 = vcmp.eq.s32.totalorder %v1034_v45, %v6733_v55 }
  0xcf   : > { %1575 = vperm.xlu1 %6068, %v6821_v29   ;;  %5507 = vmatpush3.bf16.msra.mxu0 %v6160_v11  ;;  %v4877_v57 = vsel %vm1064_vm3, 1.0, %v8401_v58  ;;  %vm1070_vm14 = vcmp.eq.s32.totalorder %v6832_v47, %v6733_v55 }
  0xd0   : > { %5508 = vmatprep.subr.bf16.mxu0 %v6161_v31  ;;  %2186 = vperm.xlu0 %6090, %v6570_v21   ;;  %v4883_v25 = vsel %vm1070_vm14, 1.0, %v8401_v58 }
  0xd1   : > { %v1037_v56 = vpop.permute.xlu1 %1036  ;;  %5493 = vmatmul.mubr.bf16.gmra.mrb[20].mxu0 %v1115_v49  ;;  %v6166_v49 = vld [vmem:[%s8382_s3 + $0x78] sm:$0xff]  }
  0xd2   : > { %vm1065_vm4 = vcmp.eq.s32.totalorder %v1037_v56, %v6733_v55 }
  0xd3   : > { %v4878_v59 = vsel %vm1065_vm4, 1.0, %v8401_v58  ;;  %6069 = vset.pattern.permute.xlu1 %v6364_v50  ;;  %v6846_v60 = vpop.permute.xlu0 %1533  ;;  %5509 = vmatpush3.bf16.msra.mxu0 %v6161_v31  ;;  %v6887_v31 = vadd.s32 4294967040, %v6570_v21 }
  0xd4   : > { %v1108_v62 = vpack.c.bf16 %v4878_v59, %v4877_v57  ;;  %1679 = vperm.xlu1 %6069, %v6821_v29   ;;  %5510 = vmatprep.subr.bf16.mxu0 %v6162_v48  ;;  %vm1578_vm2 = vcmp.eq.s32.totalorder %v6846_v60, %v6733_v55 }
  0xd5   : > { %2198 = vperm.xlu0 %6090, %v6589_v26   ;;  %v6164_v26 = vld [vmem:[%s8382_s3 + $0x68] sm:$0xff]  }
  0xd6   : > { %v939_v0 = vpop.permute.xlu1 %938  ;;  %v1116_v1 = vadd.bf16 %v1108_v62, %v1004_v61 }
  0xd7   : > { %v6856_v4 = vpop.permute.xlu0 %1536  ;;  %5511 = vmatpush3.bf16.msra.mxu0 %v6162_v48  ;;  %vm963_vm7 = vcmp.eq.s32.totalorder %v939_v0, %v6733_v55 }
  0xd8   : > { %6070 = vset.pattern.permute.xlu1 %v6363_v35  ;;  %5496 = vmatprep.mubr.bf16.mxu0 %v1116_v1  ;;  %v4864_v10 = vsel %vm963_vm7, 1.0, %v8401_v58  ;;  %vm1579_vm6 = vcmp.eq.s32.totalorder %v6856_v4, %v6733_v55 }
  0xd9   : > { %1282 = vperm.xlu1 %6070, %v6511_v3   ;;  %5512 = vmatprep.subr.bf16.mxu0 %v6163_v63  ;;  %v1005_v15 = vpack.c.bf16 %v4864_v10, %v4863_v20 }
  0xda   : > { %2932 = vperm.xlu0 %6090, %v6854_v2  }
  0xdb   : > { %v1043_v11 = vpop.permute.xlu1 %1042  ;;  %v6874_v12 = vpop.permute.xlu0 %1545  ;;  %5513 = vmatpush3.bf16.msra.mxu0 %v6163_v63 }
  0xdc   : > { %vm1067_vm8 = vcmp.eq.s32.totalorder %v1043_v11, %v6733_v55  ;;  %5514 = vmatprep.subr.bf16.mxu0 %v6164_v26 }
  0xdd   : > { %v4880_v13 = vsel %vm1067_vm8, 1.0, %v8401_v58  ;;  %6071 = vset.pattern.permute.xlu1 %v6364_v50 }
  0xde   : > { %v1109_v19 = vpack.c.bf16 %v4880_v13, %v4879_v7  ;;  %1386 = vperm.xlu1 %6071, %v6511_v3   ;;  %2944 = vperm.xlu0 %6090, %v6869_v8   ;;  %v6899_v3 = vld [vmem:[%s8382_s3] sm:$0xff]  }
  0xdf   : > { %v6884_v23 = vpop.permute.xlu0 %1548  ;;  %5515 = vmatpush3.bf16.msra.mxu0 %v6164_v26 }
  0xe0   : > { %v942_v44 = vpop.permute.xlu1 %941  ;;  %v1117_v45 = vadd.bf16 %v1109_v19, %v1005_v15  ;;  %5516 = vmatprep.subr.bf16.mxu0 %v6165_v14  ;;  %vm1583_vm14 = vcmp.eq.s32.totalorder %v6884_v23, %v6733_v55 }
  0xe1   : > { %vm964_vm10 = vcmp.eq.s32.totalorder %v942_v44, %v6733_v55  ;;  %v4947_v23 = vsel %vm1583_vm14, 1.0, %v8401_v58 }
  0xe2   : > { %1389 = vperm.xlu1 %6071, %v6518_v6   ;;  %5497 = vmatmul.mubr.bf16.gmra.mrb[24].mxu0 %v1117_v45  ;;  %v4865_v24 = vsel %vm964_vm10, 1.0, %v8401_v58  ;;  %vm1582_vm10 = vcmp.eq.s32.totalorder %v6874_v12, %v6733_v55 }
  0xe3   : > { %v6893_v48 = vpop.permute.xlu0 %1557  ;;  %5517 = vmatpush3.bf16.msra.mxu0 %v6165_v14  ;;  %2956 = vperm.xlu0 %6090, %v6887_v31   ;;  %v1006_v62 = vpack.c.bf16 %v4866_v53, %v4865_v24  ;;  %v4946_v12 = vsel %vm1582_vm10, 1.0, %v8401_v58 }
  0xe4   : > { %5518 = vmatprep.subr.bf16.mxu0 %v6166_v49 }
  0xe5   : > { %v1046_v21 = vpop.permute.xlu1 %1045 }
  0xe6   : > { %6072 = vset.pattern.permute.xlu1 %v6363_v35  ;;  %vm1068_vm11 = vcmp.eq.s32.totalorder %v1046_v21, %v6733_v55 }
  0xe7   : > { %1291 = vperm.xlu1 %6072, %v6530_v9   ;;  %v6906_v6 = vpop.permute.xlu0 %1560  ;;  %5519 = vmatpush3.bf16.msra.mxu0 %v6166_v49  ;;  %v4881_v57 = vsel %vm1068_vm11, 1.0, %v8401_v58 }
  0xe8   : > { %6131 = vset.pattern.permute.xlu0 %v8397_v17  ;;  %5536 = vmatprep.subr.bf16.mxu0 %v6899_v3 }
  0xe9   : > { %v1049_v56 = vpop.permute.xlu1 %1048  ;;  %2287 = vperm.xlu0 %6131, %v6622_v32  }
  0xea   : > { %vm1069_vm12 = vcmp.eq.s32.totalorder %v1049_v56, %v6733_v55 }
  0xeb   : > { %v4882_v59 = vsel %vm1069_vm12, 1.0, %v8401_v58  ;;  %6073 = vset.pattern.permute.xlu1 %v6364_v50  ;;  %v6918_v61 = vpop.permute.xlu0 %1569 }
  0xec   : > { %v1110_v63 = vpack.c.bf16 %v4882_v59, %v4881_v57  ;;  %1395 = vperm.xlu1 %6073, %v6530_v9   ;;  %v6935_v9 = vld [vmem:[%s8385_s6] ss:$0 sm:$0xff] }
  0xed   : > { %2290 = vperm.xlu0 %6131, %v6625_v33   ;;  %v4867_v33 = vsel %vm966_vm13, 1.0, %v8401_v58 }
  0xee   : > { %v951_v0 = vpop.permute.xlu1 %950  ;;  %v1118_v1 = vadd.bf16 %v1110_v63, %v1006_v62 }
  0xef   : > { %v6922_v26 = vpop.permute.xlu0 %1572  ;;  %vm967_vm15 = vcmp.eq.s32.totalorder %v951_v0, %v6733_v55  ;;  %v6955_v0 = vld [vmem:[%s6503_s22 + $0x28] sm:$0xff] }
  0xf0   : > { %6074 = vset.pattern.permute.xlu1 %v6363_v35  ;;  %5500 = vmatprep.mubr.bf16.mxu0 %v1118_v1  ;;  %v4868_v47 = vsel %vm967_vm15, 1.0, %v8401_v58 }
  0xf1   : > { %1294 = vperm.xlu1 %6074, %v6553_v16   ;;  %2299 = vperm.xlu0 %6131, %v6638_v36   ;;  %v1007_v15 = vpack.c.bf16 %v4868_v47, %v4867_v33 }
  0xf3   : > { %v1055_v20 = vpop.permute.xlu1 %1054  ;;  %v6940_v7 = vpop.permute.xlu0 %1285 }
  0xf4   : > { %vm1071_vm0 = vcmp.eq.s32.totalorder %v1055_v20, %v6733_v55  ;;  %v5434_v10 = vpop.f32.mrb[0].mxu0 }
  0xf5   : > { %v4884_v11 = vsel %vm1071_vm0, 1.0, %v8401_v58  ;;  %v631_v14 = vadd.f32 %v5434_v10, %v6935_v9  ;;  %6075 = vset.pattern.permute.xlu1 %v6364_v50  ;;  %v622_v13 = vpop.f32.mrb[1].mxu0  ;;  %2302 = vperm.xlu0 %6131, %v6644_v37  }
  0xf6   : > { %v1111_v19 = vpack.c.bf16 %v4884_v11, %v4883_v25  ;;  %v623_v44 = vadd.f32 %v6935_v9, %v622_v13  ;;  %1398 = vperm.xlu1 %6075, %v6553_v16   ;;  %v5435_v45 = vpop.f32.mrb[2].mxu0 }
  0xf7   : > { %v687_v49 = vmax.f32 %v631_v14, 0.0  ;;  %v634_v21 = vadd.f32 %v5435_v45, %v6935_v9  ;;  %v625_v53 = vpop.f32.mrb[3].mxu0  ;;  %v6950_v24 = vpop.permute.xlu0 %1288  ;;  %v4942_v45 = vsel %vm1578_vm2, 1.0, %v8401_v58 }
  0xf8   : > { %v685_v56 = vmax.f32 %v623_v44, 0.0  ;;  %v626_v57 = vadd.f32 %v6935_v9, %v625_v53  ;;  %v1531_v59 = vpop.permute.xlu1 %1530  ;;  %v1119_v62 = vadd.bf16 %v1111_v19, %v1007_v15 }
  0xf9   : > { %v688_v37 = vmax.f32 %v634_v21, 0.0  ;;  %2311 = vperm.xlu0 %6131, %v6652_v39   ;;  %vm1577_vm3 = vcmp.eq.s32.totalorder %v1531_v59, %v6733_v55 }
  0xfa   : > { %v686_v63 = vmax.f32 %v626_v57, 0.0  ;;  %1401 = vperm.xlu1 %6075, %v6955_v0   ;;  %5501 = vmatmul.mubr.bf16.gmra.mrb[28].mxu0 %v1119_v62 }
  0xfb   : > { %v702_v16 = vpack.c.bf16 %v688_v37, %v687_v49  ;;  %v6958_v1 = vpop.permute.xlu0 %1297  ;;  %v5438_v33 = vpop.f32.mrb[4].mxu0  ;;  %v4941_v49 = vsel %vm1577_vm3, 1.0, %v8401_v58  ;;  %vm1586_vm3 = vcmp.eq.s32.totalorder %v6893_v48, %v6733_v55 }
  0xfc   : > { %v701_v25 = vpack.c.bf16 %v686_v63, %v685_v56  ;;  %v647_v47 = vadd.f32 %v5438_v33, %v6935_v9  ;;  %v638_v10 = vpop.f32.mrb[5].mxu0  ;;  %v1625_v63 = vpack.c.bf16 %v4942_v45, %v4941_v49  ;;  %v6997_v49 = vld [vmem:[%s6503_s22 + $0x8] sm:$0xff] }
  0xfd   : > { %v1635_v20 = vpop.permute.xlu1 %1634  ;;  %2314 = vperm.xlu0 %6131, %v6657_v40   ;;  %v639_v11 = vadd.f32 %v6935_v9, %v638_v10  ;;  %v5439_v14 = vpop.f32.mrb[6].mxu0 }
  0xfe   : > { %6076 = vset.pattern.permute.xlu1 %v6363_v35  ;;  %5456 = vmatprep.mubr.msk.bf16.mxu1 %vm748_vm1, %v701_v25  ;;  %v691_v13 = vmax.f32 %v647_v47, 0.0  ;;  %v650_v15 = vadd.f32 %v5439_v14, %v6935_v9  ;;  %v641_v19 = vpop.f32.mrb[7].mxu0  ;;  %vm1681_vm4 = vcmp.eq.s32.totalorder %v1635_v20, %v6733_v55 }
  0xff   : > { %1303 = vperm.xlu1 %6076, %v6594_v27   ;;  %5457 = vmatmul.mubr.msk.bf16.vlgmr.msra.gmra.mrb[0].mxu1 %vm748_vm1, %v702_v16  ;;  %v6971_v40 = vpop.permute.xlu0 %1300  ;;  %v689_v60 = vmax.f32 %v639_v11, 0.0  ;;  %v642_v44 = vadd.f32 %v6935_v9, %v641_v19  ;;  %v4957_v57 = vsel %vm1681_vm4, 1.0, %v8401_v58 }
 0x100   : > { %v692_v21 = vmax.f32 %v650_v15, 0.0 }
 0x101   : > { %v1638_v53 = vpop.permute.xlu1 %1637  ;;  %2323 = vperm.xlu0 %6131, %v6663_v41   ;;  %v690_v56 = vmax.f32 %v642_v44, 0.0 }
 0x102   : > { %vm1682_vm5 = vcmp.eq.s32.totalorder %v1638_v53, %v6733_v55  ;;  %v704_v59 = vpack.c.bf16 %v692_v21, %v691_v13 }
 0x103   : > { %v4958_v62 = vsel %vm1682_vm5, 1.0, %v8401_v58  ;;  %6077 = vset.pattern.permute.xlu1 %v6364_v50  ;;  %v6982_v37 = vpop.permute.xlu0 %1309  ;;  %v703_v16 = vpack.c.bf16 %v690_v56, %v689_v60  ;;  %v5442_v25 = vpop.f32.mrb[8].mxu0 }
 0x104   : > { %v1729_v33 = vpack.c.bf16 %v4958_v62, %v4957_v57  ;;  %1407 = vperm.xlu1 %6077, %v6594_v27   ;;  %v663_v47 = vadd.f32 %v5442_v25, %v6935_v9  ;;  %v654_v20 = vpop.f32.mrb[9].mxu0 }
 0x105   : > { %2326 = vperm.xlu0 %6131, %v6671_v43   ;;  %v655_v10 = vadd.f32 %v6935_v9, %v654_v20  ;;  %v5443_v14 = vpop.f32.mrb[10].mxu0  ;;  %5460 = vmatprep.mubr.msk.bf16.mxu1 %vm748_vm1, %v703_v16 }
 0x106   : > { %v1540_v11 = vpop.permute.xlu1 %1539  ;;  %v1737_v13 = vadd.bf16 %v1729_v33, %v1625_v63  ;;  %v695_v15 = vmax.f32 %v663_v47, 0.0  ;;  %v666_v19 = vadd.f32 %v5443_v14, %v6935_v9  ;;  %v657_v60 = vpop.f32.mrb[11].mxu0  ;;  %v6283_v33 = vld [vmem:[%s6503_s22 + $0x10] sm:$0xff] }
 0x107   : > { %5461 = vmatmul.mubr.msk.bf16.gmra.mrb[4].mxu1 %vm748_vm1, %v704_v59  ;;  %v6991_v27 = vpop.permute.xlu0 %1312  ;;  %v693_v44 = vmax.f32 %v655_v10, 0.0  ;;  %v658_v45 = vadd.f32 %v6935_v9, %v657_v60  ;;  %vm1580_vm7 = vcmp.eq.s32.totalorder %v1540_v11, %v6733_v55  ;;  %v6285_v11 = vld [vmem:[%s6503_s22 + $0x30] sm:$0xff] }
 0x108   : > { %6078 = vset.pattern.permute.xlu1 %v6363_v35  ;;  %5520 = vmatprep.mubr.bf16.mxu0 %v1737_v13  ;;  %v696_v43 = vmax.f32 %v666_v19, 0.0 }
 0x109   : > { %1306 = vperm.xlu1 %6078, %v6610_v30   ;;  %2055 = vperm.xlu0 %6131, %v6997_v49   ;;  %v694_v21 = vmax.f32 %v658_v45, 0.0  ;;  %v7018_v45 = vld [vmem:[%s6503_s22 + $0x48] sm:$0xff] }
 0x10a   : > { %v706_v53 = vpack.c.bf16 %v696_v43, %v695_v15 }
 0x10b   : > { %v1644_v56 = vpop.permute.xlu1 %1643  ;;  %v7000_v57 = vpop.permute.xlu0 %1321  ;;  %v705_v59 = vpack.c.bf16 %v694_v21, %v693_v44  ;;  %v4944_v21 = vsel %vm1580_vm7, 1.0, %v8401_v58  ;;  %vm1587_vm7 = vcmp.eq.s32.totalorder %v6906_v6, %v6733_v55 }
 0x10c   : > { %v5446_v62 = vpop.f32.mrb[12].mxu0  ;;  %vm1684_vm8 = vcmp.eq.s32.totalorder %v1644_v56, %v6733_v55 }
 0x10d   : > { %v679_v63 = vadd.f32 %v5446_v62, %v6935_v9  ;;  %6079 = vset.pattern.permute.xlu1 %v6364_v50  ;;  %v670_v16 = vpop.f32.mrb[13].mxu0  ;;  %2058 = vperm.xlu0 %6131, %v6283_v33   ;;  %v4960_v62 = vsel %vm1684_vm8, 1.0, %v8401_v58 }
 0x10e   : > { %v671_v25 = vadd.f32 %v6935_v9, %v670_v16  ;;  %1410 = vperm.xlu1 %6079, %v6610_v30   ;;  %v5447_v47 = vpop.f32.mrb[14].mxu0  ;;  %5464 = vmatprep.mubr.msk.bf16.mxu1 %vm748_vm1, %v705_v59 }
 0x10f   : > { %v699_v20 = vmax.f32 %v679_v63, 0.0  ;;  %v682_v10 = vadd.f32 %v5447_v47, %v6935_v9  ;;  %v673_v14 = vpop.f32.mrb[15].mxu0  ;;  %5465 = vmatmul.mubr.msk.bf16.gmra.mrb[8].mxu1 %vm748_vm1, %v706_v53  ;;  %v7010_v13 = vpop.permute.xlu0 %1324 }
 0x110   : > { %v697_v15 = vmax.f32 %v671_v25, 0.0  ;;  %v674_v19 = vadd.f32 %v6935_v9, %v673_v14  ;;  %v1543_v60 = vpop.permute.xlu1 %1542  ;;  %v4943_v9 = vsel %vm1579_vm6, 1.0, %v8401_v58 }
 0x111   : > { %v700_v30 = vmax.f32 %v682_v10, 0.0  ;;  %2067 = vperm.xlu0 %6131, %v6955_v0   ;;  %vm1581_vm11 = vcmp.eq.s32.totalorder %v1543_v60, %v6733_v55  ;;  %v1626_v63 = vpack.c.bf16 %v4944_v21, %v4943_v9  ;;  %v6169_v9 = vld [vmem:[%s8382_s3 + $0x10] sm:$0xff]  }
 0x112   : > { %v698_v44 = vmax.f32 %v674_v19, 0.0  ;;  %1413 = vperm.xlu1 %6079, %v7018_v45   ;;  %v4945_v33 = vsel %vm1581_vm11, 1.0, %v8401_v58  ;;  %vm1590_vm11 = vcmp.eq.s32.totalorder %v6918_v61, %v6733_v55 }
 0x113   : > { %v708_v43 = vpack.c.bf16 %v700_v30, %v699_v20  ;;  %v6168_v20 = vld [vmem:[%s8382_s3 + $0x8] sm:$0xff]   ;;  %v6286_v30 = vld [vmem:[%s6503_s22 + $0x50] sm:$0xff] }
 0x114   : > { %v707_v53 = vpack.c.bf16 %v698_v44, %v697_v15  ;;  %v1641_v59 = vpop.permute.xlu0 %1640  ;;  %v1627_v15 = vpack.c.bf16 %v4946_v12, %v4945_v33  ;;  %v6172_v33 = vld [vmem:[%s8382_s3 + $0x28] sm:$0xff]  }
 0x115   : > { %vm1683_vm9 = vcmp.eq.s32.totalorder %v1641_v59, %v6733_v55  ;;  %v1647_v4 = vpop.permute.xlu1 %1646  ;;  %2070 = vperm.xlu0 %6131, %v6285_v11  }
 0x116   : > { %v4959_v56 = vsel %vm1683_vm9, 1.0, %v8401_v58  ;;  %6080 = vset.pattern.permute.xlu1 %v6363_v35  ;;  %5468 = vmatprep.mubr.msk.bf16.mxu1 %vm748_vm1, %v707_v53  ;;  %vm1685_vm12 = vcmp.eq.s32.totalorder %v1647_v4, %v6733_v55 }
 0x117   : > { %v1730_v16 = vpack.c.bf16 %v4960_v62, %v4959_v56  ;;  %1315 = vperm.xlu1 %6080, %v6630_v34   ;;  %5469 = vmatmul.mubr.msk.bf16.gmra.mrb[12].mxu1 %vm748_vm1, %v708_v43  ;;  %v4961_v10 = vsel %vm1685_vm12, 1.0, %v8401_v58  ;;  %v6171_v56 = vld [vmem:[%s8382_s3 + $0x20] sm:$0xff]  }
 0x118   : > { %v1653_v60 = vpop.permute.xlu0 %1652 }
 0x119   : > { %v1738_v25 = vadd.bf16 %v1730_v16, %v1626_v63  ;;  %v1650_v47 = vpop.permute.xlu1 %1649  ;;  %2079 = vperm.xlu0 %6131, %v7018_v45   ;;  %vm1687_vm0 = vcmp.eq.s32.totalorder %v1653_v60, %v6733_v55  ;;  %v7076_v63 = vld [vmem:[%s6503_s22 + $0x70] sm:$0xff] }
 0x11a   : > { %vm1686_vm13 = vcmp.eq.s32.totalorder %v1650_v47, %v6733_v55  ;;  %v4963_v53 = vsel %vm1687_vm0, 1.0, %v8401_v58  ;;  %v4950_v47 = vsel %vm1586_vm3, 1.0, %v8401_v58 }
 0x11b   : > { %v4962_v14 = vsel %vm1686_vm13, 1.0, %v8401_v58  ;;  %6081 = vset.pattern.permute.xlu1 %v6364_v50  ;;  %5521 = vmatmul.mubr.bf16.vlgmr.msra.gmra.mrb[32].mxu0 %v1738_v25  ;;  %v6173_v25 = vld [vmem:[%s8382_s3 + $0x30] sm:$0xff]  }
 0x11c   : > { %v1731_v19 = vpack.c.bf16 %v4962_v14, %v4961_v10  ;;  %1419 = vperm.xlu1 %6081, %v6630_v34   ;;  %5537 = vmatpush3.bf16.msra.mxu0 %v6899_v3  ;;  %v6170_v34 = vld [vmem:[%s8382_s3 + $0x18] sm:$0xff]   ;;  %v7062_v3 = vld [vmem:[%s6503_s22 + $0x68] sm:$0xff]  ;;  %v1665_v60 = vpop.permute.xlu0 %1664 }
 0x11d   : > { %5538 = vmatprep.subr.bf16.mxu0 %v6168_v20  ;;  %2082 = vperm.xlu0 %6131, %v6286_v30   ;;  %vm1691_vm9 = vcmp.eq.s32.totalorder %v1665_v60, %v6733_v55 }
 0x11e   : > { %v1552_v44 = vpop.permute.xlu1 %1551  ;;  %v1739_v43 = vadd.bf16 %v1731_v19, %v1627_v15 }
 0x11f   : > { %vm1584_vm15 = vcmp.eq.s32.totalorder %v1552_v44, %v6733_v55 }
 0x120   : > { %6082 = vset.pattern.permute.xlu1 %v6363_v35  ;;  %5524 = vmatprep.mubr.bf16.mxu0 %v1739_v43  ;;  %v4948_v21 = vsel %vm1584_vm15, 1.0, %v8401_v58  ;;  %v7105_v43 = vld [vmem:[%s8383_s4 + $0x40] sm:$0xff]   ;;  %vm1591_vm15 = vcmp.eq.s32.totalorder %v6922_v26, %v6733_v55 }
 0x121   : > { %1318 = vperm.xlu1 %6082, %v6647_v38   ;;  %5539 = vmatpush3.bf16.msra.mxu0 %v6168_v20  ;;  %v1628_v11 = vpack.c.bf16 %v4948_v21, %v4947_v23  ;;  %v6183_v26 = vld [vmem:[%s8388_s9] sm:$0xff]  }
 0x122   : > { %5540 = vmatprep.subr.bf16.mxu0 %v6169_v9  ;;  %2091 = vperm.xlu0 %6131, %v7062_v3  }
 0x123   : > { %v1656_v59 = vpop.permute.xlu1 %1655  ;;  %5664 = vmatprep.subr.bf16.mxu1 %v6183_v26 }
 0x124   : > { %vm1688_vm2 = vcmp.eq.s32.totalorder %v1656_v59, %v6733_v55  ;;  %5665 = vmatpush3.bf16.msra.mxu1 %v6183_v26 }
 0x125   : > { %v4964_v4 = vsel %vm1688_vm2, 1.0, %v8401_v58  ;;  %6083 = vset.pattern.permute.xlu1 %v6364_v50  ;;  %5541 = vmatpush3.bf16.msra.mxu0 %v6169_v9  ;;  %v4967_v9 = vsel %vm1691_vm9, 1.0, %v8401_v58 }
 0x126   : > { %v1732_v62 = vpack.c.bf16 %v4964_v4, %v4963_v53  ;;  %1422 = vperm.xlu1 %6083, %v6647_v38   ;;  %5542 = vmatprep.subr.bf16.mxu0 %v6170_v34 }
 0x127   : > { %2094 = vperm.xlu0 %6131, %v7076_v63  }
 0x128   : > { %v1555_v16 = vpop.permute.xlu1 %1554  ;;  %v1740_v12 = vadd.bf16 %v1732_v62, %v1628_v11  ;;  %v4954_v11 = vsel %vm1590_vm11, 1.0, %v8401_v58 }
 0x129   : > { %5543 = vmatpush3.bf16.msra.mxu0 %v6170_v34  ;;  %vm1585_vm4 = vcmp.eq.s32.totalorder %v1555_v16, %v6733_v55 }
 0x12a   : > { %1425 = vperm.xlu1 %6083, %v7062_v3   ;;  %5525 = vmatmul.mubr.bf16.gmra.mrb[36].mxu0 %v1740_v12  ;;  %v4949_v20 = vsel %vm1585_vm4, 1.0, %v8401_v58  ;;  %v1677_v12 = vpop.permute.xlu0 %1676  ;;  %vm1330_vm4 = vcmp.eq.s32.totalorder %v6940_v7, %v6733_v55 }
 0x12b   : > { %5544 = vmatprep.subr.bf16.mxu0 %v6171_v56  ;;  %v1629_v15 = vpack.c.bf16 %v4950_v47, %v4949_v20  ;;  %vm1695_vm2 = vcmp.eq.s32.totalorder %v1677_v12, %v6733_v55 }
 0x12d   : > { %v1659_v38 = vpop.permute.xlu1 %1658  ;;  %5545 = vmatpush3.bf16.msra.mxu0 %v6171_v56 }
 0x12e   : > { %6085 = vset.pattern.permute.xlu1 %v6363_v35  ;;  %5546 = vmatprep.subr.bf16.mxu0 %v6172_v33  ;;  %vm1689_vm5 = vcmp.eq.s32.totalorder %v1659_v38, %v6733_v55  ;;  %v6174_v35 = vld [vmem:[%s8382_s3 + $0x38] sm:$0xff]  }
 0x12f   : > { %1327 = vperm.xlu1 %6085, %v6668_v42   ;;  %v4965_v48 = vsel %vm1689_vm5, 1.0, %v8401_v58 }
 0x131   : > { %v1662_v10 = vpop.permute.xlu1 %1661  ;;  %5547 = vmatpush3.bf16.msra.mxu0 %v6172_v33 }
 0x132   : > { %vm1690_vm6 = vcmp.eq.s32.totalorder %v1662_v10, %v6733_v55  ;;  %5548 = vmatprep.subr.bf16.mxu0 %v6173_v25 }
 0x133   : > { %v4966_v14 = vsel %vm1690_vm6, 1.0, %v8401_v58  ;;  %6086 = vset.pattern.permute.xlu1 %v6364_v50 }
 0x134   : > { %v1733_v19 = vpack.c.bf16 %v4966_v14, %v4965_v48  ;;  %1431 = vperm.xlu1 %6086, %v6668_v42   ;;  %v4951_v42 = vsel %vm1587_vm7, 1.0, %v8401_v58  ;;  %v7152_v14 = vadd.s32 4294967040, %v6997_v49 }
 0x135   : > { %5549 = vmatpush3.bf16.msra.mxu0 %v6173_v25  ;;  %v4955_v25 = vsel %vm1591_vm15, 1.0, %v8401_v58 }
 0x136   : > { %v1564_v30 = vpop.permute.xlu1 %1563  ;;  %v1741_v44 = vadd.bf16 %v1733_v19, %v1629_v15  ;;  %5550 = vmatprep.subr.bf16.mxu0 %v6174_v35  ;;  %v6184_v15 = vld [vmem:[%s8388_s9 + $0x8] sm:$0xff]   ;;  %2825 = vperm.xlu0 %6131, %v7152_v14  }
 0x137   : > { %vm1588_vm8 = vcmp.eq.s32.totalorder %v1564_v30, %v6733_v55  ;;  %5666 = vmatprep.subr.bf16.mxu1 %v6184_v15  ;;  %v7165_v30 = vadd.s32 4294967040, %v6955_v0 }
 0x138   : > { %6087 = vset.pattern.permute.xlu1 %v8397_v17  ;;  %5528 = vmatprep.mubr.bf16.mxu0 %v1741_v44  ;;  %v4952_v50 = vsel %vm1588_vm8, 1.0, %v8401_v58  ;;  %vm1331_vm8 = vcmp.eq.s32.totalorder %v6950_v24, %v6733_v55 }
 0x139   : > { %2284 = vperm.xlu1 %6087, %v6686_v46   ;;  %5551 = vmatpush3.bf16.msra.mxu0 %v6174_v35  ;;  %v1630_v23 = vpack.c.bf16 %v4952_v50, %v4951_v42  ;;  %v1393_v50 = vpop.permute.xlu0 %1392 }
 0x13a   : > { %5568 = vmatprep.subr.bf16.mxu0 %v7105_v43  ;;  %5667 = vmatpush3.bf16.msra.mxu1 %v6184_v15 }
 0x13b   : > { %v1668_v34 = vpop.permute.xlu1 %1667  ;;  %2828 = vperm.xlu0 %6131, %v6854_v2  }
 0x13c   : > { %vm1692_vm10 = vcmp.eq.s32.totalorder %v1668_v34, %v6733_v55 }
 0x13d   : > { %v4968_v6 = vsel %vm1692_vm10, 1.0, %v8401_v58  ;;  %6088 = vset.pattern.permute.xlu1 %v8399_v22  ;;  %vm1435_vm10 = vcmp.eq.s32.totalorder %v1393_v50, %v6733_v55 }
 0x13e   : > { %v1734_v21 = vpack.c.bf16 %v4968_v6, %v4967_v9  ;;  %2388 = vperm.xlu1 %6088, %v6686_v46  }
 0x13f   : > { %2837 = vperm.xlu0 %6131, %v7165_v30  }
 0x140   : > { %v1567_v53 = vpop.permute.xlu1 %1566  ;;  %v1742_v59 = vadd.bf16 %v1734_v21, %v1630_v23  ;;  %v7179_v21 = vadd.s32 4294967040, %v7018_v45 }
 0x141   : > { %vm1589_vm12 = vcmp.eq.s32.totalorder %v1567_v53, %v6733_v55  ;;  %v7181_v53 = vpop.permute.xlu0 %1404 }
 0x142   : > { %2391 = vperm.xlu1 %6088, %v6622_v32   ;;  %5529 = vmatmul.mubr.bf16.gmra.mrb[40].mxu0 %v1742_v59  ;;  %v4953_v46 = vsel %vm1589_vm12, 1.0, %v8401_v58  ;;  %v4911_v59 = vsel %vm1435_vm10, 1.0, %v8401_v58  ;;  %vm1334_vm12 = vcmp.eq.s32.totalorder %v6958_v1, %v6733_v55 }
 0x143   : > { %v1631_v61 = vpack.c.bf16 %v4954_v11, %v4953_v46  ;;  %2840 = vperm.xlu0 %6131, %v6869_v8  }
 0x145   : > { %v1671_v4 = vpop.permute.xlu1 %1670  ;;  %v7196_v11 = vpop.permute.xlu0 %1416 }
 0x146   : > { %6089 = vset.pattern.permute.xlu1 %v8397_v17  ;;  %vm1693_vm13 = vcmp.eq.s32.totalorder %v1671_v4, %v6733_v55  ;;  %vm1443_vm10 = vcmp.eq.s32.totalorder %v7196_v11, %v6733_v55 }
 0x147   : > { %2293 = vperm.xlu1 %6089, %v6709_v51   ;;  %v4969_v32 = vsel %vm1693_vm13, 1.0, %v8401_v58  ;;  %2849 = vperm.xlu0 %6131, %v7179_v21  }
 0x149   : > { %v1674_v62 = vpop.permute.xlu1 %1673  ;;  %v7209_v12 = vpop.permute.xlu0 %1428 }
 0x14a   : > { %vm1694_vm14 = vcmp.eq.s32.totalorder %v1674_v62, %v6733_v55 }
 0x14b   : > { %v4970_v56 = vsel %vm1694_vm14, 1.0, %v8401_v58  ;;  %6091 = vset.pattern.permute.xlu1 %v8399_v22  ;;  %2852 = vperm.xlu0 %6131, %v6887_v31   ;;  %v5083_v31 = vadd.s32 4294967040, %v7076_v63  ;;  %v4898_v63 = vsel %vm1334_vm12, 1.0, %v8401_v58 }
 0x14c   : > { %v1735_v16 = vpack.c.bf16 %v4970_v56, %v4969_v32  ;;  %2397 = vperm.xlu1 %6091, %v6709_v51   ;;  %v4971_v51 = vsel %vm1695_vm2, 1.0, %v8401_v58  ;;  %v7201_v32 = vadd.s32 4294967040, %v7062_v3 }
 0x14d   : > { %v7232_v1 = vpop.permute.xlu0 %2394 }
 0x14e   : > { %v1576_v33 = vpop.permute.xlu1 %1575  ;;  %v1743_v38 = vadd.bf16 %v1735_v16, %v1631_v61  ;;  %8451 = vst [vmem:[#allocation8_spill] sm:$0xff] %v7201_v32  ;;  %v6176_v16 = vld [vmem:[%s8383_s4 + $0x48] sm:$0xff]  }
 0x14f   : > { %vm1592_vm0 = vcmp.eq.s32.totalorder %v1576_v33, %v6733_v55  ;;  %2861 = vperm.xlu0 %6131, %v7201_v32   ;;  %v6177_v33 = vld [vmem:[%s8383_s4 + $0x50] sm:$0xff]  }
 0x150   : > { %6092 = vset.pattern.permute.xlu1 %v8397_v17  ;;  %5532 = vmatprep.mubr.bf16.mxu0 %v1743_v38  ;;  %v4956_v47 = vsel %vm1592_vm0, 1.0, %v8401_v58  ;;  %vm1335_vm0 = vcmp.eq.s32.totalorder %v6971_v40, %v6733_v55 }
 0x151   : > { %2296 = vperm.xlu1 %6092, %v6719_v52   ;;  %v1632_v35 = vpack.c.bf16 %v4956_v47, %v4955_v25  ;;  %v7243_v15 = vpop.permute.xlu0 %2406 }
 0x153   : > { %v1680_v20 = vpop.permute.xlu1 %1679  ;;  %2864 = vperm.xlu0 %6131, %v5083_v31  }
 0x154   : > { %vm1696_vm3 = vcmp.eq.s32.totalorder %v1680_v20, %v6733_v55 }
 0x155   : > { %v4972_v10 = vsel %vm1696_vm3, 1.0, %v8401_v58  ;;  %6093 = vset.pattern.permute.xlu1 %v8399_v22  ;;  %vm1439_vm3 = vcmp.eq.s32.totalorder %v7181_v53, %v6733_v55 }
 0x156   : > { %v1736_v48 = vpack.c.bf16 %v4972_v10, %v4971_v51  ;;  %2400 = vperm.xlu1 %6093, %v6719_v52   ;;  %v6179_v10 = vld [vmem:[%s8383_s4 + $0x60] sm:$0xff]   ;;  %v4915_v40 = vsel %vm1439_vm3, 1.0, %v8401_v58  ;;  %vm1447_vm3 = vcmp.eq.s32.totalorder %v7209_v12, %v6733_v55 }
 0x157   : > { %6136 = vset.pattern.permute.xlu0 %v8399_v22 }
 0x158   : > { %v1283_v19 = vpop.permute.xlu1 %1282  ;;  %v1744_v60 = vadd.bf16 %v1736_v48, %v1632_v35  ;;  %2968 = vperm.xlu0 %6136, %v5083_v31  }
 0x159   : > { %vm1329_vm5 = vcmp.eq.s32.totalorder %v1283_v19, %v6733_v55  ;;  %v4899_v19 = vsel %vm1335_vm0, 1.0, %v8401_v58 }
 0x15a   : > { %2403 = vperm.xlu1 %6093, %v6638_v36   ;;  %5533 = vmatmul.mubr.bf16.gmra.mrb[44].mxu0 %v1744_v60  ;;  %v4894_v36 = vsel %vm1330_vm4, 1.0, %v8401_v58  ;;  %v4893_v2 = vsel %vm1329_vm5, 1.0, %v8401_v58  ;;  %vm1338_vm5 = vcmp.eq.s32.totalorder %v6982_v37, %v6733_v55  ;;  %v7286_v37 = vld [vmem:[%s8383_s4] sm:$0xff]  }
 0x15b   : > { %v1377_v9 = vpack.c.bf16 %v4894_v36, %v4893_v2  ;;  %v6181_v36 = vld [vmem:[%s8383_s4 + $0x70] sm:$0xff]  }
 0x15d   : > { %v1387_v52 = vpop.permute.xlu1 %1386 }
 0x15e   : > { %6094 = vset.pattern.permute.xlu1 %v8397_v17  ;;  %vm1433_vm6 = vcmp.eq.s32.totalorder %v1387_v52, %v6733_v55 }
 0x15f   : > { %2305 = vperm.xlu1 %6094, %v6731_v54   ;;  %v4909_v7 = vsel %vm1433_vm6, 1.0, %v8401_v58 }
 0x161   : > { %v1390_v44 = vpop.permute.xlu1 %1389 }
 0x162   : > { %vm1434_vm7 = vcmp.eq.s32.totalorder %v1390_v44, %v6733_v55  ;;  %v7264_v44 = vpop.permute.xlu0 %2418 }
 0x163   : > { %v4910_v42 = vsel %vm1434_vm7, 1.0, %v8401_v58  ;;  %6095 = vset.pattern.permute.xlu1 %v8399_v22 }
 0x164   : > { %v1481_v34 = vpack.c.bf16 %v4910_v42, %v4909_v7  ;;  %2409 = vperm.xlu1 %6095, %v6731_v54   ;;  %v4895_v54 = vsel %vm1331_vm8, 1.0, %v8401_v58 }
 0x166   : > { %v1292_v6 = vpop.permute.xlu1 %1291  ;;  %v1489_v23 = vadd.bf16 %v1481_v34, %v1377_v9  ;;  %v6182_v34 = vld [vmem:[%s8383_s4 + $0x78] sm:$0xff]  }
 0x167   : > { %vm1332_vm9 = vcmp.eq.s32.totalorder %v1292_v6, %v6733_v55  ;;  %v7271_v6 = vpop.permute.xlu0 %2430 }
 0x168   : > { %6096 = vset.pattern.permute.xlu1 %v8397_v17  ;;  %5552 = vmatprep.mubr.bf16.mxu0 %v1489_v23  ;;  %v4896_v8 = vsel %vm1332_vm9, 1.0, %v8401_v58  ;;  %vm1339_vm9 = vcmp.eq.s32.totalorder %v6991_v27, %v6733_v55 }
 0x169   : > { %2308 = vperm.xlu1 %6096, %v6750_v5   ;;  %v1378_v46 = vpack.c.bf16 %v4896_v8, %v4895_v54 }
 0x16b   : > { %v1396_v4 = vpop.permute.xlu1 %1395  ;;  %v7281_v54 = vpop.permute.xlu0 %2162 }
 0x16c   : > { %vm1436_vm11 = vcmp.eq.s32.totalorder %v1396_v4, %v6733_v55 }
 0x16d   : > { %v4912_v24 = vsel %vm1436_vm11, 1.0, %v8401_v58  ;;  %6097 = vset.pattern.permute.xlu1 %v8399_v22 }
 0x16e   : > { %v1482_v62 = vpack.c.bf16 %v4912_v24, %v4911_v59  ;;  %2412 = vperm.xlu1 %6097, %v6750_v5   ;;  %v7215_v5 = vld [vmem:[%s8389_s10] sm:$0xff]  }
 0x16f   : > { %5684 = vmatprep.subr.bf16.mxu1 %v7215_v5 }
 0x170   : > { %v1490_v56 = vadd.bf16 %v1482_v62, %v1378_v46  ;;  %v1295_v61 = vpop.permute.xlu1 %1294 }
 0x171   : > { %vm1333_vm13 = vcmp.eq.s32.totalorder %v1295_v61, %v6733_v55  ;;  %v7303_v61 = vld [vmem:[%s6503_s22] sm:$0xff] }
 0x172   : > { %2415 = vperm.xlu1 %6097, %v6652_v39   ;;  %5553 = vmatmul.mubr.bf16.vlgmr.msra.gmra.mrb[32].mxu0 %v1490_v56  ;;  %v6178_v39 = vld [vmem:[%s8383_s4 + $0x58] sm:$0xff]   ;;  %v7294_v56 = vpop.permute.xlu0 %2174 }
 0x173   : > { %5569 = vmatpush3.bf16.msra.mxu0 %v7105_v43  ;;  %v4897_v43 = vsel %vm1333_vm13, 1.0, %v8401_v58  ;;  %vm1342_vm13 = vcmp.eq.s32.totalorder %v7000_v57, %v6733_v55 }
 0x174   : > { %5570 = vmatprep.subr.bf16.mxu0 %v6176_v16  ;;  %v1379_v20 = vpack.c.bf16 %v4898_v63, %v4897_v43 }
 0x175   : > { %v1399_v38 = vpop.permute.xlu1 %1398 }
 0x176   : > { %6098 = vset.pattern.permute.xlu1 %v8397_v17  ;;  %vm1437_vm14 = vcmp.eq.s32.totalorder %v1399_v38, %v6733_v55 }
 0x177   : > { %2317 = vperm.xlu1 %6098, %v6766_v18   ;;  %5571 = vmatpush3.bf16.msra.mxu0 %v6176_v16  ;;  %v4913_v47 = vsel %vm1437_vm14, 1.0, %v8401_v58  ;;  %v4919_v16 = vsel %vm1443_vm10, 1.0, %v8401_v58  ;;  %vm2437_vm10 = vcmp.eq.s32.totalorder %v7232_v1, %v6733_v55 }
 0x178   : > { %5572 = vmatprep.subr.bf16.mxu0 %v6177_v33 }
 0x179   : > { %v1402_v25 = vpop.permute.xlu1 %1401 }
 0x17a   : > { %vm1438_vm15 = vcmp.eq.s32.totalorder %v1402_v25, %v6733_v55 }
 0x17b   : > { %v4914_v51 = vsel %vm1438_vm15, 1.0, %v8401_v58  ;;  %6099 = vset.pattern.permute.xlu1 %v8399_v22  ;;  %5573 = vmatpush3.bf16.msra.mxu0 %v6177_v33 }
 0x17c   : > { %v1483_v26 = vpack.c.bf16 %v4914_v51, %v4913_v47  ;;  %2421 = vperm.xlu1 %6099, %v6766_v18   ;;  %5574 = vmatprep.subr.bf16.mxu0 %v6178_v39  ;;  %v6180_v18 = vld [vmem:[%s8383_s4 + $0x68] sm:$0xff]  }
 0x17e   : > { %v1304_v35 = vpop.permute.xlu1 %1303  ;;  %v1491_v48 = vadd.bf16 %v1483_v26, %v1379_v20 }
 0x17f   : > { %5575 = vmatpush3.bf16.msra.mxu0 %v6178_v39  ;;  %vm1336_vm2 = vcmp.eq.s32.totalorder %v1304_v35, %v6733_v55  ;;  %v7316_v39 = vpop.permute.xlu0 %2186 }
 0x180   : > { %6100 = vset.pattern.permute.xlu1 %v8397_v17  ;;  %5556 = vmatprep.mubr.bf16.mxu0 %v1491_v48  ;;  %v4900_v60 = vsel %vm1336_vm2, 1.0, %v8401_v58  ;;  %8452 = vst [vmem:[#allocation9_spill] sm:$0xff] %v7316_v39  ;;  %vm1343_vm2 = vcmp.eq.s32.totalorder %v7010_v13, %v6733_v55 }
 0x181   : > { %2320 = vperm.xlu1 %6100, %v6782_v28   ;;  %5576 = vmatprep.subr.bf16.mxu0 %v6179_v10  ;;  %v1380_v7 = vpack.c.bf16 %v4900_v60, %v4899_v19  ;;  %v7337_v19 = vld [vmem:[%s6503_s22 + $0x18] sm:$0xff]  ;;  %v4906_v60 = vsel %vm1342_vm13, 1.0, %v8401_v58 }
 0x183   : > { %v1408_v52 = vpop.permute.xlu1 %1407  ;;  %5577 = vmatpush3.bf16.msra.mxu0 %v6179_v10  ;;  %v7324_v26 = vpop.permute.xlu0 %2198 }
 0x184   : > { %vm1440_vm4 = vcmp.eq.s32.totalorder %v1408_v52, %v6733_v55  ;;  %5578 = vmatprep.subr.bf16.mxu0 %v6180_v18  ;;  %8453 = vst [vmem:[#allocation10_spill] sm:$0xff] %v7324_v26 }
 0x185   : > { %v4916_v2 = vsel %vm1440_vm4, 1.0, %v8401_v58  ;;  %6101 = vset.pattern.permute.xlu1 %v8399_v22 }
 0x186   : > { %v1484_v42 = vpack.c.bf16 %v4916_v2, %v4915_v40  ;;  %2424 = vperm.xlu1 %6101, %v6782_v28  }
 0x187   : > { %5579 = vmatpush3.bf16.msra.mxu0 %v6180_v18  ;;  %v7345_v57 = vpop.permute.xlu0 %2932 }
 0x188   : > { %v1307_v50 = vpop.permute.xlu1 %1306  ;;  %v1492_v9 = vadd.bf16 %v1484_v42, %v1380_v7  ;;  %5580 = vmatprep.subr.bf16.mxu0 %v6181_v36  ;;  %8458 = vst [vmem:[#allocation15_spill] sm:$0xff] %v7345_v57 }
 0x189   : > { %vm1337_vm6 = vcmp.eq.s32.totalorder %v1307_v50, %v6733_v55 }
 0x18a   : > { %2427 = vperm.xlu1 %6101, %v6663_v41   ;;  %5557 = vmatmul.mubr.bf16.gmra.mrb[36].mxu0 %v1492_v9  ;;  %v4902_v41 = vsel %vm1338_vm5, 1.0, %v8401_v58  ;;  %v4901_v28 = vsel %vm1337_vm6, 1.0, %v8401_v58 }
 0x18b   : > { %5581 = vmatpush3.bf16.msra.mxu0 %v6181_v36  ;;  %v1381_v4 = vpack.c.bf16 %v4902_v41, %v4901_v28  ;;  %v4907_v41 = vsel %vm1343_vm2, 1.0, %v8401_v58  ;;  %v4923_v28 = vsel %vm1447_vm3, 1.0, %v8401_v58  ;;  %vm3245_vm2 = vcmask 261120  }
 0x18c   : > { %5582 = vmatprep.subr.bf16.mxu0 %v6182_v34 }
 0x18d   : > { %v1411_v23 = vpop.permute.xlu1 %1410 }
 0x18e   : > { %6102 = vset.pattern.permute.xlu1 %v8397_v17  ;;  %vm1441_vm7 = vcmp.eq.s32.totalorder %v1411_v23, %v6733_v55  ;;  %v7361_v23 = vld [vmem:[%s6503_s22 + $0x20] sm:$0xff] }
 0x18f   : > { %2329 = vperm.xlu1 %6102, %v6821_v29   ;;  %5583 = vmatpush3.bf16.msra.mxu0 %v6182_v34  ;;  %v4917_v8 = vsel %vm1441_vm7, 1.0, %v8401_v58  ;;  %v7352_v34 = vpop.permute.xlu0 %2944 }
 0x190   : > { %5600 = vmatprep.subr.bf16.mxu0 %v7286_v37  ;;  %8459 = vst [vmem:[#allocation16_spill] sm:$0xff] %v7352_v34 }
 0x191   : > { %v1414_v53 = vpop.permute.xlu1 %1413 }
 0x192   : > { %vm1442_vm8 = vcmp.eq.s32.totalorder %v1414_v53, %v6733_v55 }
 0x193   : > { %v4918_v59 = vsel %vm1442_vm8, 1.0, %v8401_v58  ;;  %6103 = vset.pattern.permute.xlu1 %v8399_v22  ;;  %v7369_v12 = vpop.permute.xlu0 %2956 }
 0x194   : > { %v1485_v24 = vpack.c.bf16 %v4918_v59, %v4917_v8  ;;  %2433 = vperm.xlu1 %6103, %v6821_v29   ;;  %v4903_v29 = vsel %vm1339_vm9, 1.0, %v8401_v58  ;;  %8460 = vst [vmem:[#allocation17_spill] sm:$0xff] %v7369_v12 }
 0x196   : > { %v1316_v46 = vpop.permute.xlu1 %1315  ;;  %v1493_v62 = vadd.bf16 %v1485_v24, %v1381_v4 }
 0x197   : > { %vm1340_vm11 = vcmp.eq.s32.totalorder %v1316_v46, %v6733_v55 }
 0x198   : > { %6104 = vset.pattern.permute.xlu1 %v8397_v17  ;;  %5560 = vmatprep.mubr.bf16.mxu0 %v1493_v62  ;;  %v4904_v31 = vsel %vm1340_vm11, 1.0, %v8401_v58 }
 0x199   : > { %2052 = vperm.xlu1 %6104, %v7303_v61   ;;  %v1382_v63 = vpack.c.bf16 %v4904_v31, %v4903_v29 }
 0x19b   : > { %v1420_v33 = vpop.permute.xlu1 %1419 }
 0x19c   : > { %vm1444_vm12 = vcmp.eq.s32.totalorder %v1420_v33, %v6733_v55  ;;  %v7310_v27 = vpop.f32.mrb[16].mxu0  ;;  %v2288_v33 = vpop.permute.xlu0 %2287 }
 0x19d   : > { %v4920_v11 = vsel %vm1444_vm12, 1.0, %v8401_v58  ;;  %6105 = vset.pattern.permute.xlu1 %v8399_v22  ;;  %v7314_v38 = vpop.f32.mrb[17].mxu0  ;;  %vm2332_vm6 = vcmp.eq.s32.totalorder %v2288_v33, %v6733_v55 }
 0x19e   : > { %v1486_v43 = vpack.c.bf16 %v4920_v11, %v4919_v16  ;;  %2156 = vperm.xlu1 %6105, %v7303_v61   ;;  %v7319_v25 = vpop.f32.mrb[18].mxu0 }
 0x19f   : > { %v7321_v47 = vpop.f32.mrb[19].mxu0 }
 0x1a0   : > { %v1319_v51 = vpop.permute.xlu1 %1318  ;;  %v1494_v20 = vadd.bf16 %v1486_v43, %v1382_v63  ;;  %v7386_v63 = vld [vmem:[%s6503_s22 + $0x38] sm:$0xff]  ;;  %v5022_v43 = vsel %vm2332_vm6, 1.0, %v8401_v58 }
 0x1a1   : > { %vm1341_vm14 = vcmp.eq.s32.totalorder %v1319_v51, %v6733_v55 }
 0x1a2   : > { %2159 = vperm.xlu1 %6105, %v6997_v49   ;;  %5561 = vmatmul.mubr.bf16.gmra.mrb[40].mxu0 %v1494_v20  ;;  %v4905_v40 = vsel %vm1341_vm14, 1.0, %v8401_v58 }
 0x1a3   : > { %v1383_v7 = vpack.c.bf16 %v4906_v60, %v4905_v40 }
 0x1a4   : > { %v7326_v10 = vpop.f32.mrb[20].mxu0 }
 0x1a5   : > { %8454 = vst [vmem:[#allocation11_spill] sm:$0xff] %v7326_v10  ;;  %v1423_v35 = vpop.permute.xlu1 %1422  ;;  %v7328_v48 = vpop.f32.mrb[21].mxu0 }
 0x1a6   : > { %8455 = vst [vmem:[#allocation12_spill] sm:$0xff] %v7328_v48  ;;  %6106 = vset.pattern.permute.xlu1 %v8397_v17  ;;  %v7334_v18 = vpop.f32.mrb[22].mxu0  ;;  %vm1445_vm15 = vcmp.eq.s32.totalorder %v1423_v35, %v6733_v55 }
 0x1a7   : > { %8456 = vst [vmem:[#allocation13_spill] sm:$0xff] %v7334_v18  ;;  %2061 = vperm.xlu1 %6106, %v7337_v19   ;;  %v7340_v49 = vpop.f32.mrb[23].mxu0  ;;  %v4921_v36 = vsel %vm1445_vm15, 1.0, %v8401_v58 }
 0x1a8   : > { %8457 = vst [vmem:[#allocation14_spill] sm:$0xff] %v7340_v49 }
 0x1a9   : > { %v1426_v52 = vpop.permute.xlu1 %1425 }
 0x1aa   : > { %vm1446_vm0 = vcmp.eq.s32.totalorder %v1426_v52, %v6733_v55  ;;  %v2291_v52 = vpop.permute.xlu0 %2290 }
 0x1ab   : > { %v4922_v2 = vsel %vm1446_vm0, 1.0, %v8401_v58  ;;  %6107 = vset.pattern.permute.xlu1 %v8399_v22  ;;  %vm2333_vm11 = vcmp.eq.s32.totalorder %v2291_v52, %v6733_v55 }
 0x1ac   : > { %v1487_v42 = vpack.c.bf16 %v4922_v2, %v4921_v36  ;;  %2165 = vperm.xlu1 %6107, %v7337_v19  }
 0x1ae   : > { %v1328_v50 = vpop.permute.xlu1 %1327  ;;  %v1495_v9 = vadd.bf16 %v1487_v42, %v1383_v7  ;;  %v7403_v7 = vld [vmem:[%s6503_s22 + $0x40] sm:$0xff]  ;;  %v5039_v42 = vsel %vm2437_vm10, 1.0, %v8401_v58 }
 0x1af   : > { %vm1344_vm4 = vcmp.eq.s32.totalorder %v1328_v50, %v6733_v55  ;;  %v5023_v50 = vsel %vm2333_vm11, 1.0, %v8401_v58 }
 0x1b0   : > { %6108 = vset.pattern.permute.xlu1 %v8397_v17  ;;  %5564 = vmatprep.mubr.bf16.mxu0 %v1495_v9  ;;  %v4908_v53 = vsel %vm1344_vm4, 1.0, %v8401_v58  ;;  %vm2441_vm4 = vcmp.eq.s32.totalorder %v7243_v15, %v6733_v55 }
 0x1b1   : > { %2064 = vperm.xlu1 %6108, %v7361_v23   ;;  %v1384_v4 = vpack.c.bf16 %v4908_v53, %v4907_v41 }
 0x1b3   : > { %v1432_v8 = vpop.permute.xlu1 %1431 }
 0x1b4   : > { %vm1448_vm5 = vcmp.eq.s32.totalorder %v1432_v8, %v6733_v55 }
 0x1b5   : > { %v4924_v13 = vsel %vm1448_vm5, 1.0, %v8401_v58  ;;  %6109 = vset.pattern.permute.xlu1 %v8399_v22  ;;  %v7372_v59 = vpop.f32.mrb[24].mxu0 }
 0x1b6   : > { %v1488_v24 = vpack.c.bf16 %v4924_v13, %v4923_v28  ;;  %2168 = vperm.xlu1 %6109, %v7361_v23   ;;  %v7375_v46 = vpop.f32.mrb[25].mxu0 }
 0x1b7   : > { %v7377_v62 = vpop.f32.mrb[26].mxu0 }
 0x1b8   : > { %8461 = vst [vmem:[#allocation18_spill] sm:$0xff] %v7377_v62  ;;  %v2285_v29 = vpop.permute.xlu1 %2284  ;;  %v7379_v16 = vpop.f32.mrb[27].mxu0  ;;  %v1496_v31 = vadd.bf16 %v1488_v24, %v1384_v4 }
 0x1b9   : > { %8462 = vst [vmem:[#allocation19_spill] sm:$0xff] %v7379_v16  ;;  %vm2331_vm7 = vcmp.eq.s32.totalorder %v2285_v29, %v6733_v55  ;;  %v2300_v24 = vpop.permute.xlu0 %2299 }
 0x1ba   : > { %2171 = vperm.xlu1 %6109, %v6955_v0   ;;  %5565 = vmatmul.mubr.bf16.gmra.mrb[44].mxu0 %v1496_v31  ;;  %v5021_v51 = vsel %vm2331_vm7, 1.0, %v8401_v58  ;;  %vm2336_vm14 = vcmp.eq.s32.totalorder %v2300_v24, %v6733_v55 }
 0x1bb   : > { %v2379_v60 = vpack.c.bf16 %v5022_v43, %v5021_v51  ;;  %v6188_v43 = vld [vmem:[%s8383_s4 + $0x8] sm:$0xff]  }
 0x1bd   : > { %v2389_v11 = vpop.permute.xlu1 %2388  ;;  %v2303_v34 = vpop.permute.xlu0 %2302 }
 0x1be   : > { %6110 = vset.pattern.permute.xlu1 %v8397_v17  ;;  %vm2435_vm8 = vcmp.eq.s32.totalorder %v2389_v11, %v6733_v55  ;;  %v7424_v11 = vld [vmem:[%s8387_s8] ss:$0 sm:$0xff]  ;;  %vm2337_vm5 = vcmp.eq.s32.totalorder %v2303_v34, %v6733_v55 }
 0x1bf   : > { %2073 = vperm.xlu1 %6110, %v7386_v63   ;;  %v5037_v20 = vsel %vm2435_vm8, 1.0, %v8401_v58 }
 0x1c1   : > { %v2392_v0 = vpop.permute.xlu1 %2391 }
 0x1c2   : > { %vm2436_vm9 = vcmp.eq.s32.totalorder %v2392_v0, %v6733_v55 }
 0x1c3   : > { %v5038_v35 = vsel %vm2436_vm9, 1.0, %v8401_v58  ;;  %6111 = vset.pattern.permute.xlu1 %v8399_v22 }
 0x1c4   : > { %v2483_v40 = vpack.c.bf16 %v5038_v35, %v5037_v20  ;;  %2177 = vperm.xlu1 %6111, %v7386_v63  }
 0x1c6   : > { %v2294_v36 = vpop.permute.xlu1 %2293  ;;  %v2491_v2 = vadd.bf16 %v2483_v40, %v2379_v60 }
 0x1c7   : > { %vm2334_vm12 = vcmp.eq.s32.totalorder %v2294_v36, %v6733_v55 }
 0x1c8   : > { %6112 = vset.pattern.permute.xlu1 %v8397_v17  ;;  %5584 = vmatprep.mubr.bf16.mxu0 %v2491_v2  ;;  %v5024_v9 = vsel %vm2334_vm12, 1.0, %v8401_v58  ;;  %vm2445_vm12 = vcmp.eq.s32.totalorder %v7264_v44, %v6733_v55  ;;  %v6196_v44 = vld [vmem:[%s8389_s10 + $0x18] sm:$0xff]  }
 0x1c9   : > { %2076 = vperm.xlu1 %6112, %v7403_v7   ;;  %v2380_v53 = vpack.c.bf16 %v5024_v9, %v5023_v50 }
 0x1cb   : > { %v2398_v41 = vpop.permute.xlu1 %2397 }
 0x1cc   : > { %vm2438_vm13 = vcmp.eq.s32.totalorder %v2398_v41, %v6733_v55 }
 0x1cd   : > { %v5040_v1 = vsel %vm2438_vm13, 1.0, %v8401_v58  ;;  %6113 = vset.pattern.permute.xlu1 %v8399_v22  ;;  %v7412_v28 = vpop.f32.mrb[28].mxu0 }
 0x1ce   : > { %8463 = vst [vmem:[#allocation20_spill] sm:$0xff] %v7412_v28  ;;  %v2484_v8 = vpack.c.bf16 %v5040_v1, %v5039_v42  ;;  %2180 = vperm.xlu1 %6113, %v7403_v7   ;;  %v7415_v13 = vpop.f32.mrb[29].mxu0  ;;  %v5026_v42 = vsel %vm2336_vm14, 1.0, %v8401_v58  ;;  %v7450_v1 = vld [vmem:[%s6503_s22 + $0x58] sm:$0xff] }
 0x1cf   : > { %8464 = vst [vmem:[#allocation21_spill] sm:$0xff] %v7415_v13  ;;  %v7417_v4 = vpop.f32.mrb[30].mxu0 }
 0x1d0   : > { %8465 = vst [vmem:[#allocation22_spill] sm:$0xff] %v7417_v4  ;;  %v2492_v29 = vadd.bf16 %v2484_v8, %v2380_v53  ;;  %v2297_v31 = vpop.permute.xlu1 %2296  ;;  %v7419_v33 = vpop.f32.mrb[31].mxu0 }
 0x1d1   : > { %8466 = vst [vmem:[#allocation23_spill] sm:$0xff] %v7419_v33  ;;  %vm2335_vm15 = vcmp.eq.s32.totalorder %v2297_v31, %v6733_v55 }
 0x1d2   : > { %2183 = vperm.xlu1 %6113, %v7018_v45   ;;  %v5458_v51 = vpop.f32.mrb[0].mxu1  ;;  %5585 = vmatmul.mubr.bf16.vlgmr.msra.gmra.mrb[48].mxu0 %v2492_v29  ;;  %v6189_v45 = vld [vmem:[%s8383_s4 + $0x10] sm:$0xff]   ;;  %v5025_v50 = vsel %vm2335_vm15, 1.0, %v8401_v58 }
 0x1d3   : > { %v816_v0 = vadd.f32 %v5458_v51, %v7424_v11  ;;  %v807_v20 = vpop.f32.mrb[1].mxu1  ;;  %5601 = vmatpush3.bf16.msra.mxu0 %v7286_v37  ;;  %v2381_v8 = vpack.c.bf16 %v5026_v42, %v5025_v50 }
 0x1d4   : > { %v808_v35 = vadd.f32 %v7424_v11, %v807_v20  ;;  %v5459_v60 = vpop.f32.mrb[2].mxu1  ;;  %5602 = vmatprep.subr.bf16.mxu0 %v6188_v43 }
 0x1d5   : > { %v7438_v40 = vmax.f32 %v816_v0, 0.0  ;;  %v819_v52 = vadd.f32 %v5459_v60, %v7424_v11  ;;  %v2401_v36 = vpop.permute.xlu1 %2400  ;;  %v810_v2 = vpop.f32.mrb[3].mxu1 }
 0x1d6   : > { %v7443_v9 = vmax.f32 %v808_v35, 0.0  ;;  %v811_v37 = vadd.f32 %v7424_v11, %v810_v2  ;;  %6114 = vset.pattern.permute.xlu1 %v8397_v17  ;;  %vm2439_vm0 = vcmp.eq.s32.totalorder %v2401_v36, %v6733_v55 }
 0x1d7   : > { %v7447_v41 = vmax.f32 %v819_v52, 0.0  ;;  %2085 = vperm.xlu1 %6114, %v7450_v1   ;;  %5603 = vmatpush3.bf16.msra.mxu0 %v6188_v43  ;;  %v7458_v24 = vmul.f32 %v7310_v27, %v7438_v40  ;;  %v6190_v43 = vld [vmem:[%s8383_s4 + $0x18] sm:$0xff]   ;;  %v5041_v2 = vsel %vm2439_vm0, 1.0, %v8401_v58 }
 0x1d8   : > { %v7454_v53 = vmax.f32 %v811_v37, 0.0  ;;  %5604 = vmatprep.subr.bf16.mxu0 %v6189_v45  ;;  %v7471_v0 = vmul.f32 %v7314_v38, %v7443_v9 }
 0x1d9   : > { %v3215_v29 = vpack.c.bf16 %v7447_v41, %v7438_v40  ;;  %v7464_v31 = vmul.f32 %v7319_v25, %v7447_v41  ;;  %v2404_v51 = vpop.permute.xlu1 %2403 }
 0x1da   : > { %v7475_v20 = vmul.f32 %v7321_v47, %v7454_v53  ;;  %vm2440_vm3 = vcmp.eq.s32.totalorder %v2404_v51, %v6733_v55  ;;  %v5462_v35 = vpop.f32.mrb[4].mxu1  ;;  %v3214_v60 = vpack.c.bf16 %v7454_v53, %v7443_v9  ;;  %v6186_v51 = vld [vmem:[%s8389_s10 + $0x8] sm:$0xff]  }
 0x1db   : > { %v5042_v42 = vsel %vm2440_vm3, 1.0, %v8401_v58  ;;  %v832_v50 = vadd.f32 %v5462_v35, %v7424_v11  ;;  %6115 = vset.pattern.permute.xlu1 %v8399_v22  ;;  %v823_v37 = vpop.f32.mrb[5].mxu1  ;;  %5605 = vmatpush3.bf16.msra.mxu0 %v6189_v45  ;;  %v6191_v45 = vld [vmem:[%s8383_s4 + $0x20] sm:$0xff]  }
 0x1dc   : > { %v2485_v17 = vpack.c.bf16 %v5042_v42, %v5041_v2  ;;  %v824_v12 = vadd.f32 %v7424_v11, %v823_v37  ;;  %2189 = vperm.xlu1 %6115, %v7450_v1   ;;  %v5463_v52 = vpop.f32.mrb[6].mxu1  ;;  %5668 = vmatprep.mubr.msk.bf16.mxu1 %vm3245_vm2, %v3214_v60 }
 0x1dd   : > { %v7496_v35 = vmax.f32 %v832_v50, 0.0  ;;  %v835_v22 = vadd.f32 %v5463_v52, %v7424_v11  ;;  %v826_v58 = vpop.f32.mrb[7].mxu1  ;;  %5669 = vmatmul.mubr.msk.bf16.vlgmr.msra.gmra.mrb[16].mxu1 %vm3245_vm2, %v3215_v29  ;;  %5606 = vmatprep.subr.bf16.mxu0 %v6190_v43  ;;  %v7514_v29 = vld [vmem:[%s8389_s10 + $0x10] sm:$0xff]   ;;  %v8472_v50 = vmov 0.0  }
 0x1de   : > { %v7503_v2 = vmax.f32 %v824_v12, 0.0  ;;  %v827_v60 = vadd.f32 %v7424_v11, %v826_v58  ;;  %v2306_v42 = vpop.permute.xlu1 %2305  ;;  %v2493_v37 = vadd.bf16 %v2485_v17, %v2381_v8  ;;  %5685 = vmatpush3.bf16.msra.mxu1 %v7215_v5  ;;  %v8471_v58 = vmov 4   ;;  %v7533_v8 = vld [vmem:[%s6503_s22 + $0x60] sm:$0xff] }
 0x1df   : > { %8467 = vst [vmem:[#allocation24_spill] sm:$0xff] %v7496_v35  ;;  %v7509_v52 = vmax.f32 %v835_v22, 0.0  ;;  %5686 = vmatprep.subr.bf16.mxu1 %v6186_v51  ;;  %5607 = vmatpush3.bf16.msra.mxu0 %v6190_v43  ;;  %vm2338_vm6 = vcmp.eq.s32.totalorder %v2306_v42, %v6733_v55  ;;  %v6192_v22 = vld [vmem:[%s8383_s4 + $0x28] sm:$0xff]   ;;  %v7526_v17 = vmul.f32 %v7326_v10, %v7496_v35 }
 0x1e0   : > { %8468 = vst [vmem:[#allocation25_spill] sm:$0xff] %v7503_v2  ;;  %v7516_v12 = vmax.f32 %v827_v60, 0.0  ;;  %6116 = vset.pattern.permute.xlu1 %v8471_v58  ;;  %5588 = vmatprep.mubr.bf16.mxu0 %v2493_v37  ;;  %v5043_v60 = vsel %vm2441_vm4, 1.0, %v8472_v50  ;;  %v7544_v37 = vmul.f32 %v7328_v48, %v7503_v2  ;;  %v5028_v15 = vsel %vm2338_vm6, 1.0, %v8472_v50 }
 0x1e1   : > { %8469 = vst [vmem:[#allocation26_spill] sm:$0xff] %v7509_v52  ;;  %v7530_v5 = vmul.f32 %v7334_v18, %v7509_v52  ;;  %2088 = vperm.xlu1 %6116, %v7533_v8   ;;  %v3217_v43 = vpack.c.bf16 %v7509_v52, %v7496_v35  ;;  %5608 = vmatprep.subr.bf16.mxu0 %v6191_v45  ;;  %v5027_v18 = vsel %vm2337_vm5, 1.0, %v8472_v50 }
 0x1e2   : > { %8470 = vst [vmem:[#allocation27_spill] sm:$0xff] %v7516_v12  ;;  %v7548_v36 = vmul.f32 %v7340_v49, %v7516_v12  ;;  %v5466_v57 = vpop.f32.mrb[8].mxu1  ;;  %v3216_v26 = vpack.c.bf16 %v7516_v12, %v7503_v2  ;;  %5687 = vmatpush3.bf16.msra.mxu1 %v6186_v51  ;;  %vm2449_vm6 = vcmp.eq.s32.totalorder %v7271_v6, %v6733_v55 }
 0x1e3   : > { %v848_v52 = vadd.f32 %v5466_v57, %v7424_v11  ;;  %v2410_v35 = vpop.permute.xlu1 %2409  ;;  %v839_v48 = vpop.f32.mrb[9].mxu1  ;;  %5609 = vmatpush3.bf16.msra.mxu0 %v6191_v45  ;;  %5704 = vmatprep.subr.bf16.mxu1 %v7514_v29  ;;  %v6193_v57 = vld [vmem:[%s8383_s4 + $0x30] sm:$0xff]  }
 0x1e4   : > { %vm2442_vm7 = vcmp.eq.s32.totalorder %v2410_v35, %v6733_v55  ;;  %v840_v51 = vadd.f32 %v7424_v11, %v839_v48  ;;  %v5467_v34 = vpop.f32.mrb[10].mxu1  ;;  %5672 = vmatprep.mubr.msk.bf16.mxu1 %vm3245_vm2, %v3216_v26  ;;  %5610 = vmatprep.subr.bf16.mxu0 %v6192_v22  ;;  %v8473_v35 = vmov 5   ;;  %v2382_v26 = vpack.c.bf16 %v5028_v15, %v5027_v18  ;;  %v2312_v15 = vpop.permute.xlu0 %2311 }
 0x1e5   : > { %v7570_v12 = vmax.f32 %v848_v52, 0.0  ;;  %v5044_v45 = vsel %vm2442_vm7, 1.0, %v8472_v50  ;;  %v851_v49 = vadd.f32 %v5467_v34, %v7424_v11  ;;  %6117 = vset.pattern.permute.xlu1 %v8473_v35  ;;  %v842_v48 = vpop.f32.mrb[11].mxu1  ;;  %5673 = vmatmul.mubr.msk.bf16.gmra.mrb[20].mxu1 %vm3245_vm2, %v3217_v43  ;;  %v6194_v43 = vld [vmem:[%s8383_s4 + $0x38] sm:$0xff]   ;;  %vm2340_vm8 = vcmp.eq.s32.totalorder %v2312_v15, %v6733_v55 }
 0x1e6   : > { %v2486_v2 = vpack.c.bf16 %v5044_v45, %v5043_v60  ;;  %v7576_v10 = vmax.f32 %v840_v51, 0.0  ;;  %v843_v42 = vadd.f32 %v7424_v11, %v842_v48  ;;  %2192 = vperm.xlu1 %6117, %v7533_v8  }
 0x1e7   : > { %v7580_v39 = vmax.f32 %v851_v49, 0.0  ;;  %5611 = vmatpush3.bf16.msra.mxu0 %v6192_v22  ;;  %v7589_v18 = vmul.f32 %v7372_v59, %v7570_v12 }
 0x1e8   : > { %8474 = vst [vmem:[#allocation28_spill] sm:$0xff] %v7576_v10  ;;  %v7582_v52 = vmax.f32 %v843_v42, 0.0  ;;  %v2309_v32 = vpop.permute.xlu1 %2308  ;;  %v2494_v34 = vadd.bf16 %v2486_v2, %v2382_v26  ;;  %5612 = vmatprep.subr.bf16.mxu0 %v6193_v57  ;;  %v7599_v22 = vmul.f32 %v7375_v46, %v7576_v10  ;;  %v7628_v26 = vld [vmem:[%s6503_s22 + $0x78] sm:$0xff]  ;;  %s4739_s22 = sshll.u32 %s8309_s25, 4  ;;  %s8331_s22 = int_to_ptr.vmem [resolvable:$true] %s4739_s22 }
 0x1e9   : > { %v7593_v60 = vmul.f32 %v7377_v62, %v7580_v39  ;;  %v3219_v49 = vpack.c.bf16 %v7580_v39, %v7570_v12  ;;  %vm2339_vm9 = vcmp.eq.s32.totalorder %v2309_v32, %v6733_v55  ;;  %s6297_s20 = scalar_lea.vmem %s8331_s22, 2048  ;;  %p6304_p0 = scmp.lt.s32.totalorder %s8331_s22, %s6302_s19 }
 0x1ea   : > { %8475 = vst [vmem:[#allocation29_spill] sm:$0xff] %v7582_v52  ;;  %v7603_v2 = vmul.f32 %v7379_v16, %v7582_v52  ;;  %2195 = vperm.xlu1 %6117, %v7062_v3   ;;  %v5470_v51 = vpop.f32.mrb[12].mxu1  ;;  %5589 = vmatmul.mubr.bf16.gmra.mrb[52].mxu0 %v2494_v34  ;;  %v3218_v42 = vpack.c.bf16 %v7582_v52, %v7576_v10  ;;  %v5029_v32 = vsel %vm2339_vm9, 1.0, %v8472_v50  ;;  %p6298_p11 = scmp.ne.s32.totalorder %s8331_s22, %s6297_s20  ;;  %p6305_p1 = scmp.lt.s32.totalorder %s6303_s26, %s6297_s20 }
 0x1eb   : > { %v864_v45 = vadd.f32 %v5470_v51, %v7424_v11  ;;  %v855_v48 = vpop.f32.mrb[13].mxu1  ;;  %5613 = vmatpush3.bf16.msra.mxu0 %v6193_v57 }
 0x1ec   : > { %v856_v62 = vadd.f32 %v7424_v11, %v855_v48  ;;  %v5471_v16 = vpop.f32.mrb[14].mxu1  ;;  %5676 = vmatprep.mubr.msk.bf16.mxu1 %vm3245_vm2, %v3218_v42  ;;  %5614 = vmatprep.subr.bf16.mxu0 %v6194_v43  ;;  %p6299_p12 = pnand %p6298_p11, %p6484_p5  ;;  %p6306_p2 = por %p6305_p1, %p6304_p0 }
 0x1ed   : > { %v7616_v34 = vmax.f32 %v864_v45, 0.0  ;;  %v867_v51 = vadd.f32 %v5471_v16, %v7424_v11  ;;  %v2413_v52 = vpop.permute.xlu1 %2412  ;;  %v858_v10 = vpop.f32.mrb[15].mxu1  ;;  %5677 = vmatmul.mubr.msk.bf16.gmra.mrb[24].mxu1 %vm3245_vm2, %v3219_v49  ;;  %v5030_v16 = vsel %vm2340_vm8, 1.0, %v8472_v50 }
 0x1ee   : > { %v7621_v57 = vmax.f32 %v856_v62, 0.0  ;;  %v859_v42 = vadd.f32 %v7424_v11, %v858_v10  ;;  %6118 = vset.pattern.permute.xlu1 %v8471_v58  ;;  %vm2443_vm10 = vcmp.eq.s32.totalorder %v2413_v52, %v6733_v55  ;;  %v7649_v52 = vld [vmem:[%s8383_s4 + $0x80] sm:$0xff]   ;;  %p6300_p13 = pneg %p6299_p12 }
 0x1ef   : > { %8476 = vst [vmem:[#allocation30_spill] sm:$0xff] %v7616_v34  ;;  %v7625_v48 = vmax.f32 %v867_v51, 0.0  ;;  %2097 = vperm.xlu1 %6118, %v7628_v26   ;;  %5615 = vmatpush3.bf16.msra.mxu0 %v6194_v43  ;;  %v7638_v10 = vmul.f32 %v7412_v28, %v7616_v34 }
 0x1f0   : > { %8477 = vst [vmem:[#allocation31_spill] sm:$0xff] %v7621_v57  ;;  %v7633_v49 = vmax.f32 %v859_v42, 0.0  ;;  %v7653_v15 = vmul.f32 %v7415_v13, %v7621_v57  ;;  %v5045_v42 = vsel %vm2443_vm10, 1.0, %v8472_v50  ;;  %5632 = vmatprep.subr.bf16.mxu0 %v7649_v52  ;;  %p6307_p3 = pnand %p6306_p2, %p6300_p13 }
 0x1f1   : > { %8478 = vst [vmem:[#allocation32_spill] sm:$0xff] %v7625_v48  ;;  %v7642_v62 = vmul.f32 %v7417_v4, %v7625_v48  ;;  %v2416_v11 = vpop.permute.xlu1 %2415  ;;  %v3221_v43 = vpack.c.bf16 %v7625_v48, %v7616_v34  ;;  %v2383_v48 = vpack.c.bf16 %v5030_v16, %v5029_v32  ;;  %v8480_v4 = vpack.c.bf16 %v7475_v20, %v7471_v0 }
 0x1f2   : > { %8479 = vst [vmem:[#allocation33_spill] sm:$0xff] %v7633_v49  ;;  %v7657_v45 = vmul.f32 %v7419_v33, %v7633_v49  ;;  %vm2444_vm11 = vcmp.eq.s32.totalorder %v2416_v11, %v6733_v55  ;;  %v3220_v51 = vpack.c.bf16 %v7633_v49, %v7621_v57  ;;  %v2315_v33 = vpop.permute.xlu0 %2314  ;;  %v5069_v49 = vadd.s32 4294967040, %v7303_v61 }
 0x1f3   : > { %v5046_v3 = vsel %vm2444_vm11, 1.0, %v8472_v50  ;;  %6119 = vset.pattern.permute.xlu1 %v8473_v35  ;;  %vm2341_vm13 = vcmp.eq.s32.totalorder %v2315_v33, %v6733_v55  ;;  %v5047_v61 = vsel %vm2445_vm12, 1.0, %v8472_v50  ;;  %v8481_v33 = vpack.c.bf16 %v7464_v31, %v7458_v24 }
 0x1f4   : > { %v2487_v34 = vpack.c.bf16 %v5046_v3, %v5045_v42  ;;  %2201 = vperm.xlu1 %6119, %v7628_v26   ;;  %5680 = vmatprep.mubr.msk.bf16.mxu1 %vm3245_vm2, %v3220_v51  ;;  %v3389_v11 = vpack.c.bf16 %v7657_v45, %v7653_v15  ;;  %v5031_v3 = vsel %vm2341_vm13, 1.0, %v8472_v50  ;;  %v5072_v24 = vadd.s32 4294967040, %v7337_v19 }
 0x1f5   : > { %5681 = vmatmul.mubr.msk.bf16.gmra.mrb[28].mxu1 %vm3245_vm2, %v3221_v43  ;;  %v5073_v51 = vadd.s32 4294967040, %v7361_v23  ;;  %v8486_v6 = vpack.c.bf16 %v7642_v62, %v7638_v10  ;;  %v5076_v10 = vadd.s32 4294967040, %v7386_v63 }
 0x1f6   : > { %v2318_v57 = vpop.permute.xlu1 %2317  ;;  %5688 = vmatprep.mubr.msk.bf16.mxu1 %vm3245_vm2, %v8480_v4  ;;  %v2495_v16 = vadd.bf16 %v2487_v34, %v2383_v48  ;;  %v8482_v48 = vpack.c.bf16 %v7548_v36, %v7544_v37  ;;  %v2324_v15 = vpop.permute.xlu0 %2323 }
 0x1f7   : > { %vm2342_vm14 = vcmp.eq.s32.totalorder %v2318_v57, %v6733_v55  ;;  %vm2344_vm0 = vcmp.eq.s32.totalorder %v2324_v15, %v6733_v55 }
 0x1f8   : > { %6120 = vset.pattern.permute.xlu1 %v8471_v58  ;;  %5592 = vmatprep.mubr.bf16.mxu0 %v2495_v16  ;;  %v5032_v0 = vsel %vm2342_vm14, 1.0, %v8472_v50  ;;  %v5034_v19 = vsel %vm2344_vm0, 1.0, %v8472_v50  ;;  %vm2205_vm14 = vcmp.eq.s32.totalorder %v7281_v54, %v6733_v55 }
 0x1f9   : > { %2822 = vperm.xlu1 %6120, %v5069_v49   ;;  %v2384_v34 = vpack.c.bf16 %v5032_v0, %v5031_v3  ;;  %v7745_v3 = vld [vmem:[%s8389_s10 + $0x20] sm:$0xff]  }
 0x1fa   : > { %v2327_v45 = vpop.permute.xlu0 %2326 }
 0x1fb   : > { %v2422_v20 = vpop.permute.xlu1 %2421  ;;  %vm2345_vm7 = vcmp.eq.s32.totalorder %v2327_v45, %v6733_v55  ;;  %v5080_v45 = vadd.s32 4294967040, %v7450_v1 }
 0x1fc   : > { %vm2446_vm15 = vcmp.eq.s32.totalorder %v2422_v20, %v6733_v55 }
 0x1fd   : > { %v5048_v4 = vsel %vm2446_vm15, 1.0, %v8472_v50  ;;  %6121 = vset.pattern.permute.xlu1 %v8473_v35  ;;  %5689 = vmatmul.mubr.msk.bf16.vlgmr.msra.gmra.mrb[16].mxu1 %vm3245_vm2, %v8481_v33 }
 0x1fe   : > { %v2488_v57 = vpack.c.bf16 %v5048_v4, %v5047_v61  ;;  %2926 = vperm.xlu1 %6121, %v5069_v49   ;;  %5692 = vmatprep.mubr.msk.bf16.mxu1 %vm3245_vm2, %v8482_v48  ;;  %v8483_v49 = vpack.c.bf16 %v7530_v5, %v7526_v17  ;;  %v2056_v33 = vpop.permute.xlu0 %2055 }
 0x1ff   : > { %5705 = vmatpush3.bf16.msra.mxu1 %v7514_v29  ;;  %vm2100_vm10 = vcmp.eq.s32.totalorder %v2056_v33, %v6733_v55 }
 0x200   : > { %v2321_v32 = vpop.permute.xlu1 %2320  ;;  %v2496_v43 = vadd.bf16 %v2488_v57, %v2384_v34  ;;  %5706 = vmatprep.subr.bf16.mxu1 %v6196_v44  ;;  %v4990_v34 = vsel %vm2100_vm10, 1.0, %v8472_v50 }
 0x201   : > { %vm2343_vm3 = vcmp.eq.s32.totalorder %v2321_v32, %v6733_v55 }
 0x202   : > { %2929 = vperm.xlu1 %6121, %v7152_v14   ;;  %5593 = vmatmul.mubr.bf16.gmra.mrb[56].mxu0 %v2496_v43  ;;  %v8484_v14 = vpack.c.bf16 %v7603_v2, %v7599_v22  ;;  %v5033_v36 = vsel %vm2343_vm3, 1.0, %v8472_v50  ;;  %v8485_v2 = vpack.c.bf16 %v7593_v60, %v7589_v18  ;;  %v5051_v18 = vsel %vm2449_vm6, 1.0, %v8472_v50  ;;  %v2059_v15 = vpop.permute.xlu0 %2058 }
 0x203   : > { %5707 = vmatpush3.bf16.msra.mxu1 %v6196_v44  ;;  %v2385_v37 = vpack.c.bf16 %v5034_v19, %v5033_v36  ;;  %v5035_v60 = vsel %vm2345_vm7, 1.0, %v8472_v50  ;;  %vm2101_vm15 = vcmp.eq.s32.totalorder %v2059_v15, %v6733_v55 }
 0x204   : > { %5724 = vmatprep.subr.bf16.mxu1 %v7745_v3  ;;  %v4991_v19 = vsel %vm2101_vm15, 1.0, %v8472_v50 }
 0x205   : > { %v2425_v31 = vpop.permute.xlu1 %2424  ;;  %5693 = vmatmul.mubr.msk.bf16.gmra.mrb[20].mxu1 %vm3245_vm2, %v8483_v49 }
 0x206   : > { %6122 = vset.pattern.permute.xlu1 %v8471_v58  ;;  %5696 = vmatprep.mubr.msk.bf16.mxu1 %vm3245_vm2, %v8484_v14  ;;  %vm2447_vm4 = vcmp.eq.s32.totalorder %v2425_v31, %v6733_v55  ;;  %v5007_v14 = vsel %vm2205_vm14, 1.0, %v8472_v50 }
 0x207   : > { %2831 = vperm.xlu1 %6122, %v5072_v24   ;;  %v5049_v17 = vsel %vm2447_vm4, 1.0, %v8472_v50 }
 0x209   : > { %v2428_v29 = vpop.permute.xlu1 %2427 }
 0x20a   : > { %vm2448_vm5 = vcmp.eq.s32.totalorder %v2428_v29, %v6733_v55 }
 0x20b   : > { %v5050_v5 = vsel %vm2448_vm5, 1.0, %v8472_v50  ;;  %6123 = vset.pattern.permute.xlu1 %v8473_v35 }
 0x20c   : > { %v2489_v22 = vpack.c.bf16 %v5050_v5, %v5049_v17  ;;  %2935 = vperm.xlu1 %6123, %v5072_v24   ;;  %v5077_v24 = vadd.s32 4294967040, %v7403_v7 }
 0x20d   : > { %5697 = vmatmul.mubr.msk.bf16.gmra.mrb[24].mxu1 %vm3245_vm2, %v8485_v2  ;;  %v2068_v2 = vpop.permute.xlu0 %2067 }
 0x20e   : > { %v2330_v42 = vpop.permute.xlu1 %2329  ;;  %5700 = vmatprep.mubr.msk.bf16.mxu1 %vm3245_vm2, %v3389_v11  ;;  %v2497_v16 = vadd.bf16 %v2489_v22, %v2385_v37  ;;  %v6198_v22 = vld [vmem:[%s8383_s4 + $0x88] sm:$0xff]   ;;  %vm2104_vm4 = vcmp.eq.s32.totalorder %v2068_v2, %v6733_v55 }
 0x20f   : > { %vm2346_vm8 = vcmp.eq.s32.totalorder %v2330_v42, %v6733_v55  ;;  %v4994_v1 = vsel %vm2104_vm4, 1.0, %v8472_v50 }
 0x210   : > { %6124 = vset.pattern.permute.xlu1 %v8471_v58  ;;  %5596 = vmatprep.mubr.bf16.mxu0 %v2497_v16  ;;  %v5036_v23 = vsel %vm2346_vm8, 1.0, %v8472_v50  ;;  %vm2209_vm8 = vcmp.eq.s32.totalorder %v7294_v56, %v6733_v55 }
 0x211   : > { %2834 = vperm.xlu1 %6124, %v5073_v51   ;;  %v2386_v0 = vpack.c.bf16 %v5036_v23, %v5035_v60 }
 0x213   : > { %v2434_v61 = vpop.permute.xlu1 %2433 }
 0x214   : > { %vm2450_vm9 = vcmp.eq.s32.totalorder %v2434_v61, %v6733_v55 }
 0x215   : > { %v5052_v11 = vsel %vm2450_vm9, 1.0, %v8472_v50  ;;  %6125 = vset.pattern.permute.xlu1 %v8473_v35  ;;  %5701 = vmatmul.mubr.msk.bf16.gmra.mrb[28].mxu1 %vm3245_vm2, %v8486_v6  ;;  %v5081_v6 = vadd.s32 4294967040, %v7533_v8  ;;  %v6202_v8 = vld [vmem:[%s8383_s4 + $0xa8] sm:$0xff]  }
 0x216   : > { %v2490_v20 = vpack.c.bf16 %v5052_v11, %v5051_v18  ;;  %2938 = vperm.xlu1 %6125, %v5073_v51   ;;  %v6199_v51 = vld [vmem:[%s8383_s4 + $0x90] sm:$0xff]   ;;  %v2071_v11 = vpop.permute.xlu0 %2070 }
 0x217   : > { %vm2105_vm9 = vcmp.eq.s32.totalorder %v2071_v11, %v6733_v55 }
 0x218   : > { %v2053_v44 = vpop.permute.xlu1 %2052  ;;  %v2498_v4 = vadd.bf16 %v2490_v20, %v2386_v0  ;;  %v6201_v0 = vld [vmem:[%s8383_s4 + $0xa0] sm:$0xff]   ;;  %v4995_v33 = vsel %vm2105_vm9, 1.0, %v8472_v50 }
 0x219   : > { %vm2099_vm11 = vcmp.eq.s32.totalorder %v2053_v44, %v6733_v55 }
 0x21a   : > { %2941 = vperm.xlu1 %6125, %v7165_v30   ;;  %5597 = vmatmul.mubr.bf16.gmra.mrb[60].mxu0 %v2498_v4  ;;  %v4989_v57 = vsel %vm2099_vm11, 1.0, %v8472_v50  ;;  %v5011_v4 = vsel %vm2209_vm8, 1.0, %v8472_v50 }
 0x21b   : > { %v2147_v32 = vpack.c.bf16 %v4990_v34, %v4989_v57 }
 0x21d   : > { %v2157_v62 = vpop.permute.xlu1 %2156 }
 0x21e   : > { %6126 = vset.pattern.permute.xlu1 %v8471_v58  ;;  %vm2203_vm12 = vcmp.eq.s32.totalorder %v2157_v62, %v6733_v55  ;;  %v6203_v62 = vld [vmem:[%s8383_s4 + $0xb0] sm:$0xff]  }
 0x21f   : > { %2843 = vperm.xlu1 %6126, %v5076_v10   ;;  %v5005_v30 = vsel %vm2203_vm12, 1.0, %v8472_v50 }
 0x221   : > { %v2160_v48 = vpop.permute.xlu1 %2159 }
 0x222   : > { %vm2204_vm13 = vcmp.eq.s32.totalorder %v2160_v48, %v6733_v55 }
 0x223   : > { %v5006_v63 = vsel %vm2204_vm13, 1.0, %v8472_v50  ;;  %6127 = vset.pattern.permute.xlu1 %v8473_v35 }
 0x224   : > { %v2251_v43 = vpack.c.bf16 %v5006_v63, %v5005_v30  ;;  %2947 = vperm.xlu1 %6127, %v5076_v10  }
 0x226   : > { %v2062_v31 = vpop.permute.xlu1 %2061  ;;  %v2259_v49 = vadd.bf16 %v2251_v43, %v2147_v32 }
 0x227   : > { %vm2102_vm0 = vcmp.eq.s32.totalorder %v2062_v31, %v6733_v55 }
 0x228   : > { %6128 = vset.pattern.permute.xlu1 %v8471_v58  ;;  %5616 = vmatprep.mubr.bf16.mxu0 %v2259_v49  ;;  %v4992_v36 = vsel %vm2102_vm0, 1.0, %v8472_v50 }
 0x229   : > { %2846 = vperm.xlu1 %6128, %v5077_v24   ;;  %v2148_v54 = vpack.c.bf16 %v4992_v36, %v4991_v19 }
 0x22b   : > { %v2166_v7 = vpop.permute.xlu1 %2165 }
 0x22c   : > { %vm2206_vm3 = vcmp.eq.s32.totalorder %v2166_v7, %v6733_v55  ;;  %v6204_v7 = vld [vmem:[%s8383_s4 + $0xb8] sm:$0xff]  }
 0x22d   : > { %v5008_v29 = vsel %vm2206_vm3, 1.0, %v8472_v50  ;;  %6129 = vset.pattern.permute.xlu1 %v8473_v35 }
 0x22e   : > { %v2252_v17 = vpack.c.bf16 %v5008_v29, %v5007_v14  ;;  %2950 = vperm.xlu1 %6129, %v5077_v24  }
 0x230   : > { %v2260_v5 = vadd.bf16 %v2252_v17, %v2148_v54  ;;  %v2065_v37 = vpop.permute.xlu1 %2064 }
 0x231   : > { %vm2103_vm5 = vcmp.eq.s32.totalorder %v2065_v37, %v6733_v55 }
 0x232   : > { %2953 = vperm.xlu1 %6129, %v7179_v21   ;;  %5617 = vmatmul.mubr.bf16.vlgmr.msra.gmra.mrb[48].mxu0 %v2260_v5  ;;  %v6200_v21 = vld [vmem:[%s8383_s4 + $0x98] sm:$0xff]  }
 0x233   : > { %5633 = vmatpush3.bf16.msra.mxu0 %v7649_v52  ;;  %v4993_v52 = vsel %vm2103_vm5, 1.0, %v8472_v50 }
 0x234   : > { %5634 = vmatprep.subr.bf16.mxu0 %v6198_v22  ;;  %v2149_v23 = vpack.c.bf16 %v4994_v1, %v4993_v52  ;;  %v6206_v1 = vld [vmem:[%s8389_s10 + $0x28] sm:$0xff]  }
 0x235   : > { %v2169_v42 = vpop.permute.xlu1 %2168 }
 0x236   : > { %6130 = vset.pattern.permute.xlu1 %v8471_v58  ;;  %vm2207_vm6 = vcmp.eq.s32.totalorder %v2169_v42, %v6733_v55  ;;  %v2080_v42 = vpop.permute.xlu0 %2079 }
 0x237   : > { %2855 = vperm.xlu1 %6130, %v5080_v45   ;;  %5635 = vmatpush3.bf16.msra.mxu0 %v6198_v22  ;;  %v5009_v18 = vsel %vm2207_vm6, 1.0, %v8472_v50  ;;  %v8487_v22 = vld [vmem:[#allocation8_spill] sm:$0xff]  ;;  %vm2108_vm12 = vcmp.eq.s32.totalorder %v2080_v42, %v6733_v55 }
 0x238   : > { %5636 = vmatprep.subr.bf16.mxu0 %v6199_v51 }
 0x239   : > { %v2172_v16 = vpop.permute.xlu1 %2171 }
 0x23a   : > { %vm2208_vm7 = vcmp.eq.s32.totalorder %v2172_v16, %v6733_v55  ;;  %v2083_v11 = vpop.permute.xlu0 %2082 }
 0x23b   : > { %v5010_v60 = vsel %vm2208_vm7, 1.0, %v8472_v50  ;;  %6132 = vset.pattern.permute.xlu1 %v8473_v35  ;;  %5637 = vmatpush3.bf16.msra.mxu0 %v6199_v51  ;;  %v5084_v51 = vadd.s32 4294967040, %v7628_v26  ;;  %v4998_v26 = vsel %vm2108_vm12, 1.0, %v8472_v50  ;;  %vm2109_vm0 = vcmp.eq.s32.totalorder %v2083_v11, %v6733_v55 }
 0x23c   : > { %v2253_v61 = vpack.c.bf16 %v5010_v60, %v5009_v18  ;;  %2959 = vperm.xlu1 %6132, %v5080_v45   ;;  %5638 = vmatprep.subr.bf16.mxu0 %v6200_v21 }
 0x23e   : > { %v2074_v20 = vpop.permute.xlu1 %2073  ;;  %v2261_v44 = vadd.bf16 %v2253_v61, %v2149_v23 }
 0x23f   : > { %5639 = vmatpush3.bf16.msra.mxu0 %v6200_v21  ;;  %vm2106_vm10 = vcmp.eq.s32.totalorder %v2074_v20, %v6733_v55 }
 0x240   : > { %6133 = vset.pattern.permute.xlu1 %v8471_v58  ;;  %5620 = vmatprep.mubr.bf16.mxu0 %v2261_v44  ;;  %v4996_v10 = vsel %vm2106_vm10, 1.0, %v8472_v50 }
 0x241   : > { %2858 = vperm.xlu1 %6133, %v5081_v6   ;;  %5640 = vmatprep.subr.bf16.mxu0 %v6201_v0  ;;  %v2150_v48 = vpack.c.bf16 %v4996_v10, %v4995_v33 }
 0x243   : > { %v2178_v56 = vpop.permute.xlu1 %2177  ;;  %5641 = vmatpush3.bf16.msra.mxu0 %v6201_v0  ;;  %v4999_v0 = vsel %vm2109_vm0, 1.0, %v8472_v50 }
 0x244   : > { %vm2210_vm11 = vcmp.eq.s32.totalorder %v2178_v56, %v6733_v55  ;;  %5642 = vmatprep.subr.bf16.mxu0 %v6202_v8  ;;  %v8489_v56 = vld [vmem:[#allocation11_spill] sm:$0xff] }
 0x245   : > { %v5012_v34 = vsel %vm2210_vm11, 1.0, %v8472_v50  ;;  %6134 = vset.pattern.permute.xlu1 %v8473_v35  ;;  %v7815_v57 = vpop.f32.mrb[32].mxu0 }
 0x246   : > { %v2254_v30 = vpack.c.bf16 %v5012_v34, %v5011_v4  ;;  %v7819_v63 = vmul.f32 %v7815_v57, %v7310_v27  ;;  %2962 = vperm.xlu1 %6134, %v5081_v6   ;;  %v7821_v32 = vpop.f32.mrb[33].mxu0  ;;  %v3546_v24 = vmul.f32 %v7815_v57, %v7438_v40  ;;  %v8488_v6 = vld [vmem:[#allocation9_spill] sm:$0xff] }
 0x247   : > { %v7825_v43 = vmul.f32 %v7821_v32, %v7314_v38  ;;  %v7827_v15 = vpop.f32.mrb[34].mxu0  ;;  %5643 = vmatpush3.bf16.msra.mxu0 %v6202_v8  ;;  %v3544_v29 = vmul.f32 %v7821_v32, %v7443_v9  ;;  %vm2213_vm4 = vcmp.eq.s32.totalorder %v8488_v6, %v6733_v55 }
 0x248   : > { %v3547_v31 = vmul.f32 %v7827_v15, %v7447_v41  ;;  %v7835_v49 = vmul.f32 %v7827_v15, %v7319_v25  ;;  %v2077_v14 = vpop.permute.xlu1 %2076  ;;  %v7837_v19 = vpop.f32.mrb[35].mxu0  ;;  %v2262_v36 = vadd.bf16 %v2254_v30, %v2150_v48  ;;  %5644 = vmatprep.subr.bf16.mxu0 %v6203_v62  ;;  %v5015_v44 = vsel %vm2213_vm4, 1.0, %v8472_v50  ;;  %v8490_v48 = vld [vmem:[#allocation12_spill] sm:$0xff] }
 0x249   : > { %v3545_v54 = vmul.f32 %v7837_v19, %v7454_v53  ;;  %v7848_v17 = vmul.f32 %v7837_v19, %v7321_v47  ;;  %vm2107_vm13 = vcmp.eq.s32.totalorder %v2077_v14, %v6733_v55 }
 0x24a   : > { %v3561_v5 = vpack.c.bf16 %v3547_v31, %v3546_v24  ;;  %2965 = vperm.xlu1 %6134, %v8487_v22   ;;  %5621 = vmatmul.mubr.bf16.gmra.mrb[52].mxu0 %v2262_v36  ;;  %v4997_v52 = vsel %vm2107_vm13, 1.0, %v8472_v50  ;;  %v8491_v31 = vld [vmem:[#allocation24_spill] sm:$0xff]  ;;  %v8492_v36 = vld [vmem:[#allocation26_spill] sm:$0xff] }
 0x24b   : > { %v3560_v2 = vpack.c.bf16 %v3545_v54, %v3544_v29  ;;  %5645 = vmatpush3.bf16.msra.mxu0 %v6203_v62  ;;  %v2151_v60 = vpack.c.bf16 %v4998_v26, %v4997_v52  ;;  %v8493_v29 = vld [vmem:[#allocation13_spill] sm:$0xff]  ;;  %v8496_v26 = vld [vmem:[#allocation14_spill] sm:$0xff] }
 0x24c   : > { %5646 = vmatprep.subr.bf16.mxu0 %v6204_v7 }
 0x24d   : > { %v2181_v21 = vpop.permute.xlu1 %2180  ;;  %5708 = vmatprep.mubr.msk.bf16.mxu1 %vm3245_vm2, %v3560_v2 }
 0x24e   : > { %6135 = vset.pattern.permute.xlu1 %v8471_v58  ;;  %5709 = vmatmul.mubr.msk.bf16.vlgmr.msra.gmra.mrb[16].mxu1 %vm3245_vm2, %v3561_v5  ;;  %vm2211_vm14 = vcmp.eq.s32.totalorder %v2181_v21, %v6733_v55  ;;  %v8495_v21 = vld [vmem:[#allocation27_spill] sm:$0xff] }
 0x24f   : > { %2867 = vperm.xlu1 %6135, %v5084_v51   ;;  %5647 = vmatpush3.bf16.msra.mxu0 %v6204_v7  ;;  %v5013_v18 = vsel %vm2211_vm14, 1.0, %v8472_v50 }
 0x250   : > { %5725 = vmatpush3.bf16.msra.mxu1 %v7745_v3 }
 0x251   : > { %v2184_v16 = vpop.permute.xlu1 %2183  ;;  %5726 = vmatprep.subr.bf16.mxu1 %v6206_v1 }
 0x252   : > { %vm2212_vm15 = vcmp.eq.s32.totalorder %v2184_v16, %v6733_v55 }
 0x253   : > { %v5014_v58 = vsel %vm2212_vm15, 1.0, %v8472_v50  ;;  %6137 = vset.pattern.permute.xlu1 %v8473_v35 }
 0x254   : > { %v2255_v23 = vpack.c.bf16 %v5014_v58, %v5013_v18  ;;  %2971 = vperm.xlu1 %6137, %v5084_v51   ;;  %5727 = vmatpush3.bf16.msra.mxu1 %v6206_v1  ;;  %v8494_v51 = vld [vmem:[#allocation25_spill] sm:$0xff] }
 0x256   : > { %v2086_v61 = vpop.permute.xlu1 %2085  ;;  %v2263_v3 = vadd.bf16 %v2255_v23, %v2151_v60  ;;  %v2092_v23 = vpop.permute.xlu0 %2091 }
 0x257   : > { %vm2110_vm3 = vcmp.eq.s32.totalorder %v2086_v61, %v6733_v55  ;;  %vm2112_vm6 = vcmp.eq.s32.totalorder %v2092_v23, %v6733_v55 }
 0x258   : > { %5624 = vmatprep.mubr.bf16.mxu0 %v2263_v3  ;;  %v5000_v20 = vsel %vm2110_vm3, 1.0, %v8472_v50  ;;  %v5002_v3 = vsel %vm2112_vm6, 1.0, %v8472_v50 }
 0x259   : > { %v2152_v33 = vpack.c.bf16 %v5000_v20, %v4999_v0 }
 0x25b   : > { %v2190_v35 = vpop.permute.xlu1 %2189 }
 0x25c   : > { %vm2214_vm5 = vcmp.eq.s32.totalorder %v2190_v35, %v6733_v55 }
 0x25d   : > { %v5016_v8 = vsel %vm2214_vm5, 1.0, %v8472_v50  ;;  %v7881_v4 = vpop.f32.mrb[36].mxu0 }
 0x25e   : > { %v2256_v10 = vpack.c.bf16 %v5016_v8, %v5015_v44  ;;  %v7885_v62 = vmul.f32 %v7881_v4, %v8489_v56  ;;  %v7887_v34 = vpop.f32.mrb[37].mxu0  ;;  %v3550_v14 = vmul.f32 %v7881_v4, %v8491_v31 }
 0x25f   : > { %v7891_v30 = vmul.f32 %v7887_v34, %v8490_v48  ;;  %v7893_v24 = vpop.f32.mrb[38].mxu0  ;;  %v3548_v42 = vmul.f32 %v7887_v34, %v8494_v51 }
 0x260   : > { %v3551_v7 = vmul.f32 %v7893_v24, %v8492_v36  ;;  %v7901_v54 = vmul.f32 %v7893_v24, %v8493_v29  ;;  %v2089_v5 = vpop.permute.xlu1 %2088  ;;  %v7903_v22 = vpop.f32.mrb[39].mxu0  ;;  %v2264_v2 = vadd.bf16 %v2256_v10, %v2152_v33 }
 0x261   : > { %v3549_v1 = vmul.f32 %v7903_v22, %v8495_v21  ;;  %v7911_v52 = vmul.f32 %v7903_v22, %v8496_v26  ;;  %vm2111_vm7 = vcmp.eq.s32.totalorder %v2089_v5, %v6733_v55  ;;  %v2095_v10 = vpop.permute.xlu0 %2094 }
 0x262   : > { %v3563_v16 = vpack.c.bf16 %v3551_v7, %v3550_v14  ;;  %5625 = vmatmul.mubr.bf16.gmra.mrb[56].mxu0 %v2264_v2  ;;  %v5001_v11 = vsel %vm2111_vm7, 1.0, %v8472_v50  ;;  %vm2113_vm10 = vcmp.eq.s32.totalorder %v2095_v10, %v6733_v55  ;;  %v8497_v14 = vld [vmem:[#allocation10_spill] sm:$0xff] }
 0x263   : > { %v3562_v58 = vpack.c.bf16 %v3549_v1, %v3548_v42  ;;  %v2153_v35 = vpack.c.bf16 %v5002_v3, %v5001_v11  ;;  %vm2217_vm12 = vcmp.eq.s32.totalorder %v8497_v14, %v6733_v55  ;;  %v5003_v7 = vsel %vm2113_vm10, 1.0, %v8472_v50  ;;  %v8501_v14 = vld [vmem:[#allocation28_spill] sm:$0xff] }
 0x264   : > { %v5019_v42 = vsel %vm2217_vm12, 1.0, %v8472_v50 }
 0x265   : > { %v2193_v61 = vpop.permute.xlu1 %2192  ;;  %5712 = vmatprep.mubr.msk.bf16.mxu1 %vm3245_vm2, %v3562_v58 }
 0x266   : > { %5713 = vmatmul.mubr.msk.bf16.gmra.mrb[20].mxu1 %vm3245_vm2, %v3563_v16  ;;  %vm2215_vm8 = vcmp.eq.s32.totalorder %v2193_v61, %v6733_v55 }
 0x267   : > { %v5017_v0 = vsel %vm2215_vm8, 1.0, %v8472_v50 }
 0x269   : > { %v2196_v6 = vpop.permute.xlu1 %2195 }
 0x26a   : > { %vm2216_vm9 = vcmp.eq.s32.totalorder %v2196_v6, %v6733_v55 }
 0x26b   : > { %v5018_v20 = vsel %vm2216_vm9, 1.0, %v8472_v50 }
 0x26c   : > { %v2257_v44 = vpack.c.bf16 %v5018_v20, %v5017_v0 }
 0x26e   : > { %v2098_v8 = vpop.permute.xlu1 %2097  ;;  %v2265_v33 = vadd.bf16 %v2257_v44, %v2153_v35  ;;  %v8499_v35 = vld [vmem:[#allocation18_spill] sm:$0xff] }
 0x26f   : > { %vm2114_vm11 = vcmp.eq.s32.totalorder %v2098_v8, %v6733_v55 }
 0x270   : > { %5628 = vmatprep.mubr.bf16.mxu0 %v2265_v33  ;;  %v5004_v5 = vsel %vm2114_vm11, 1.0, %v8472_v50 }
 0x271   : > { %v2154_v58 = vpack.c.bf16 %v5004_v5, %v5003_v7  ;;  %v8502_v5 = vld [vmem:[#allocation29_spill] sm:$0xff] }
 0x273   : > { %v2202_v2 = vpop.permute.xlu1 %2201 }
 0x274   : > { %vm2218_vm13 = vcmp.eq.s32.totalorder %v2202_v2, %v6733_v55 }
 0x275   : > { %v5020_v1 = vsel %vm2218_vm13, 1.0, %v8472_v50  ;;  %v7936_v16 = vpop.f32.mrb[40].mxu0 }
 0x276   : > { %v2258_v23 = vpack.c.bf16 %v5020_v1, %v5019_v42  ;;  %v7940_v61 = vmul.f32 %v7936_v16, %v7372_v59  ;;  %v7942_v3 = vpop.f32.mrb[41].mxu0  ;;  %v3554_v0 = vmul.f32 %v7936_v16, %v7570_v12  ;;  %v8503_v42 = vld [vmem:[#allocation19_spill] sm:$0xff] }
 0x277   : > { %v7946_v11 = vmul.f32 %v7942_v3, %v7375_v46  ;;  %v7948_v6 = vpop.f32.mrb[42].mxu0  ;;  %v3552_v7 = vmul.f32 %v7942_v3, %v8501_v14 }
 0x278   : > { %8498 = vst [vmem:[#allocation8_spill] sm:$0xff] %v7948_v6  ;;  %v3555_v20 = vmul.f32 %v7948_v6, %v7580_v39  ;;  %v7956_v44 = vmul.f32 %v7948_v6, %v8499_v35  ;;  %v2823_v8 = vpop.permute.xlu1 %2822  ;;  %v7958_v33 = vpop.f32.mrb[43].mxu0  ;;  %v2266_v10 = vadd.bf16 %v2258_v23, %v2154_v58 }
 0x279   : > { %8500 = vst [vmem:[#allocation9_spill] sm:$0xff] %v7958_v33  ;;  %v3553_v2 = vmul.f32 %v7958_v33, %v8502_v5  ;;  %v7966_v1 = vmul.f32 %v7958_v33, %v8503_v42  ;;  %vm2869_vm14 = vcmp.eq.s32.totalorder %v2823_v8, %v6733_v55  ;;  %v2826_v23 = vpop.permute.xlu0 %2825  ;;  %v8508_v5 = vld [vmem:[#allocation32_spill] sm:$0xff] }
 0x27a   : > { %v3565_v18 = vpack.c.bf16 %v3555_v20, %v3554_v0  ;;  %5629 = vmatmul.mubr.bf16.gmra.mrb[60].mxu0 %v2266_v10  ;;  %vm2870_vm15 = vcmp.eq.s32.totalorder %v2826_v23, %v6733_v55  ;;  %v5085_v0 = vsel %vm2869_vm14, 1.0, %v8472_v50 }
 0x27b   : > { %v3564_v37 = vpack.c.bf16 %v3553_v2, %v3552_v7  ;;  %v5086_v10 = vsel %vm2870_vm15, 1.0, %v8472_v50 }
 0x27c   : > { %v2917_v2 = vpack.c.bf16 %v5086_v10, %v5085_v0 }
 0x27d   : > { %v2927_v58 = vpop.permute.xlu1 %2926  ;;  %5716 = vmatprep.mubr.msk.bf16.mxu1 %vm3245_vm2, %v3564_v37  ;;  %v2829_v23 = vpop.permute.xlu0 %2828 }
 0x27e   : > { %5717 = vmatmul.mubr.msk.bf16.gmra.mrb[24].mxu1 %vm3245_vm2, %v3565_v18  ;;  %vm2973_vm0 = vcmp.eq.s32.totalorder %v2927_v58, %v6733_v55  ;;  %v8504_v58 = vld [vmem:[#allocation15_spill] sm:$0xff]  ;;  %vm2871_vm6 = vcmp.eq.s32.totalorder %v2829_v23, %v6733_v55 }
 0x27f   : > { %v5101_v7 = vsel %vm2973_vm0, 1.0, %v8472_v50  ;;  %vm2975_vm5 = vcmp.eq.s32.totalorder %v8504_v58, %v6733_v55  ;;  %v5087_v0 = vsel %vm2871_vm6, 1.0, %v8472_v50  ;;  %v8507_v58 = vld [vmem:[#allocation30_spill] sm:$0xff] }
 0x280   : > { %v5103_v33 = vsel %vm2975_vm5, 1.0, %v8472_v50 }
 0x281   : > { %v2930_v20 = vpop.permute.xlu1 %2929 }
 0x282   : > { %vm2974_vm3 = vcmp.eq.s32.totalorder %v2930_v20, %v6733_v55 }
 0x283   : > { %v5102_v37 = vsel %vm2974_vm3, 1.0, %v8472_v50 }
 0x284   : > { %v3021_v8 = vpack.c.bf16 %v5102_v37, %v5101_v7 }
 0x286   : > { %v2832_v60 = vpop.permute.xlu1 %2831  ;;  %v3029_v18 = vadd.bf16 %v3021_v8, %v2917_v2 }
 0x287   : > { %vm2872_vm4 = vcmp.eq.s32.totalorder %v2832_v60, %v6733_v55 }
 0x288   : > { %5648 = vmatprep.mubr.bf16.mxu0 %v3029_v18  ;;  %v5088_v20 = vsel %vm2872_vm4, 1.0, %v8472_v50 }
 0x289   : > { %v2918_v60 = vpack.c.bf16 %v5088_v20, %v5087_v0  ;;  %v8509_v20 = vld [vmem:[#allocation22_spill] sm:$0xff] }
 0x28b   : > { %v2936_v45 = vpop.permute.xlu1 %2935 }
 0x28c   : > { %vm2976_vm7 = vcmp.eq.s32.totalorder %v2936_v45, %v6733_v55 }
 0x28d   : > { %v5104_v10 = vsel %vm2976_vm7, 1.0, %v8472_v50  ;;  %v7991_v7 = vpop.f32.mrb[44].mxu0 }
 0x28e   : > { %8505 = vst [vmem:[#allocation11_spill] sm:$0xff] %v7991_v7  ;;  %v3022_v37 = vpack.c.bf16 %v5104_v10, %v5103_v33  ;;  %v7995_v2 = vmul.f32 %v7991_v7, %v7412_v28  ;;  %v7997_v8 = vpop.f32.mrb[45].mxu0  ;;  %v3558_v42 = vmul.f32 %v7991_v7, %v8507_v58  ;;  %v8510_v28 = vld [vmem:[#allocation31_spill] sm:$0xff] }
 0x28f   : > { %v3733_v18 = vmul.f32 %v7997_v8, %v7415_v13  ;;  %v8001_v45 = vpop.f32.mrb[46].mxu0  ;;  %v3556_v6 = vmul.f32 %v7997_v8, %v8510_v28  ;;  %v8511_v13 = vld [vmem:[#allocation33_spill] sm:$0xff]  ;;  %v2838_v28 = vpop.permute.xlu0 %2837 }
 0x290   : > { %8506 = vst [vmem:[#allocation12_spill] sm:$0xff] %v8001_v45  ;;  %v3030_v23 = vadd.bf16 %v3022_v37, %v2918_v60  ;;  %v3559_v14 = vmul.f32 %v8001_v45, %v8508_v5  ;;  %v8009_v33 = vmul.f32 %v8001_v45, %v8509_v20  ;;  %v2835_v0 = vpop.permute.xlu1 %2834  ;;  %v8011_v10 = vpop.f32.mrb[47].mxu0  ;;  %v8512_v60 = vld [vmem:[#allocation23_spill] sm:$0xff]  ;;  %vm2874_vm9 = vcmp.eq.s32.totalorder %v2838_v28, %v6733_v55 }
 0x291   : > { %v3557_v35 = vmul.f32 %v8011_v10, %v8511_v13  ;;  %v3734_v37 = vmul.f32 %v8011_v10, %v8512_v60  ;;  %vm2873_vm8 = vcmp.eq.s32.totalorder %v2835_v0, %v6733_v55  ;;  %v8513_v13 = vpack.c.bf16 %v7848_v17, %v7825_v43 }
 0x292   : > { %v3567_v58 = vpack.c.bf16 %v3559_v14, %v3558_v42  ;;  %v3744_v5 = vpack.c.bf16 %v8009_v33, %v7995_v2  ;;  %5649 = vmatmul.mubr.bf16.vlgmr.msra.gmra.mrb[48].mxu0 %v3030_v23  ;;  %v5090_v14 = vsel %vm2874_vm9, 1.0, %v8472_v50  ;;  %v8515_v17 = vpack.c.bf16 %v7911_v52, %v7891_v30 }
 0x293   : > { %v3566_v7 = vpack.c.bf16 %v3557_v35, %v3556_v6  ;;  %v3743_v45 = vpack.c.bf16 %v3734_v37, %v3733_v18  ;;  %v5089_v6 = vsel %vm2873_vm8, 1.0, %v8472_v50  ;;  %v2841_v23 = vpop.permute.xlu0 %2840  ;;  %v8517_v37 = vpack.c.bf16 %v7901_v54, %v7885_v62 }
 0x294   : > { %v2919_v2 = vpack.c.bf16 %v5090_v14, %v5089_v6  ;;  %vm2875_vm14 = vcmp.eq.s32.totalorder %v2841_v23, %v6733_v55  ;;  %v8518_v6 = vpack.c.bf16 %v7966_v1, %v7946_v11 }
 0x295   : > { %v2939_v20 = vpop.permute.xlu1 %2938  ;;  %5720 = vmatprep.mubr.msk.bf16.mxu1 %vm3245_vm2, %v3566_v7  ;;  %v5091_v30 = vsel %vm2875_vm14, 1.0, %v8472_v50 }
 0x296   : > { %5721 = vmatmul.mubr.msk.bf16.gmra.mrb[28].mxu1 %vm3245_vm2, %v3567_v58  ;;  %vm2977_vm10 = vcmp.eq.s32.totalorder %v2939_v20, %v6733_v55  ;;  %v8516_v58 = vld [vmem:[#allocation16_spill] sm:$0xff] }
 0x297   : > { %5728 = vmatprep.mubr.msk.bf16.mxu1 %vm3245_vm2, %v8513_v13  ;;  %v5105_v42 = vsel %vm2977_vm10, 1.0, %v8472_v50  ;;  %v8514_v13 = vpack.c.bf16 %v7835_v49, %v7819_v63  ;;  %vm2979_vm13 = vcmp.eq.s32.totalorder %v8516_v58, %v6733_v55 }
 0x298   : > { %v5107_v49 = vsel %vm2979_vm13, 1.0, %v8472_v50 }
 0x299   : > { %v2942_v35 = vpop.permute.xlu1 %2941 }
 0x29a   : > { %vm2978_vm11 = vcmp.eq.s32.totalorder %v2942_v35, %v6733_v55 }
 0x29b   : > { %v5106_v7 = vsel %vm2978_vm11, 1.0, %v8472_v50 }
 0x29c   : > { %v3023_v18 = vpack.c.bf16 %v5106_v7, %v5105_v42  ;;  %v8519_v7 = vpack.c.bf16 %v7956_v44, %v7940_v61 }
 0x29e   : > { %v2844_v43 = vpop.permute.xlu1 %2843  ;;  %5729 = vmatmul.mubr.msk.bf16.vlgmr.msra.gmra.mrb[16].mxu1 %vm3245_vm2, %v8514_v13  ;;  %v3031_v28 = vadd.bf16 %v3023_v18, %v2919_v2  ;;  %v2850_v2 = vpop.permute.xlu0 %2849 }
 0x29f   : > { %5732 = vmatprep.mubr.msk.bf16.mxu1 %vm3245_vm2, %v8515_v17  ;;  %vm2876_vm12 = vcmp.eq.s32.totalorder %v2844_v43, %v6733_v55  ;;  %vm2878_vm3 = vcmp.eq.s32.totalorder %v2850_v2, %v6733_v55 }
 0x2a0   : > { %5652 = vmatprep.mubr.bf16.mxu0 %v3031_v28  ;;  %v5092_v20 = vsel %vm2876_vm12, 1.0, %v8472_v50  ;;  %v5094_v11 = vsel %vm2878_vm3, 1.0, %v8472_v50  ;;  %v8520_v28 = vld [vmem:[#allocation17_spill] sm:$0xff] }
 0x2a1   : > { %v2920_v33 = vpack.c.bf16 %v5092_v20, %v5091_v30  ;;  %vm2983_vm7 = vcmp.eq.s32.totalorder %v8520_v28, %v6733_v55 }
 0x2a2   : > { %v2853_v13 = vpop.permute.xlu0 %2852  ;;  %v5111_v58 = vsel %vm2983_vm7, 1.0, %v8472_v50 }
 0x2a3   : > { %v2948_v63 = vpop.permute.xlu1 %2947  ;;  %vm2879_vm8 = vcmp.eq.s32.totalorder %v2853_v13, %v6733_v55 }
 0x2a4   : > { %vm2980_vm15 = vcmp.eq.s32.totalorder %v2948_v63, %v6733_v55  ;;  %v5095_v20 = vsel %vm2879_vm8, 1.0, %v8472_v50 }
 0x2a5   : > { %v5108_v52 = vsel %vm2980_vm15, 1.0, %v8472_v50 }
 0x2a6   : > { %v3024_v0 = vpack.c.bf16 %v5108_v52, %v5107_v49  ;;  %5733 = vmatmul.mubr.msk.bf16.gmra.mrb[20].mxu1 %vm3245_vm2, %v8517_v37 }
 0x2a7   : > { %5736 = vmatprep.mubr.msk.bf16.mxu1 %vm3245_vm2, %v8518_v6 }
 0x2a8   : > { %v2847_v35 = vpop.permute.xlu1 %2846  ;;  %v3032_v14 = vadd.bf16 %v3024_v0, %v2920_v33  ;;  %v2862_v33 = vpop.permute.xlu0 %2861 }
 0x2a9   : > { %vm2877_vm0 = vcmp.eq.s32.totalorder %v2847_v35, %v6733_v55  ;;  %vm2882_vm11 = vcmp.eq.s32.totalorder %v2862_v33, %v6733_v55 }
 0x2aa   : > { %5653 = vmatmul.mubr.bf16.gmra.mrb[52].mxu0 %v3032_v14  ;;  %v5093_v62 = vsel %vm2877_vm0, 1.0, %v8472_v50  ;;  %v5098_v14 = vsel %vm2882_vm11, 1.0, %v8472_v50 }
 0x2ab   : > { %v2921_v44 = vpack.c.bf16 %v5094_v11, %v5093_v62 }
 0x2ac   : > { %v2865_v37 = vpop.permute.xlu0 %2864 }
 0x2ad   : > { %v2951_v42 = vpop.permute.xlu1 %2950  ;;  %vm2883_vm0 = vcmp.eq.s32.totalorder %v2865_v37, %v6733_v55 }
 0x2ae   : > { %5737 = vmatmul.mubr.msk.bf16.gmra.mrb[24].mxu1 %vm3245_vm2, %v8519_v7  ;;  %vm2981_vm4 = vcmp.eq.s32.totalorder %v2951_v42, %v6733_v55 }
 0x2af   : > { %5740 = vmatprep.mubr.msk.bf16.mxu1 %vm3245_vm2, %v3743_v45  ;;  %v5109_v1 = vsel %vm2981_vm4, 1.0, %v8472_v50 }
 0x2b1   : > { %v2954_v54 = vpop.permute.xlu1 %2953 }
 0x2b2   : > { %vm2982_vm5 = vcmp.eq.s32.totalorder %v2954_v54, %v6733_v55  ;;  %v2969_v54 = vpop.permute.xlu0 %2968 }
 0x2b3   : > { %v5110_v61 = vsel %vm2982_vm5, 1.0, %v8472_v50  ;;  %vm2987_vm15 = vcmp.eq.s32.totalorder %v2969_v54, %v6733_v55 }
 0x2b4   : > { %v3025_v18 = vpack.c.bf16 %v5110_v61, %v5109_v1 }
 0x2b6   : > { %v2856_v43 = vpop.permute.xlu1 %2855  ;;  %5741 = vmatmul.mubr.msk.bf16.gmra.mrb[28].mxu1 %vm3245_vm2, %v3744_v5  ;;  %v3033_v45 = vadd.bf16 %v3025_v18, %v2921_v44  ;;  %v5115_v44 = vsel %vm2987_vm15, 1.0, %v8472_v50 }
 0x2b7   : > { %vm2880_vm6 = vcmp.eq.s32.totalorder %v2856_v43, %v6733_v55  ;;  %v5099_v43 = vsel %vm2883_vm0, 1.0, %v8472_v50 }
 0x2b8   : > { %5656 = vmatprep.mubr.bf16.mxu0 %v3033_v45  ;;  %v5096_v17 = vsel %vm2880_vm6, 1.0, %v8472_v50 }
 0x2b9   : > { %v2922_v63 = vpack.c.bf16 %v5096_v17, %v5095_v20 }
 0x2bb   : > { %v2960_v23 = vpop.permute.xlu1 %2959 }
 0x2bc   : > { %vm2984_vm9 = vcmp.eq.s32.totalorder %v2960_v23, %v6733_v55  ;;  %v6207_v23 = vld [vmem:[%s8389_s10 + $0x30] sm:$0xff]  }
 0x2bd   : > { %v5112_v5 = vsel %vm2984_vm9, 1.0, %v8472_v50  ;;  %5744 = vmatprep.subr.bf16.mxu1 %v6207_v23 }
 0x2be   : > { %v3026_v49 = vpack.c.bf16 %v5112_v5, %v5111_v58  ;;  %5745 = vmatpush3.bf16.msra.mxu1 %v6207_v23  ;;  %v6208_v58 = vld [vmem:[%s8389_s10 + $0x38] sm:$0xff]  }
 0x2bf   : > { %5746 = vmatprep.subr.bf16.mxu1 %v6208_v58 }
 0x2c0   : > { %v2859_v30 = vpop.permute.xlu1 %2858  ;;  %v3034_v52 = vadd.bf16 %v3026_v49, %v2922_v63 }
 0x2c1   : > { %vm2881_vm10 = vcmp.eq.s32.totalorder %v2859_v30, %v6733_v55 }
 0x2c2   : > { %5657 = vmatmul.mubr.bf16.gmra.mrb[56].mxu0 %v3034_v52  ;;  %v5097_v6 = vsel %vm2881_vm10, 1.0, %v8472_v50  ;;  %5747 = vmatpush3.bf16.msra.mxu1 %v6208_v58 }
 0x2c3   : > { %v2923_v2 = vpack.c.bf16 %v5098_v14, %v5097_v6 }
 0x2c5   : > { %v2963_v0 = vpop.permute.xlu1 %2962 }
 0x2c6   : > { %vm2985_vm12 = vcmp.eq.s32.totalorder %v2963_v0, %v6733_v55 }
 0x2c7   : > { %v5113_v42 = vsel %vm2985_vm12, 1.0, %v8472_v50 }
 0x2c9   : > { %v2966_v35 = vpop.permute.xlu1 %2965 }
 0x2ca   : > { %vm2986_vm13 = vcmp.eq.s32.totalorder %v2966_v35, %v6733_v55 }
 0x2cb   : > { %v5114_v7 = vsel %vm2986_vm13, 1.0, %v8472_v50 }
 0x2cc   : > { %v3027_v62 = vpack.c.bf16 %v5114_v7, %v5113_v42  ;;  %v6214_v42 = vld [vmem:[%s8391_s12 + $0x8] sm:$0xff]   ;;  %v6215_v7 = vld [vmem:[%s8391_s12 + $0x10] sm:$0xff]  }
 0x2ce   : > { %v2868_v11 = vpop.permute.xlu1 %2867  ;;  %v3035_v1 = vadd.bf16 %v3027_v62, %v2923_v2 }
 0x2cf   : > { %vm2884_vm14 = vcmp.eq.s32.totalorder %v2868_v11, %v6733_v55 }
 0x2d0   : > { %5660 = vmatprep.mubr.bf16.mxu0 %v3035_v1  ;;  %v5100_v61 = vsel %vm2884_vm14, 1.0, %v8472_v50 }
 0x2d1   : > { %v2924_v13 = vpack.c.bf16 %v5100_v61, %v5099_v43 }
 0x2d3   : > { %v2972_v18 = vpop.permute.xlu1 %2971 }
 0x2d4   : > { %vm2988_vm3 = vcmp.eq.s32.totalorder %v2972_v18, %v6733_v55  ;;  %v6209_v55 = vld [vmem:[%s8389_s10 + $0x40] sm:$0xff]  }
 0x2d5   : > { %v5116_v45 = vsel %vm2988_vm3, 1.0, %v8472_v50  ;;  %5764 = vmatprep.subr.bf16.mxu1 %v6209_v55 }
 0x2d6   : > { %v3028_v28 = vpack.c.bf16 %v5116_v45, %v5115_v44 }
 0x2d8   : > { %v3036_v17 = vadd.bf16 %v3028_v28, %v2924_v13 }
 0x2da   : > { %5661 = vmatmul.mubr.bf16.gmra.mrb[60].mxu0 %v3036_v17 }
 0x365   : > { %v5650_v50 = vpop.f32.mrb[48].mxu0 }
 0x366   : > { %v8109_v20 = vmul.f32 %v5650_v50, %v7310_v27  ;;  %v8112_v5 = vmul.f32 %v5650_v50, %v7815_v57  ;;  %v3135_v63 = vpop.f32.mrb[49].mxu0  ;;  %v3900_v33 = vmul.f32 %v5650_v50, %v7438_v40 }
 0x367   : > { %v8115_v49 = vmul.f32 %v3135_v63, %v7314_v38  ;;  %v8118_v30 = vmul.f32 %v3135_v63, %v7821_v32  ;;  %v5651_v52 = vpop.f32.mrb[50].mxu0  ;;  %v3898_v6 = vmul.f32 %v3135_v63, %v7443_v9 }
 0x368   : > { %v3901_v0 = vmul.f32 %v5651_v52, %v7447_v41  ;;  %v8123_v37 = vmul.f32 %v5651_v52, %v7319_v25  ;;  %v8126_v27 = vmul.f32 %v5651_v52, %v7827_v15  ;;  %v3138_v57 = vpop.f32.mrb[51].mxu0 }
 0x369   : > { %v3899_v38 = vmul.f32 %v3138_v57, %v7454_v53  ;;  %v8131_v35 = vmul.f32 %v3138_v57, %v7321_v47  ;;  %v8134_v32 = vmul.f32 %v3138_v57, %v7837_v19  ;;  %v6210_v47 = vld [vmem:[%s8389_s10 + $0x48] sm:$0xff]   ;;  %v8152_v53 = vld [vmem:[%s8389_s10 + $0x50] sm:$0xff]   ;;  %v6213_v19 = vld [vmem:[%s8391_s12] sm:$0xff]  }
 0x36a   : > { %v3915_v40 = vpack.c.bf16 %v3901_v0, %v3900_v33  ;;  %v4092_v41 = vpack.c.bf16 %v8123_v37, %v8109_v20  ;;  %v4269_v25 = vpack.c.bf16 %v8126_v27, %v8112_v5  ;;  %5804 = vmatprep.subr.bf16.mxu0 %v6213_v19  ;;  %v8521_v33 = vld [vmem:[#allocation18_spill] sm:$0xff]  ;;  %v8522_v57 = vld [vmem:[#allocation8_spill] sm:$0xff] }
 0x36b   : > { %v3914_v15 = vpack.c.bf16 %v3899_v38, %v3898_v6  ;;  %v4091_v14 = vpack.c.bf16 %v8131_v35, %v8115_v49  ;;  %v4268_v9 = vpack.c.bf16 %v8134_v32, %v8118_v30  ;;  %5805 = vmatpush3.bf16.msra.mxu0 %v6213_v19  ;;  %v5125_v20 = vld [vmem:[%s8390_s11] ss:$0 sm:$0xff] }
 0x36c   : > { %5806 = vmatprep.subr.bf16.mxu0 %v6214_v42 }
 0x36d   : > { %5748 = vmatprep.mubr.msk.bf16.mxu1 %vm3245_vm2, %v3914_v15  ;;  %v8524_v15 = vld [vmem:[#allocation29_spill] sm:$0xff] }
 0x36e   : > { %5749 = vmatmul.mubr.msk.bf16.vlgmr.msra.gmra.mrb[16].mxu1 %vm3245_vm2, %v3915_v40  ;;  %v8523_v40 = vld [vmem:[#allocation28_spill] sm:$0xff] }
 0x36f   : > { %5765 = vmatpush3.bf16.msra.mxu1 %v6209_v55  ;;  %5807 = vmatpush3.bf16.msra.mxu0 %v6214_v42  ;;  %v8526_v42 = vld [vmem:[#allocation9_spill] sm:$0xff] }
 0x370   : > { %5766 = vmatprep.subr.bf16.mxu1 %v6210_v47  ;;  %5808 = vmatprep.subr.bf16.mxu0 %v6215_v7 }
 0x373   : > { %5767 = vmatpush3.bf16.msra.mxu1 %v6210_v47  ;;  %5809 = vmatpush3.bf16.msra.mxu0 %v6215_v7  ;;  %v8525_v47 = vld [vmem:[#allocation19_spill] sm:$0xff] }
 0x374   : > { %5784 = vmatprep.subr.bf16.mxu1 %v8152_v53 }
 0x37d   : > { %v5654_v2 = vpop.f32.mrb[52].mxu0 }
 0x37e   : > { %v8165_v62 = vmul.f32 %v5654_v2, %v8489_v56  ;;  %v8168_v54 = vmul.f32 %v5654_v2, %v7881_v4  ;;  %v3151_v11 = vpop.f32.mrb[53].mxu0  ;;  %v3904_v18 = vmul.f32 %v5654_v2, %v8491_v31 }
 0x37f   : > { %v8171_v1 = vmul.f32 %v3151_v11, %v8490_v48  ;;  %v8174_v61 = vmul.f32 %v3151_v11, %v7887_v34  ;;  %v5655_v44 = vpop.f32.mrb[54].mxu0  ;;  %v3902_v13 = vmul.f32 %v3151_v11, %v8494_v51 }
 0x380   : > { %v3905_v43 = vmul.f32 %v5655_v44, %v8492_v36  ;;  %v8179_v45 = vmul.f32 %v5655_v44, %v8493_v29  ;;  %v8182_v56 = vmul.f32 %v5655_v44, %v7893_v24  ;;  %v3154_v4 = vpop.f32.mrb[55].mxu0 }
 0x381   : > { %v3903_v48 = vmul.f32 %v3154_v4, %v8495_v21  ;;  %v8187_v28 = vmul.f32 %v3154_v4, %v8496_v26  ;;  %v8190_v34 = vmul.f32 %v3154_v4, %v7903_v22  ;;  %v8529_v4 = vld [vmem:[#allocation21_spill] sm:$0xff] }
 0x382   : > { %v3917_v31 = vpack.c.bf16 %v3905_v43, %v3904_v18  ;;  %v4094_v36 = vpack.c.bf16 %v8179_v45, %v8165_v62  ;;  %v4271_v24 = vpack.c.bf16 %v8182_v56, %v8168_v54  ;;  %v8528_v18 = vld [vmem:[#allocation11_spill] sm:$0xff] }
 0x383   : > { %v3916_v29 = vpack.c.bf16 %v3903_v48, %v3902_v13  ;;  %v4093_v51 = vpack.c.bf16 %v8187_v28, %v8171_v1  ;;  %v4270_v21 = vpack.c.bf16 %v8190_v34, %v8174_v61  ;;  %v8527_v1 = vld [vmem:[#allocation20_spill] sm:$0xff] }
 0x385   : > { %5752 = vmatprep.mubr.msk.bf16.mxu1 %vm3245_vm2, %v3916_v29 }
 0x386   : > { %5753 = vmatmul.mubr.msk.bf16.gmra.mrb[20].mxu1 %vm3245_vm2, %v3917_v31  ;;  %v8530_v31 = vld [vmem:[#allocation30_spill] sm:$0xff] }
 0x395   : > { %v5658_v22 = vpop.f32.mrb[56].mxu0 }
 0x396   : > { %v4085_v26 = vmul.f32 %v5658_v22, %v7372_v59  ;;  %v8204_v17 = vmul.f32 %v5658_v22, %v7936_v16  ;;  %v3167_v23 = vpop.f32.mrb[57].mxu0  ;;  %v3908_v63 = vmul.f32 %v5658_v22, %v7570_v12  ;;  %v8531_v22 = vld [vmem:[#allocation32_spill] sm:$0xff] }
 0x397   : > { %v4083_v58 = vmul.f32 %v3167_v23, %v7375_v46  ;;  %v4260_v55 = vmul.f32 %v3167_v23, %v7942_v3  ;;  %v5659_v50 = vpop.f32.mrb[58].mxu0  ;;  %v3906_v59 = vmul.f32 %v3167_v23, %v8523_v40 }
 0x398   : > { %v3909_v52 = vmul.f32 %v5659_v50, %v7580_v39  ;;  %v4086_v0 = vmul.f32 %v5659_v50, %v8521_v33  ;;  %v4263_v6 = vmul.f32 %v5659_v50, %v8522_v57  ;;  %v3170_v38 = vpop.f32.mrb[59].mxu0  ;;  %v8535_v33 = vld [vmem:[#allocation33_spill] sm:$0xff] }
 0x399   : > { %v3907_v16 = vmul.f32 %v3170_v38, %v8524_v15  ;;  %v4084_v19 = vmul.f32 %v3170_v38, %v8525_v47  ;;  %v4261_v46 = vmul.f32 %v3170_v38, %v8526_v42 }
 0x39a   : > { %v3919_v7 = vpack.c.bf16 %v3909_v52, %v3908_v63  ;;  %v4096_v3 = vpack.c.bf16 %v4086_v0, %v4085_v26  ;;  %v4273_v2 = vpack.c.bf16 %v4263_v6, %v8204_v17  ;;  %v8532_v17 = vld [vmem:[#allocation22_spill] sm:$0xff]  ;;  %v8534_v63 = vld [vmem:[#allocation31_spill] sm:$0xff] }
 0x39b   : > { %v3918_v12 = vpack.c.bf16 %v3907_v16, %v3906_v59  ;;  %v4095_v62 = vpack.c.bf16 %v4084_v19, %v4083_v58  ;;  %v4272_v39 = vpack.c.bf16 %v4261_v46, %v4260_v55  ;;  %v8533_v58 = vld [vmem:[#allocation12_spill] sm:$0xff] }
 0x39d   : > { %5756 = vmatprep.mubr.msk.bf16.mxu1 %vm3245_vm2, %v3918_v12 }
 0x39e   : > { %5757 = vmatmul.mubr.msk.bf16.gmra.mrb[24].mxu1 %vm3245_vm2, %v3919_v7 }
 0x3ad   : > { %v5662_v11 = vpop.f32.mrb[60].mxu0 }
 0x3ae   : > { %v4089_v44 = vmul.f32 %v5662_v11, %v8527_v1  ;;  %v4266_v43 = vmul.f32 %v5662_v11, %v8528_v18  ;;  %v3183_v45 = vpop.f32.mrb[61].mxu0  ;;  %v3912_v29 = vmul.f32 %v5662_v11, %v8530_v31 }
 0x3af   : > { %v4087_v13 = vmul.f32 %v3183_v45, %v8529_v4  ;;  %v4264_v48 = vmul.f32 %v3183_v45, %v7997_v8  ;;  %v5663_v28 = vpop.f32.mrb[62].mxu0  ;;  %v3910_v52 = vmul.f32 %v3183_v45, %v8534_v63 }
 0x3b0   : > { %v3913_v26 = vmul.f32 %v5663_v28, %v8531_v22  ;;  %v4090_v23 = vmul.f32 %v5663_v28, %v8532_v17  ;;  %v4267_v55 = vmul.f32 %v5663_v28, %v8533_v58  ;;  %v3186_v50 = vpop.f32.mrb[63].mxu0 }
 0x3b1   : > { %v3911_v0 = vmul.f32 %v3186_v50, %v8535_v33  ;;  %v4088_v57 = vmul.f32 %v3186_v50, %v8512_v60  ;;  %v4265_v6 = vmul.f32 %v3186_v50, %v8011_v10  ;;  %v6212_v60 = vld [vmem:[%s8389_s10 + $0x58] sm:$0xff]  }
 0x3b2   : > { %v3921_v38 = vpack.c.bf16 %v3913_v26, %v3912_v29  ;;  %v4098_v8 = vpack.c.bf16 %v4090_v23, %v4089_v44  ;;  %v4275_v40 = vpack.c.bf16 %v4267_v55, %v4266_v43  ;;  %v6216_v10 = vld [vmem:[%s8391_s12 + $0x18] sm:$0xff]  }
 0x3b3   : > { %v3920_v59 = vpack.c.bf16 %v3911_v0, %v3910_v52  ;;  %v4097_v15 = vpack.c.bf16 %v4088_v57, %v4087_v13  ;;  %v4274_v16 = vpack.c.bf16 %v4265_v6, %v4264_v48  ;;  %5810 = vmatprep.subr.bf16.mxu0 %v6216_v10 }
 0x3b4   : > { %5811 = vmatpush3.bf16.msra.mxu0 %v6216_v10 }
 0x3b5   : > { %5760 = vmatprep.mubr.msk.bf16.mxu1 %vm3245_vm2, %v3920_v59 }
 0x3b6   : > { %5761 = vmatmul.mubr.msk.bf16.gmra.mrb[28].mxu1 %vm3245_vm2, %v3921_v38 }
 0x3b7   : > { %5768 = vmatprep.mubr.msk.bf16.mxu1 %vm3245_vm2, %v4091_v14 }
 0x3be   : > { %5769 = vmatmul.mubr.msk.bf16.vlgmr.msra.gmra.mrb[16].mxu1 %vm3245_vm2, %v4092_v41 }
 0x3bf   : > { %5785 = vmatpush3.bf16.msra.mxu1 %v8152_v53  ;;  %5772 = vmatprep.mubr.msk.bf16.mxu1 %vm3245_vm2, %v4093_v51 }
 0x3c0   : > { %5786 = vmatprep.subr.bf16.mxu1 %v6212_v60 }
 0x3c3   : > { %5787 = vmatpush3.bf16.msra.mxu1 %v6212_v60 }
 0x3c6   : > { %5773 = vmatmul.mubr.msk.bf16.gmra.mrb[20].mxu1 %vm3245_vm2, %v4094_v36 }
 0x3c7   : > { %5776 = vmatprep.mubr.msk.bf16.mxu1 %vm3245_vm2, %v4095_v62 }
 0x3ce   : > { %5777 = vmatmul.mubr.msk.bf16.gmra.mrb[24].mxu1 %vm3245_vm2, %v4096_v3 }
 0x3cf   : > { %5780 = vmatprep.mubr.msk.bf16.mxu1 %vm3245_vm2, %v4097_v15 }
 0x3d6   : > { %5781 = vmatmul.mubr.msk.bf16.gmra.mrb[28].mxu1 %vm3245_vm2, %v4098_v8  ;;  %v8288_v8 = vld [vmem:[%s8392_s13] ss:$0 sm:$0xff] }
 0x3d7   : > { %5788 = vmatprep.mubr.msk.bf16.mxu1 %vm3245_vm2, %v4268_v9 }
 0x3de   : > { %5789 = vmatmul.mubr.msk.bf16.vlgmr.msra.gmra.mrb[16].mxu1 %vm3245_vm2, %v4269_v25 }
 0x3df   : > { %5792 = vmatprep.mubr.msk.bf16.mxu1 %vm3245_vm2, %v4270_v21 }
 0x3e6   : > { %5793 = vmatmul.mubr.msk.bf16.gmra.mrb[20].mxu1 %vm3245_vm2, %v4271_v24 }
 0x3e7   : > { %5796 = vmatprep.mubr.msk.bf16.mxu1 %vm3245_vm2, %v4272_v39 }
 0x3ee   : > { %5797 = vmatmul.mubr.msk.bf16.gmra.mrb[24].mxu1 %vm3245_vm2, %v4273_v2 }
 0x3ef   : > { %5800 = vmatprep.mubr.msk.bf16.mxu1 %vm3245_vm2, %v4274_v16 }
 0x3f6   : > { %5801 = vmatmul.mubr.msk.bf16.gmra.mrb[28].mxu1 %vm3245_vm2, %v4275_v40 }
 0x4b1   : > { %v5790_v5 = vpop.f32.mrb[16].mxu1 }
 0x4b2   : > { %v5828_v49 = vadd.f32 %v5790_v5, %v5125_v20  ;;  %v4350_v30 = vpop.f32.mrb[17].mxu1 }
 0x4b3   : > { %v5829_v37 = vadd.f32 %v5125_v20, %v4350_v30  ;;  %v5791_v27 = vpop.f32.mrb[18].mxu1 }
 0x4b4   : > { %v5830_v35 = vadd.f32 %v5791_v27, %v5125_v20  ;;  %v4353_v32 = vpop.f32.mrb[19].mxu1  ;;  %v4431_v25 = vmax.f32 %v5828_v49, 0.0 }
 0x4b5   : > { %v5831_v41 = vadd.f32 %v5125_v20, %v4353_v32  ;;  %v4429_v9 = vmax.f32 %v5829_v37, 0.0 }
 0x4b6   : > { %v4432_v14 = vmax.f32 %v5830_v35, 0.0 }
 0x4b7   : > { %v4430_v53 = vmax.f32 %v5831_v41, 0.0 }
 0x4b8   : > { %v4446_v54 = vpack.c.bf16 %v4432_v14, %v4431_v25 }
 0x4b9   : > { %v4445_v61 = vpack.c.bf16 %v4430_v53, %v4429_v9  ;;  %v5794_v56 = vpop.f32.mrb[20].mxu1 }
 0x4ba   : > { %v5832_v34 = vadd.f32 %v5794_v56, %v5125_v20  ;;  %v4366_v36 = vpop.f32.mrb[21].mxu1 }
 0x4bb   : > { %v5833_v24 = vadd.f32 %v5125_v20, %v4366_v36  ;;  %v5795_v51 = vpop.f32.mrb[22].mxu1  ;;  %5812 = vmatprep.mubr.msk.bf16.mxu0 %vm748_vm1, %v4445_v61 }
 0x4bc   : > { %v5834_v21 = vadd.f32 %v5795_v51, %v5125_v20  ;;  %v4369_v47 = vpop.f32.mrb[23].mxu1  ;;  %5813 = vmatmul.mubr.msk.bf16.vlgmr.msra.gmra.mrb[64].mxu0 %vm748_vm1, %v4446_v54  ;;  %v4435_v42 = vmax.f32 %v5832_v34, 0.0 }
 0x4bd   : > { %v5835_v19 = vadd.f32 %v5125_v20, %v4369_v47  ;;  %v4433_v7 = vmax.f32 %v5833_v24, 0.0 }
 0x4be   : > { %v4436_v46 = vmax.f32 %v5834_v21, 0.0 }
 0x4bf   : > { %v4434_v3 = vmax.f32 %v5835_v19, 0.0 }
 0x4c0   : > { %v4448_v2 = vpack.c.bf16 %v4436_v46, %v4435_v42 }
 0x4c1   : > { %v4447_v12 = vpack.c.bf16 %v4434_v3, %v4433_v7  ;;  %v5798_v62 = vpop.f32.mrb[24].mxu1 }
 0x4c2   : > { %v5836_v39 = vadd.f32 %v5798_v62, %v5125_v20  ;;  %v4382_v11 = vpop.f32.mrb[25].mxu1 }
 0x4c3   : > { %v5837_v1 = vadd.f32 %v5125_v20, %v4382_v11  ;;  %v5799_v44 = vpop.f32.mrb[26].mxu1  ;;  %5816 = vmatprep.mubr.msk.bf16.mxu0 %vm748_vm1, %v4447_v12 }
 0x4c4   : > { %v5838_v18 = vadd.f32 %v5799_v44, %v5125_v20  ;;  %v4385_v43 = vpop.f32.mrb[27].mxu1  ;;  %5817 = vmatmul.mubr.msk.bf16.gmra.mrb[68].mxu0 %vm748_vm1, %v4448_v2  ;;  %v4439_v4 = vmax.f32 %v5836_v39, 0.0 }
 0x4c5   : > { %v5839_v45 = vadd.f32 %v5125_v20, %v4385_v43  ;;  %v4437_v48 = vmax.f32 %v5837_v1, 0.0 }
 0x4c6   : > { %v4440_v13 = vmax.f32 %v5838_v18, 0.0 }
 0x4c7   : > { %v4438_v28 = vmax.f32 %v5839_v45, 0.0 }
 0x4c8   : > { %v4450_v31 = vpack.c.bf16 %v4440_v13, %v4439_v4 }
 0x4c9   : > { %v4449_v29 = vpack.c.bf16 %v4438_v28, %v4437_v48  ;;  %v5802_v22 = vpop.f32.mrb[28].mxu1 }
 0x4ca   : > { %v5840_v26 = vadd.f32 %v5802_v22, %v5125_v20  ;;  %v4398_v17 = vpop.f32.mrb[29].mxu1 }
 0x4cb   : > { %v5841_v23 = vadd.f32 %v5125_v20, %v4398_v17  ;;  %v5803_v58 = vpop.f32.mrb[30].mxu1  ;;  %5820 = vmatprep.mubr.msk.bf16.mxu0 %vm748_vm1, %v4449_v29 }
 0x4cc   : > { %v5842_v55 = vadd.f32 %v5803_v58, %v5125_v20  ;;  %v4401_v50 = vpop.f32.mrb[31].mxu1  ;;  %5821 = vmatmul.mubr.msk.bf16.gmra.mrb[72].mxu0 %vm748_vm1, %v4450_v31  ;;  %v4443_v52 = vmax.f32 %v5840_v26, 0.0 }
 0x4cd   : > { %v5843_v63 = vadd.f32 %v5125_v20, %v4401_v50  ;;  %v4441_v0 = vmax.f32 %v5841_v23, 0.0 }
 0x4ce   : > { %v4444_v33 = vmax.f32 %v5842_v55, 0.0 }
 0x4cf   : > { %v4442_v57 = vmax.f32 %v5843_v63, 0.0 }
 0x4d0   : > { %v4452_v6 = vpack.c.bf16 %v4444_v33, %v4443_v52 }
 0x4d1   : > { %v4451_v38 = vpack.c.bf16 %v4442_v57, %v4441_v0 }
 0x4d3   : > { %5824 = vmatprep.mubr.msk.bf16.mxu0 %vm748_vm1, %v4451_v38 }
 0x4d4   : > { %5825 = vmatmul.mubr.msk.bf16.gmra.mrb[76].mxu0 %vm748_vm1, %v4452_v6 }
 0x58f   : > { %v5814_v40 = vpop.f32.mrb[64].mxu0 }
 0x590   : > { %v4559_v59 = vadd.f32 %v5814_v40, %v8288_v8  ;;  %v4550_v15 = vpop.f32.mrb[65].mxu0 }
 0x591   : > { %v4551_v16 = vadd.f32 %v8288_v8, %v4550_v15  ;;  %v5815_v60 = vpop.f32.mrb[66].mxu0 }
 0x592   : > { %v5211_v10 = vmul.f32 -1.442695, %v4559_v59  ;;  %v4562_v20 = vadd.f32 %v5815_v60, %v8288_v8  ;;  %v4553_v5 = vpop.f32.mrb[67].mxu0 }
 0x593   : > { %v5209_v49 = vmul.f32 -1.442695, %v4551_v16  ;;  %v4554_v30 = vadd.f32 %v8288_v8, %v4553_v5 }
 0x594   : > { %6217 = vpow2.f32 %v5211_v10  ;;  %v5212_v37 = vmul.f32 -1.442695, %v4562_v20 }
 0x595   : > { %6219 = vpow2.f32 %v5209_v49  ;;  %v5210_v27 = vmul.f32 -1.442695, %v4554_v30 }
 0x596   : > { %6221 = vpow2.f32 %v5212_v37 }
 0x597   : > { %6223 = vpow2.f32 %v5210_v27  ;;  %v5818_v35 = vpop.f32.mrb[68].mxu0 }
 0x598   : > { %v4575_v32 = vadd.f32 %v5818_v35, %v8288_v8  ;;  %v4566_v41 = vpop.f32.mrb[69].mxu0 }
 0x599   : > { %v4567_v25 = vadd.f32 %v8288_v8, %v4566_v41  ;;  %v5819_v14 = vpop.f32.mrb[70].mxu0 }
 0x59a   : > { %v5215_v9 = vmul.f32 -1.442695, %v4575_v32  ;;  %v4578_v53 = vadd.f32 %v5819_v14, %v8288_v8  ;;  %v4569_v54 = vpop.f32.mrb[71].mxu0 }
 0x59b   : > { %v5213_v61 = vmul.f32 -1.442695, %v4567_v25  ;;  %v4570_v56 = vadd.f32 %v8288_v8, %v4569_v54 }
 0x59c   : > { %6225 = vpow2.f32 %v5215_v9  ;;  %v5216_v34 = vmul.f32 -1.442695, %v4578_v53 }
 0x59d   : > { %6227 = vpow2.f32 %v5213_v61  ;;  %v5214_v36 = vmul.f32 -1.442695, %v4570_v56 }
 0x59e   : > { %v6218_v24 = vpop.eup %6217  ;;  %6229 = vpow2.f32 %v5216_v34 }
 0x59f   : > { %v6220_v51 = vpop.eup %6219  ;;  %v4663_v21 = vadd.f32 1.0, %v6218_v24  ;;  %6231 = vpow2.f32 %v5214_v36  ;;  %v5822_v47 = vpop.f32.mrb[72].mxu0 }
 0x5a0   : > { %v6222_v19 = vpop.eup %6221  ;;  %v4661_v42 = vadd.f32 1.0, %v6220_v51  ;;  %v4591_v46 = vadd.f32 %v5822_v47, %v8288_v8  ;;  %v4582_v7 = vpop.f32.mrb[73].mxu0 }
 0x5a1   : > { %v6224_v3 = vpop.eup %6223  ;;  %6233 = vrcp.f32 %v4663_v21  ;;  %v4664_v2 = vadd.f32 1.0, %v6222_v19  ;;  %v4583_v12 = vadd.f32 %v8288_v8, %v4582_v7  ;;  %v5823_v62 = vpop.f32.mrb[74].mxu0 }
 0x5a2   : > { %6235 = vrcp.f32 %v4661_v42  ;;  %v4662_v39 = vadd.f32 1.0, %v6224_v3  ;;  %v5219_v11 = vmul.f32 -1.442695, %v4591_v46  ;;  %v4594_v1 = vadd.f32 %v5823_v62, %v8288_v8  ;;  %v4585_v44 = vpop.f32.mrb[75].mxu0 }
 0x5a3   : > { %6237 = vrcp.f32 %v4664_v2  ;;  %v5217_v18 = vmul.f32 -1.442695, %v4583_v12  ;;  %v4586_v43 = vadd.f32 %v8288_v8, %v4585_v44 }
 0x5a4   : > { %6239 = vrcp.f32 %v4662_v39  ;;  %v5220_v45 = vmul.f32 -1.442695, %v4594_v1 }
 0x5a5   : > { %6241 = vpow2.f32 %v5219_v11  ;;  %v5218_v4 = vmul.f32 -1.442695, %v4586_v43 }
 0x5a6   : > { %v6226_v13 = vpop.eup %6225  ;;  %6243 = vpow2.f32 %v5217_v18 }
 0x5a7   : > { %v6228_v48 = vpop.eup %6227  ;;  %v4667_v28 = vadd.f32 1.0, %v6226_v13  ;;  %6245 = vpow2.f32 %v5220_v45  ;;  %v5826_v31 = vpop.f32.mrb[76].mxu0 }
 0x5a8   : > { %v6230_v29 = vpop.eup %6229  ;;  %v4665_v22 = vadd.f32 1.0, %v6228_v48  ;;  %6247 = vpow2.f32 %v5218_v4  ;;  %v4607_v26 = vadd.f32 %v5826_v31, %v8288_v8  ;;  %v4598_v17 = vpop.f32.mrb[77].mxu0 }
 0x5a9   : > { %v6232_v23 = vpop.eup %6231  ;;  %6249 = vrcp.f32 %v4667_v28  ;;  %v4668_v58 = vadd.f32 1.0, %v6230_v29  ;;  %v4599_v55 = vadd.f32 %v8288_v8, %v4598_v17  ;;  %v5827_v50 = vpop.f32.mrb[78].mxu0 }
 0x5aa   : > { %6251 = vrcp.f32 %v4665_v22  ;;  %v4666_v63 = vadd.f32 1.0, %v6232_v23  ;;  %v5223_v52 = vmul.f32 -1.442695, %v4607_v26  ;;  %v4610_v33 = vadd.f32 %v5827_v50, %v8288_v8  ;;  %v4601_v0 = vpop.f32.mrb[79].mxu0 }
 0x5ab   : > { %v6234_v57 = vpop.eup %6233  ;;  %6253 = vrcp.f32 %v4668_v58  ;;  %v5221_v6 = vmul.f32 -1.442695, %v4599_v55  ;;  %v4602_v38 = vadd.f32 %v8288_v8, %v4601_v0 }
 0x5ac   : > { %v6236_v40 = vpop.eup %6235  ;;  %4711 = vst [vmem:[%s8309_s25 + $0x10] sm:$0xff] %v6234_v57  ;;  %6255 = vrcp.f32 %v4666_v63  ;;  %v5224_v59 = vmul.f32 -1.442695, %v4610_v33 }
 0x5ad   : > { %v6238_v15 = vpop.eup %6237  ;;  %4709 = vst [vmem:[%s8309_s25] sm:$0xff] %v6236_v40  ;;  %6257 = vpow2.f32 %v5223_v52  ;;  %v5222_v16 = vmul.f32 -1.442695, %v4602_v38 }
 0x5ae   : > { %v6240_v60 = vpop.eup %6239  ;;  %4712 = vst [vmem:[%s8309_s25 + $0x18] sm:$0xff] %v6238_v15  ;;  %6259 = vpow2.f32 %v5221_v6 }
 0x5af   : > { %v6242_v10 = vpop.eup %6241  ;;  %4710 = vst [vmem:[%s8309_s25 + $0x8] sm:$0xff] %v6240_v60  ;;  %6261 = vpow2.f32 %v5224_v59 }
 0x5b0   : > { %v6244_v8 = vpop.eup %6243  ;;  %v4671_v20 = vadd.f32 1.0, %v6242_v10  ;;  %6263 = vpow2.f32 %v5222_v16 }
 0x5b1   : > { %v6246_v5 = vpop.eup %6245  ;;  %v4669_v49 = vadd.f32 1.0, %v6244_v8 }
 0x5b2   : > { %v6248_v30 = vpop.eup %6247  ;;  %6265 = vrcp.f32 %v4671_v20  ;;  %v4672_v37 = vadd.f32 1.0, %v6246_v5 }
 0x5b3   : > { %v6250_v27 = vpop.eup %6249  ;;  %6267 = vrcp.f32 %v4669_v49  ;;  %v4670_v35 = vadd.f32 1.0, %v6248_v30 }
 0x5b4   : > { %v6252_v32 = vpop.eup %6251  ;;  %4715 = vst [vmem:[%s8309_s25 + $0x30] sm:$0xff] %v6250_v27  ;;  %6269 = vrcp.f32 %v4672_v37 }
 0x5b5   : > { %v6254_v41 = vpop.eup %6253  ;;  %4713 = vst [vmem:[%s8309_s25 + $0x20] sm:$0xff] %v6252_v32  ;;  %6271 = vrcp.f32 %v4670_v35 }
 0x5b6   : > { %v6256_v25 = vpop.eup %6255  ;;  %4716 = vst [vmem:[%s8309_s25 + $0x38] sm:$0xff] %v6254_v41 }
 0x5b7   : > { %v6258_v14 = vpop.eup %6257  ;;  %4714 = vst [vmem:[%s8309_s25 + $0x28] sm:$0xff] %v6256_v25 }
 0x5b8   : > { %v6260_v9 = vpop.eup %6259  ;;  %v4675_v53 = vadd.f32 1.0, %v6258_v14 }
 0x5b9   : > { %v6262_v54 = vpop.eup %6261  ;;  %v4673_v61 = vadd.f32 1.0, %v6260_v9 }
 0x5ba   : > { %v6264_v56 = vpop.eup %6263  ;;  %6273 = vrcp.f32 %v4675_v53  ;;  %v4676_v34 = vadd.f32 1.0, %v6262_v54 }
 0x5bb   : > { %6275 = vrcp.f32 %v4673_v61  ;;  %v4674_v36 = vadd.f32 1.0, %v6264_v56 }
 0x5bc   : > { %v6266_v24 = vpop.eup %6265  ;;  %6277 = vrcp.f32 %v4676_v34 }
 0x5bd   : > { %v6268_v51 = vpop.eup %6267  ;;  %4719 = vst [vmem:[%s8309_s25 + $0x50] sm:$0xff] %v6266_v24  ;;  %6279 = vrcp.f32 %v4674_v36 }
 0x5be   : > { %v6270_v21 = vpop.eup %6269  ;;  %4717 = vst [vmem:[%s8309_s25 + $0x40] sm:$0xff] %v6268_v51 }
 0x5bf   : > { %v6272_v47 = vpop.eup %6271  ;;  %4720 = vst [vmem:[%s8309_s25 + $0x58] sm:$0xff] %v6270_v21 }
 0x5c0   : > { %4718 = vst [vmem:[%s8309_s25 + $0x48] sm:$0xff] %v6272_v47 }
 0x5c4   : > { %v6274_v19 = vpop.eup %6273 }
 0x5c5   : > { %v6276_v42 = vpop.eup %6275  ;;  %4723 = vst [vmem:[%s8309_s25 + $0x70] sm:$0xff] %v6274_v19 }
 0x5c6   : > { %v6278_v46 = vpop.eup %6277  ;;  %4721 = vst [vmem:[%s8309_s25 + $0x60] sm:$0xff] %v6276_v42 }
 0x5c7   : > { %v6280_v7 = vpop.eup %6279  ;;  %4724 = vst [vmem:[%s8309_s25 + $0x78] sm:$0xff] %v6278_v46 }
 0x5c8   : > { %4722 = vst [vmem:[%s8309_s25 + $0x68] sm:$0xff] %v6280_v7 }
 0x5c9   : > { %6310 = shalt.err (!%p6307_p3)
}
 0x5ca   : > { %s6311_s15 = scalar_lea.hbm %s8329_s18, 2048  ;;  %s6315_s28 = scalar_lea.hbm %s8393_s14, 4096 }
 0x5cb   : > { %p6312_p4 = scmp.ne.s32.totalorder %s8329_s18, %s6311_s15  ;;  %p6316_p9 = scmp.lt.u32.totalorder %s8329_s18, %s8393_s14 }
 0x5cc   : > { %p6317_p10 = scmp.lt.u32.totalorder %s6315_s28, %s6311_s15  ;;  %p6319_p12 = scmp.lt.u32.totalorder %s6311_s15, %s8329_s18 }
 0x5cd   : > { %p6313_p7 = pnand %p6312_p4, %p6484_p5 }
 0x5ce   : > { %p6318_p11 = por %p6317_p10, %p6316_p9 }
 0x5cf   : > { %p6314_p8 = pneg %p6313_p7 }
 0x5d0   : > { %p6320_p13 = por %p6319_p12, %p6318_p11 }
 0x5d2   : > { %p6321_p0 = pnand %p6320_p13, %p6314_p8 }
 0x5d4   : > { %6324 = shalt.err (!%p6321_p0)
}
 0x5d5   : > { %s6369_s20 = smov 128   ;;  %s6370_s26 = smov 8  }
 0x5d6   : > { %5988 = dma.vmem_to_hbm [thread:$0]  (%p6484_p5), %s8331_s22, 2048, %s8329_s18, %s8338_s17, %s6369_s20, %s6369_s20, %s6370_s26  }
 0x5d7 PF: > { %p5994_p1 = scmp.ge.s32.totalorder %s6359_s16, 2  ;;  %s4754_s25 = sand.u32 1, %s6347_s29  }
 0x5d8   : > { %s4755_s15 = scalar_lea.sflag [#allocation3], %s4754_s25 }
 0x5d9   : > { %p5991_p2 = pnand %p5994_p1, %p6488_p6 }
 0x5db   : > { %6342 = dma.done.wait (!%p5991_p2), %s4755_s15, 2048  }
 0x5dc   : > { %6344 = vsyncadd (!%p5991_p2), %s4755_s15, 4294965248  ;;  %s8536_s16 = sld [smem:[#allocation6_spill]]  ;;  %s8537_s27 = sld [smem:[#allocation5_spill]] }
 0x5dd   : > { %s8538_s15 = sld [smem:[#allocation7_spill]]  ;;  %s8539_s29 = smov %s6351_s30 }
 0x5e2   : > { %p24_p3 = scmp.ge.s32.totalorder %s8536_s16, 4   ;;  %s8540_s30 = smov %s8537_s27 }
 0x5e4   :  { %26 = sbr.rel (!%p24_p3) target bundleno = 3 (0x3), region = 114 }
 0x5eb   :  { %4760 = vsyncpa [#allocation3], 1 }
 0x5ec   :  { %4762 = vsyncpa [#allocation3 + $0x1], 1 }

</bundles_post_ra>
